<compile_context>
chip_gen: v7x
topology: tpu7x:2x2x1
jax: 0.10.0
libtpu: 0.0.40
codegen_flags: <defaults>
</compile_context>

<pallas_src>
import jax
import jax.numpy as jnp
from jax.experimental import pallas as pl
from jax.experimental.pallas import tpu as pltpu

EPS = 1e-5   # nn.InstanceNorm2d default eps
K = 3        # kernel_size
LPAD = 8     # sublane-aligned column where the image interior starts in scratch


def _round_up(x, m):
    return (x + m - 1) // m * m


def _write_reflect_pad(xp_ref, img, W):
    """ReflectionPad2d(1): write padded `img` into the scratch in place.

    Layout: padded-image column c lives at scratch column c + (LPAD - 1), i.e.
    the interior (x columns 0..W-1) occupies the sublane-aligned window
    [LPAD, LPAD+W); the left/right pad columns sit at LPAD-1 and LPAD+W.
    """
    H = img.shape[0]
    # interior block store (sublane-aligned start, width W)
    xp_ref[1:H + 1, LPAD:LPAD + W, :] = img
    # top / bottom reflected rows (reflection of x rows 1 and H-2)
    xp_ref[0:1, LPAD:LPAD + W, :] = img[1:2]
    xp_ref[H + 1:H + 2, LPAD:LPAD + W, :] = img[H - 2:H - 1]
    # left / right reflected columns (read back so corners pick up the
    # already-reflected rows): left pad = x col 1, right pad = x col W-2.
    xp_ref[:, LPAD - 1:LPAD, :] = xp_ref[:, LPAD + 1:LPAD + 2, :]
    xp_ref[:, LPAD + W:LPAD + W + 1, :] = xp_ref[:, LPAD + W - 2:LPAD + W - 1, :]


def _conv3x3_bias(xp, w_ref, b_ref, H, W):
    """3x3 'valid' conv over the padded image + bias, for one image.

    xp:    (H+2, Wpad, C) bf16 value (padded image occupies cols LPAD-1..LPAD+W).
    w_ref: (K*K, Cin, Cout) bf16 ref.  Returns (H*W, Cout) f32.
    """
    C = xp.shape[-1]
    acc = None
    for ky in range(K):
        for kx in range(K):
            tap = xp[ky:ky + H, LPAD - 1 + kx:LPAD - 1 + kx + W, :]
            tap = tap.reshape(H * W, C)            # one big-M 2D matmul per tap
            contrib = jnp.dot(tap, w_ref[ky * K + kx],
                              preferred_element_type=jnp.float32)
            acc = contrib if acc is None else acc + contrib
    return acc + b_ref[...].astype(jnp.float32)


def _instance_norm_affine(y, g_ref, bt_ref):
    """InstanceNorm2d(affine=True) on a flattened (H*W, C) f32 activation."""
    inv_n = 1.0 / y.shape[0]
    s = jnp.sum(y, axis=0, keepdims=True)
    ss = jnp.sum(y * y, axis=0, keepdims=True)
    mean = s * inv_n
    var = jnp.maximum(ss * inv_n - mean * mean, 0.0)   # clamp: avoid cancellation
    xhat = (y - mean) * jax.lax.rsqrt(var + EPS)
    return xhat * g_ref[...].astype(jnp.float32) + bt_ref[...].astype(jnp.float32)


def _residual_block_kernel(x_ref,
                           w1_ref, b1_ref, g1_ref, bt1_ref,
                           w2_ref, b2_ref, g2_ref, bt2_ref,
                           o_ref, xp_ref):
    """Fused ResidualBlock for one batch image; `h` and the pads stay in VMEM."""
    _, H, W, C = x_ref.shape
    x = x_ref[0].astype(jnp.float32)                         # (H, W, C)

    # ---- stage 1: reflect-pad -> conv3x3 -> IN -> ReLU ----------------------
    _write_reflect_pad(xp_ref, x.astype(jnp.bfloat16), W)
    h = _conv3x3_bias(xp_ref[...], w1_ref, b1_ref, H, W)     # (H*W, C) f32
    h = _instance_norm_affine(h, g1_ref, bt1_ref)
    h = jnp.maximum(h, 0.0)                                  # ReLU

    # ---- stage 2: reflect-pad -> conv3x3 -> IN -> + residual ----------------
    _write_reflect_pad(xp_ref, h.reshape(H, W, C).astype(jnp.bfloat16), W)
    y = _conv3x3_bias(xp_ref[...], w2_ref, b2_ref, H, W)
    y = _instance_norm_affine(y, g2_ref, bt2_ref)

    o_ref[...] = (y.reshape(H, W, C) + x)[None].astype(o_ref.dtype)


def _vmem_capacity_bytes():
    """Per-core VMEM capacity; conservative (v7x) fallback if the query fails."""
    try:
        info = pltpu.get_tpu_info()
        for attr in ("vmem_capacity_bytes", "vmem_bytes", "vmem_size_bytes"):
            v = getattr(info, attr, None)
            if v:
                return int(v)
    except Exception:
        pass
    return 64 << 20


def _pick_vmem_limit(H, W, C, wpad, in_itemsize):
    tile_in = H * W * C * in_itemsize
    tile_f32 = H * W * C * 4
    w_bytes = 2 * K * K * C * C * 2           # both convs, bf16
    scratch = (H + 2) * wpad * C * 2          # bf16 pad scratch
    need = (4 * tile_in                       # double-buffered in + out tiles
            + 2 * w_bytes                     # weights (budget double-buffered)
            + scratch
            + 14 * tile_f32                   # in-kernel live temporaries, generous
            + (2 << 20))                      # headroom
    cap = _vmem_capacity_bytes()
    usable = cap - (12 << 20)                 # leave headroom below per-TC capacity
    return int(max(32 << 20, min(need, usable)))


def residual_block_nhwc(x_nhwc, params):
    """ResidualBlock forward, NHWC in / NHWC out (preferred entry point)."""
    N, H, W, C = x_nhwc.shape
    wpad = _round_up(LPAD + W + 1, 8)

    # Weights laid out as (K*K, Cin, Cout), pre-cast to bf16 for the MXU.
    w1 = params['w1'].reshape(K * K, C, C).astype(jnp.bfloat16)
    w2 = params['w2'].reshape(K * K, C, C).astype(jnp.bfloat16)

    img_spec = pl.BlockSpec((1, H, W, C), lambda n: (n, 0, 0, 0))
    w_spec = pl.BlockSpec((K * K, C, C), lambda n: (0, 0, 0))
    vec_spec = pl.BlockSpec((1, C), lambda n: (0, 0))

    vmem_limit = _pick_vmem_limit(H, W, C, wpad, x_nhwc.dtype.itemsize)

    return pl.pallas_call(
        _residual_block_kernel,
        out_shape=jax.ShapeDtypeStruct((N, H, W, C), x_nhwc.dtype),
        grid_spec=pltpu.PrefetchScalarGridSpec(
            num_scalar_prefetch=0,
            grid=(N,),
            in_specs=[img_spec,
                      w_spec, vec_spec, vec_spec, vec_spec,
                      w_spec, vec_spec, vec_spec, vec_spec],
            out_specs=img_spec,
            scratch_shapes=[pltpu.VMEM((H + 2, wpad, C), jnp.bfloat16)],
        ),
        compiler_params=pltpu.CompilerParams(
            dimension_semantics=("parallel",),
            vmem_limit_bytes=vmem_limit,
        ),
    )(x_nhwc, w1, params['b1'], params['g1'], params['bt1'],
      w2, params['b2'], params['g2'], params['bt2'])


def residual_block(x_nchw, params):
    """NCHW wrapper matching the PyTorch module. For a stack of blocks, prefer
    residual_block_nhwc and convert layouts once at model entry/exit."""
    x = jnp.transpose(x_nchw, (0, 2, 3, 1))
    out = residual_block_nhwc(x, params)
    return jnp.transpose(out, (0, 3, 1, 2))


def init_params(key, channels):
    ks = jax.random.split(key, 4)
    scale = 1.0 / (channels * K * K) ** 0.5
    return {
        # conv weights stored as (kh, kw, Cin, Cout)
        'w1': jax.random.uniform(ks[0], (K, K, channels, channels),
                                 jnp.float32, -scale, scale),
        'b1': jax.random.uniform(ks[1], (1, channels), jnp.float32, -scale, scale),
        'w2': jax.random.uniform(ks[2], (K, K, channels, channels),
                                 jnp.float32, -scale, scale),
        'b2': jax.random.uniform(ks[3], (1, channels), jnp.float32, -scale, scale),
        # InstanceNorm2d(affine=True) params (gamma=1, beta=0 at init)
        'g1': jnp.ones((1, channels), jnp.float32),
        'bt1': jnp.zeros((1, channels), jnp.float32),
        'g2': jnp.ones((1, channels), jnp.float32),
        'bt2': jnp.zeros((1, channels), jnp.float32),
    }


def _reference(x_nchw, params):
    """Pure-JAX reference with the same bf16-operand / f32-accumulate math."""
    x = jnp.transpose(x_nchw, (0, 2, 3, 1))

    def conv_in(inp, w, b, g, bt):
        xp = jnp.pad(inp, ((0, 0), (1, 1), (1, 1), (0, 0)), mode='reflect')
        out = jax.lax.conv_general_dilated(
            xp.astype(jnp.bfloat16), w.astype(jnp.bfloat16),
            window_strides=(1, 1), padding='VALID',
            dimension_numbers=('NHWC', 'HWIO', 'NHWC'),
            preferred_element_type=jnp.float32)
        out = out + b[0]
        mean = jnp.mean(out, axis=(1, 2), keepdims=True)
        var = jnp.var(out, axis=(1, 2), keepdims=True)
        return (out - mean) * jax.lax.rsqrt(var + EPS) * g[0] + bt[0]

    h = jax.nn.relu(conv_in(x, params['w1'], params['b1'], params['g1'], params['bt1']))
    y = conv_in(h, params['w2'], params['b2'], params['g2'], params['bt2']) + x
    return jnp.transpose(y, (0, 3, 1, 2))


if __name__ == "__main__":
    key = jax.random.PRNGKey(0)
    k_x, k_p = jax.random.split(key)
    N, C, H, W = 2, 4, 16, 16
    x = jax.random.normal(k_x, (N, C, H, W), jnp.float32)   # NCHW like PyTorch
    params = init_params(k_p, C)

    out = jax.block_until_ready(residual_block(x, params))
    assert out.shape == (N, C, H, W)
    assert bool(jnp.all(jnp.isfinite(out)))

    ref = _reference(x, params)
    max_err = float(jnp.max(jnp.abs(out - ref)))
    assert jnp.allclose(out, ref, atol=1e-2, rtol=1e-2), f"max_err={max_err}"

    print("KERNEL_OK")
</pallas_src>

<mosaic_0001>
module attributes {stable_mosaic.version = 11 : i64} {
  func.func @_residual_block_kernel(%arg0: i32, %arg1: memref<1x16x16x4xf32, #tpu.memory_space<vmem>>, %arg2: memref<9x4x4xbf16, #tpu.memory_space<vmem>>, %arg3: memref<1x4xf32, #tpu.memory_space<vmem>>, %arg4: memref<1x4xf32, #tpu.memory_space<vmem>>, %arg5: memref<1x4xf32, #tpu.memory_space<vmem>>, %arg6: memref<9x4x4xbf16, #tpu.memory_space<vmem>>, %arg7: memref<1x4xf32, #tpu.memory_space<vmem>>, %arg8: memref<1x4xf32, #tpu.memory_space<vmem>>, %arg9: memref<1x4xf32, #tpu.memory_space<vmem>>, %arg10: memref<1x16x16x4xf32, #tpu.memory_space<vmem>>, %arg11: memref<18x32x4xbf16, #tpu.memory_space<vmem>>) attributes {dimension_semantics = [#tpu.dimension_semantics<parallel>], iteration_bounds = array<i64: 2>, scalar_prefetch = 0 : i64, scratch_operands = 1 : i64, tpu.core_type = #tpu.core_type<tc>, window_params = [{transform_indices = @transform_0, window_bounds = array<i64: 1, 16, 16, 4>}, {pipeline_mode = #tpu.pipeline_mode<synchronous>, transform_indices = @transform_1, window_bounds = array<i64: 9, 4, 4>}, {pipeline_mode = #tpu.pipeline_mode<synchronous>, transform_indices = @transform_2, window_bounds = array<i64: 1, 4>}, {pipeline_mode = #tpu.pipeline_mode<synchronous>, transform_indices = @transform_3, window_bounds = array<i64: 1, 4>}, {pipeline_mode = #tpu.pipeline_mode<synchronous>, transform_indices = @transform_4, window_bounds = array<i64: 1, 4>}, {pipeline_mode = #tpu.pipeline_mode<synchronous>, transform_indices = @transform_5, window_bounds = array<i64: 9, 4, 4>}, {pipeline_mode = #tpu.pipeline_mode<synchronous>, transform_indices = @transform_6, window_bounds = array<i64: 1, 4>}, {pipeline_mode = #tpu.pipeline_mode<synchronous>, transform_indices = @transform_7, window_bounds = array<i64: 1, 4>}, {pipeline_mode = #tpu.pipeline_mode<synchronous>, transform_indices = @transform_8, window_bounds = array<i64: 1, 4>}, {transform_indices = @transform_9, window_bounds = array<i64: 1, 16, 16, 4>}]} {
    %c0 = arith.constant 0 : index
    %c0_0 = arith.constant 0 : index
    %c0_1 = arith.constant 0 : index
    %c0_2 = arith.constant 0 : index
    %0 = vector.load %arg1[%c0, %c0_0, %c0_1, %c0_2] : memref<1x16x16x4xf32, #tpu.memory_space<vmem>>, vector<1x16x16x4xf32>
    %1 = vector.shape_cast %0 : vector<1x16x16x4xf32> to vector<16x16x4xf32>
    %2 = arith.truncf %1 : vector<16x16x4xf32> to vector<16x16x4xbf16>
    %c1 = arith.constant 1 : index
    %c8 = arith.constant 8 : index
    %c0_3 = arith.constant 0 : index
    %3 = vector.load %arg11[%c1, %c8, %c0_3] : memref<18x32x4xbf16, #tpu.memory_space<vmem>>, vector<16x16x4xbf16>
    tpu.vector_store %arg11[%c1, %c8, %c0_3], %2 {strides = array<i32>} : memref<18x32x4xbf16, #tpu.memory_space<vmem>>, vector<16x16x4xbf16>,
    %4 = vector.extract_strided_slice %2 {offsets = [1, 0, 0], sizes = [1, 16, 4], strides = [1, 1, 1]} : vector<16x16x4xbf16> to vector<1x16x4xbf16>
    %c0_4 = arith.constant 0 : index
    %c8_5 = arith.constant 8 : index
    %c0_6 = arith.constant 0 : index
    %5 = vector.load %arg11[%c0_4, %c8_5, %c0_6] : memref<18x32x4xbf16, #tpu.memory_space<vmem>>, vector<1x16x4xbf16>
    tpu.vector_store %arg11[%c0_4, %c8_5, %c0_6], %4 {strides = array<i32>} : memref<18x32x4xbf16, #tpu.memory_space<vmem>>, vector<1x16x4xbf16>,
    %6 = vector.extract_strided_slice %2 {offsets = [14, 0, 0], sizes = [1, 16, 4], strides = [1, 1, 1]} : vector<16x16x4xbf16> to vector<1x16x4xbf16>
    %c17 = arith.constant 17 : index
    %c8_7 = arith.constant 8 : index
    %c0_8 = arith.constant 0 : index
    %7 = vector.load %arg11[%c17, %c8_7, %c0_8] : memref<18x32x4xbf16, #tpu.memory_space<vmem>>, vector<1x16x4xbf16>
    tpu.vector_store %arg11[%c17, %c8_7, %c0_8], %6 {strides = array<i32>} : memref<18x32x4xbf16, #tpu.memory_space<vmem>>, vector<1x16x4xbf16>,
    %c0_9 = arith.constant 0 : index
    %c9 = arith.constant 9 : index
    %c0_10 = arith.constant 0 : index
    %8 = vector.load %arg11[%c0_9, %c9, %c0_10] : memref<18x32x4xbf16, #tpu.memory_space<vmem>>, vector<18x1x4xbf16>
    %c0_11 = arith.constant 0 : index
    %c7 = arith.constant 7 : index
    %c0_12 = arith.constant 0 : index
    %9 = vector.load %arg11[%c0_11, %c7, %c0_12] : memref<18x32x4xbf16, #tpu.memory_space<vmem>>, vector<18x1x4xbf16>
    tpu.vector_store %arg11[%c0_11, %c7, %c0_12], %8 {strides = array<i32>} : memref<18x32x4xbf16, #tpu.memory_space<vmem>>, vector<18x1x4xbf16>,
    %c0_13 = arith.constant 0 : index
    %c22 = arith.constant 22 : index
    %c0_14 = arith.constant 0 : index
    %10 = vector.load %arg11[%c0_13, %c22, %c0_14] : memref<18x32x4xbf16, #tpu.memory_space<vmem>>, vector<18x1x4xbf16>
    %c0_15 = arith.constant 0 : index
    %c24 = arith.constant 24 : index
    %c0_16 = arith.constant 0 : index
    %11 = vector.load %arg11[%c0_15, %c24, %c0_16] : memref<18x32x4xbf16, #tpu.memory_space<vmem>>, vector<18x1x4xbf16>
    tpu.vector_store %arg11[%c0_15, %c24, %c0_16], %10 {strides = array<i32>} : memref<18x32x4xbf16, #tpu.memory_space<vmem>>, vector<18x1x4xbf16>,
    %c0_17 = arith.constant 0 : index
    %c0_18 = arith.constant 0 : index
    %c0_19 = arith.constant 0 : index
    %12 = vector.load %arg11[%c0_17, %c0_18, %c0_19] : memref<18x32x4xbf16, #tpu.memory_space<vmem>>, vector<18x32x4xbf16>
    %13 = vector.extract_strided_slice %12 {offsets = [0, 7, 0], sizes = [16, 16, 4], strides = [1, 1, 1]} : vector<18x32x4xbf16> to vector<16x16x4xbf16>
    %14 = vector.shape_cast %13 : vector<16x16x4xbf16> to vector<256x4xbf16>
    %c0_20 = arith.constant 0 : index
    %c0_21 = arith.constant 0 : index
    %c0_22 = arith.constant 0 : index
    %15 = vector.load %arg2[%c0_20, %c0_21, %c0_22] : memref<9x4x4xbf16, #tpu.memory_space<vmem>>, vector<1x4x4xbf16>
    %16 = vector.shape_cast %15 : vector<1x4x4xbf16> to vector<4x4xbf16>
    %cst = arith.constant dense<0.000000e+00> : vector<256x4xf32>
    %17 = tpu.matmul %14, %16, %cst {dimension_numbers = #tpu.dot_dimension_numbers<[1], [0], [0], [1], [0, 0, 1, 1], [], []>} : vector<256x4xbf16>, vector<4x4xbf16>, vector<256x4xf32> -> vector<256x4xf32>
    %18 = vector.extract_strided_slice %12 {offsets = [0, 8, 0], sizes = [16, 16, 4], strides = [1, 1, 1]} : vector<18x32x4xbf16> to vector<16x16x4xbf16>
    %19 = vector.shape_cast %18 : vector<16x16x4xbf16> to vector<256x4xbf16>
    %c1_23 = arith.constant 1 : index
    %c0_24 = arith.constant 0 : index
    %c0_25 = arith.constant 0 : index
    %20 = vector.load %arg2[%c1_23, %c0_24, %c0_25] : memref<9x4x4xbf16, #tpu.memory_space<vmem>>, vector<1x4x4xbf16>
    %21 = vector.shape_cast %20 : vector<1x4x4xbf16> to vector<4x4xbf16>
    %cst_26 = arith.constant dense<0.000000e+00> : vector<256x4xf32>
    %22 = tpu.matmul %19, %21, %cst_26 {dimension_numbers = #tpu.dot_dimension_numbers<[1], [0], [0], [1], [0, 0, 1, 1], [], []>} : vector<256x4xbf16>, vector<4x4xbf16>, vector<256x4xf32> -> vector<256x4xf32>
    %23 = arith.addf %17, %22 : vector<256x4xf32>
    %24 = vector.extract_strided_slice %12 {offsets = [0, 9, 0], sizes = [16, 16, 4], strides = [1, 1, 1]} : vector<18x32x4xbf16> to vector<16x16x4xbf16>
    %25 = vector.shape_cast %24 : vector<16x16x4xbf16> to vector<256x4xbf16>
    %c2 = arith.constant 2 : index
    %c0_27 = arith.constant 0 : index
    %c0_28 = arith.constant 0 : index
    %26 = vector.load %arg2[%c2, %c0_27, %c0_28] : memref<9x4x4xbf16, #tpu.memory_space<vmem>>, vector<1x4x4xbf16>
    %27 = vector.shape_cast %26 : vector<1x4x4xbf16> to vector<4x4xbf16>
    %cst_29 = arith.constant dense<0.000000e+00> : vector<256x4xf32>
    %28 = tpu.matmul %25, %27, %cst_29 {dimension_numbers = #tpu.dot_dimension_numbers<[1], [0], [0], [1], [0, 0, 1, 1], [], []>} : vector<256x4xbf16>, vector<4x4xbf16>, vector<256x4xf32> -> vector<256x4xf32>
    %29 = arith.addf %23, %28 : vector<256x4xf32>
    %30 = vector.extract_strided_slice %12 {offsets = [1, 7, 0], sizes = [16, 16, 4], strides = [1, 1, 1]} : vector<18x32x4xbf16> to vector<16x16x4xbf16>
    %31 = vector.shape_cast %30 : vector<16x16x4xbf16> to vector<256x4xbf16>
    %c3 = arith.constant 3 : index
    %c0_30 = arith.constant 0 : index
    %c0_31 = arith.constant 0 : index
    %32 = vector.load %arg2[%c3, %c0_30, %c0_31] : memref<9x4x4xbf16, #tpu.memory_space<vmem>>, vector<1x4x4xbf16>
    %33 = vector.shape_cast %32 : vector<1x4x4xbf16> to vector<4x4xbf16>
    %cst_32 = arith.constant dense<0.000000e+00> : vector<256x4xf32>
    %34 = tpu.matmul %31, %33, %cst_32 {dimension_numbers = #tpu.dot_dimension_numbers<[1], [0], [0], [1], [0, 0, 1, 1], [], []>} : vector<256x4xbf16>, vector<4x4xbf16>, vector<256x4xf32> -> vector<256x4xf32>
    %35 = arith.addf %29, %34 : vector<256x4xf32>
    %36 = vector.extract_strided_slice %12 {offsets = [1, 8, 0], sizes = [16, 16, 4], strides = [1, 1, 1]} : vector<18x32x4xbf16> to vector<16x16x4xbf16>
    %37 = vector.shape_cast %36 : vector<16x16x4xbf16> to vector<256x4xbf16>
    %c4 = arith.constant 4 : index
    %c0_33 = arith.constant 0 : index
    %c0_34 = arith.constant 0 : index
    %38 = vector.load %arg2[%c4, %c0_33, %c0_34] : memref<9x4x4xbf16, #tpu.memory_space<vmem>>, vector<1x4x4xbf16>
    %39 = vector.shape_cast %38 : vector<1x4x4xbf16> to vector<4x4xbf16>
    %cst_35 = arith.constant dense<0.000000e+00> : vector<256x4xf32>
    %40 = tpu.matmul %37, %39, %cst_35 {dimension_numbers = #tpu.dot_dimension_numbers<[1], [0], [0], [1], [0, 0, 1, 1], [], []>} : vector<256x4xbf16>, vector<4x4xbf16>, vector<256x4xf32> -> vector<256x4xf32>
    %41 = arith.addf %35, %40 : vector<256x4xf32>
    %42 = vector.extract_strided_slice %12 {offsets = [1, 9, 0], sizes = [16, 16, 4], strides = [1, 1, 1]} : vector<18x32x4xbf16> to vector<16x16x4xbf16>
    %43 = vector.shape_cast %42 : vector<16x16x4xbf16> to vector<256x4xbf16>
    %c5 = arith.constant 5 : index
    %c0_36 = arith.constant 0 : index
    %c0_37 = arith.constant 0 : index
    %44 = vector.load %arg2[%c5, %c0_36, %c0_37] : memref<9x4x4xbf16, #tpu.memory_space<vmem>>, vector<1x4x4xbf16>
    %45 = vector.shape_cast %44 : vector<1x4x4xbf16> to vector<4x4xbf16>
    %cst_38 = arith.constant dense<0.000000e+00> : vector<256x4xf32>
    %46 = tpu.matmul %43, %45, %cst_38 {dimension_numbers = #tpu.dot_dimension_numbers<[1], [0], [0], [1], [0, 0, 1, 1], [], []>} : vector<256x4xbf16>, vector<4x4xbf16>, vector<256x4xf32> -> vector<256x4xf32>
    %47 = arith.addf %41, %46 : vector<256x4xf32>
    %48 = vector.extract_strided_slice %12 {offsets = [2, 7, 0], sizes = [16, 16, 4], strides = [1, 1, 1]} : vector<18x32x4xbf16> to vector<16x16x4xbf16>
    %49 = vector.shape_cast %48 : vector<16x16x4xbf16> to vector<256x4xbf16>
    %c6 = arith.constant 6 : index
    %c0_39 = arith.constant 0 : index
    %c0_40 = arith.constant 0 : index
    %50 = vector.load %arg2[%c6, %c0_39, %c0_40] : memref<9x4x4xbf16, #tpu.memory_space<vmem>>, vector<1x4x4xbf16>
    %51 = vector.shape_cast %50 : vector<1x4x4xbf16> to vector<4x4xbf16>
    %cst_41 = arith.constant dense<0.000000e+00> : vector<256x4xf32>
    %52 = tpu.matmul %49, %51, %cst_41 {dimension_numbers = #tpu.dot_dimension_numbers<[1], [0], [0], [1], [0, 0, 1, 1], [], []>} : vector<256x4xbf16>, vector<4x4xbf16>, vector<256x4xf32> -> vector<256x4xf32>
    %53 = arith.addf %47, %52 : vector<256x4xf32>
    %54 = vector.extract_strided_slice %12 {offsets = [2, 8, 0], sizes = [16, 16, 4], strides = [1, 1, 1]} : vector<18x32x4xbf16> to vector<16x16x4xbf16>
    %55 = vector.shape_cast %54 : vector<16x16x4xbf16> to vector<256x4xbf16>
    %c7_42 = arith.constant 7 : index
    %c0_43 = arith.constant 0 : index
    %c0_44 = arith.constant 0 : index
    %56 = vector.load %arg2[%c7_42, %c0_43, %c0_44] : memref<9x4x4xbf16, #tpu.memory_space<vmem>>, vector<1x4x4xbf16>
    %57 = vector.shape_cast %56 : vector<1x4x4xbf16> to vector<4x4xbf16>
    %cst_45 = arith.constant dense<0.000000e+00> : vector<256x4xf32>
    %58 = tpu.matmul %55, %57, %cst_45 {dimension_numbers = #tpu.dot_dimension_numbers<[1], [0], [0], [1], [0, 0, 1, 1], [], []>} : vector<256x4xbf16>, vector<4x4xbf16>, vector<256x4xf32> -> vector<256x4xf32>
    %59 = arith.addf %53, %58 : vector<256x4xf32>
    %60 = vector.extract_strided_slice %12 {offsets = [2, 9, 0], sizes = [16, 16, 4], strides = [1, 1, 1]} : vector<18x32x4xbf16> to vector<16x16x4xbf16>
    %61 = vector.shape_cast %60 : vector<16x16x4xbf16> to vector<256x4xbf16>
    %c8_46 = arith.constant 8 : index
    %c0_47 = arith.constant 0 : index
    %c0_48 = arith.constant 0 : index
    %62 = vector.load %arg2[%c8_46, %c0_47, %c0_48] : memref<9x4x4xbf16, #tpu.memory_space<vmem>>, vector<1x4x4xbf16>
    %63 = vector.shape_cast %62 : vector<1x4x4xbf16> to vector<4x4xbf16>
    %cst_49 = arith.constant dense<0.000000e+00> : vector<256x4xf32>
    %64 = tpu.matmul %61, %63, %cst_49 {dimension_numbers = #tpu.dot_dimension_numbers<[1], [0], [0], [1], [0, 0, 1, 1], [], []>} : vector<256x4xbf16>, vector<4x4xbf16>, vector<256x4xf32> -> vector<256x4xf32>
    %65 = arith.addf %59, %64 : vector<256x4xf32>
    %c0_50 = arith.constant 0 : index
    %c0_51 = arith.constant 0 : index
    %66 = vector.load %arg3[%c0_50, %c0_51] : memref<1x4xf32, #tpu.memory_space<vmem>>, vector<1x4xf32>
    %67 = vector.broadcast %66 : vector<1x4xf32> to vector<256x4xf32>
    %68 = arith.addf %65, %67 : vector<256x4xf32>
    %cst_52 = arith.constant dense<0.000000e+00> : vector<4xf32>
    %69 = vector.multi_reduction <add>, %68, %cst_52 [0] : vector<256x4xf32> to vector<4xf32>
    %70 = vector.shape_cast %69 : vector<4xf32> to vector<1x4xf32>
    %71 = arith.mulf %68, %68 : vector<256x4xf32>
    %cst_53 = arith.constant dense<0.000000e+00> : vector<4xf32>
    %72 = vector.multi_reduction <add>, %71, %cst_53 [0] : vector<256x4xf32> to vector<4xf32>
    %73 = vector.shape_cast %72 : vector<4xf32> to vector<1x4xf32>
    %cst_54 = arith.constant 3.906250e-03 : f32
    %74 = vector.broadcast %cst_54 : f32 to vector<1x4xf32>
    %75 = arith.mulf %70, %74 : vector<1x4xf32>
    %cst_55 = arith.constant 3.906250e-03 : f32
    %76 = vector.broadcast %cst_55 : f32 to vector<1x4xf32>
    %77 = arith.mulf %73, %76 : vector<1x4xf32>
    %78 = arith.mulf %75, %75 : vector<1x4xf32>
    %79 = arith.subf %77, %78 : vector<1x4xf32>
    %cst_56 = arith.constant 0.000000e+00 : f32
    %80 = vector.broadcast %cst_56 : f32 to vector<1x4xf32>
    %81 = arith.maximumf %79, %80 : vector<1x4xf32>
    %82 = vector.broadcast %75 : vector<1x4xf32> to vector<256x4xf32>
    %83 = arith.subf %68, %82 : vector<256x4xf32>
    %cst_57 = arith.constant 9.99999974E-6 : f32
    %84 = vector.broadcast %cst_57 : f32 to vector<1x4xf32>
    %85 = arith.addf %81, %84 : vector<1x4xf32>
    %86 = math.rsqrt %85 : vector<1x4xf32>
    %87 = vector.broadcast %86 : vector<1x4xf32> to vector<256x4xf32>
    %88 = arith.mulf %83, %87 : vector<256x4xf32>
    %c0_58 = arith.constant 0 : index
    %c0_59 = arith.constant 0 : index
    %89 = vector.load %arg4[%c0_58, %c0_59] : memref<1x4xf32, #tpu.memory_space<vmem>>, vector<1x4xf32>
    %90 = vector.broadcast %89 : vector<1x4xf32> to vector<256x4xf32>
    %91 = arith.mulf %88, %90 : vector<256x4xf32>
    %c0_60 = arith.constant 0 : index
    %c0_61 = arith.constant 0 : index
    %92 = vector.load %arg5[%c0_60, %c0_61] : memref<1x4xf32, #tpu.memory_space<vmem>>, vector<1x4xf32>
    %93 = vector.broadcast %92 : vector<1x4xf32> to vector<256x4xf32>
    %94 = arith.addf %91, %93 : vector<256x4xf32>
    %cst_62 = arith.constant 0.000000e+00 : f32
    %95 = vector.broadcast %cst_62 : f32 to vector<256x4xf32>
    %96 = arith.maximumf %94, %95 : vector<256x4xf32>
    %97 = vector.shape_cast %96 : vector<256x4xf32> to vector<16x16x4xf32>
    %98 = arith.truncf %97 : vector<16x16x4xf32> to vector<16x16x4xbf16>
    %c1_63 = arith.constant 1 : index
    %c8_64 = arith.constant 8 : index
    %c0_65 = arith.constant 0 : index
    %99 = vector.load %arg11[%c1_63, %c8_64, %c0_65] : memref<18x32x4xbf16, #tpu.memory_space<vmem>>, vector<16x16x4xbf16>
    tpu.vector_store %arg11[%c1_63, %c8_64, %c0_65], %98 {strides = array<i32>} : memref<18x32x4xbf16, #tpu.memory_space<vmem>>, vector<16x16x4xbf16>,
    %100 = vector.extract_strided_slice %98 {offsets = [1, 0, 0], sizes = [1, 16, 4], strides = [1, 1, 1]} : vector<16x16x4xbf16> to vector<1x16x4xbf16>
    %c0_66 = arith.constant 0 : index
    %c8_67 = arith.constant 8 : index
    %c0_68 = arith.constant 0 : index
    %101 = vector.load %arg11[%c0_66, %c8_67, %c0_68] : memref<18x32x4xbf16, #tpu.memory_space<vmem>>, vector<1x16x4xbf16>
    tpu.vector_store %arg11[%c0_66, %c8_67, %c0_68], %100 {strides = array<i32>} : memref<18x32x4xbf16, #tpu.memory_space<vmem>>, vector<1x16x4xbf16>,
    %102 = vector.extract_strided_slice %98 {offsets = [14, 0, 0], sizes = [1, 16, 4], strides = [1, 1, 1]} : vector<16x16x4xbf16> to vector<1x16x4xbf16>
    %c17_69 = arith.constant 17 : index
    %c8_70 = arith.constant 8 : index
    %c0_71 = arith.constant 0 : index
    %103 = vector.load %arg11[%c17_69, %c8_70, %c0_71] : memref<18x32x4xbf16, #tpu.memory_space<vmem>>, vector<1x16x4xbf16>
    tpu.vector_store %arg11[%c17_69, %c8_70, %c0_71], %102 {strides = array<i32>} : memref<18x32x4xbf16, #tpu.memory_space<vmem>>, vector<1x16x4xbf16>,
    %c0_72 = arith.constant 0 : index
    %c9_73 = arith.constant 9 : index
    %c0_74 = arith.constant 0 : index
    %104 = vector.load %arg11[%c0_72, %c9_73, %c0_74] : memref<18x32x4xbf16, #tpu.memory_space<vmem>>, vector<18x1x4xbf16>
    %c0_75 = arith.constant 0 : index
    %c7_76 = arith.constant 7 : index
    %c0_77 = arith.constant 0 : index
    %105 = vector.load %arg11[%c0_75, %c7_76, %c0_77] : memref<18x32x4xbf16, #tpu.memory_space<vmem>>, vector<18x1x4xbf16>
    tpu.vector_store %arg11[%c0_75, %c7_76, %c0_77], %104 {strides = array<i32>} : memref<18x32x4xbf16, #tpu.memory_space<vmem>>, vector<18x1x4xbf16>,
    %c0_78 = arith.constant 0 : index
    %c22_79 = arith.constant 22 : index
    %c0_80 = arith.constant 0 : index
    %106 = vector.load %arg11[%c0_78, %c22_79, %c0_80] : memref<18x32x4xbf16, #tpu.memory_space<vmem>>, vector<18x1x4xbf16>
    %c0_81 = arith.constant 0 : index
    %c24_82 = arith.constant 24 : index
    %c0_83 = arith.constant 0 : index
    %107 = vector.load %arg11[%c0_81, %c24_82, %c0_83] : memref<18x32x4xbf16, #tpu.memory_space<vmem>>, vector<18x1x4xbf16>
    tpu.vector_store %arg11[%c0_81, %c24_82, %c0_83], %106 {strides = array<i32>} : memref<18x32x4xbf16, #tpu.memory_space<vmem>>, vector<18x1x4xbf16>,
    %c0_84 = arith.constant 0 : index
    %c0_85 = arith.constant 0 : index
    %c0_86 = arith.constant 0 : index
    %108 = vector.load %arg11[%c0_84, %c0_85, %c0_86] : memref<18x32x4xbf16, #tpu.memory_space<vmem>>, vector<18x32x4xbf16>
    %109 = vector.extract_strided_slice %108 {offsets = [0, 7, 0], sizes = [16, 16, 4], strides = [1, 1, 1]} : vector<18x32x4xbf16> to vector<16x16x4xbf16>
    %110 = vector.shape_cast %109 : vector<16x16x4xbf16> to vector<256x4xbf16>
    %c0_87 = arith.constant 0 : index
    %c0_88 = arith.constant 0 : index
    %c0_89 = arith.constant 0 : index
    %111 = vector.load %arg6[%c0_87, %c0_88, %c0_89] : memref<9x4x4xbf16, #tpu.memory_space<vmem>>, vector<1x4x4xbf16>
    %112 = vector.shape_cast %111 : vector<1x4x4xbf16> to vector<4x4xbf16>
    %cst_90 = arith.constant dense<0.000000e+00> : vector<256x4xf32>
    %113 = tpu.matmul %110, %112, %cst_90 {dimension_numbers = #tpu.dot_dimension_numbers<[1], [0], [0], [1], [0, 0, 1, 1], [], []>} : vector<256x4xbf16>, vector<4x4xbf16>, vector<256x4xf32> -> vector<256x4xf32>
    %114 = vector.extract_strided_slice %108 {offsets = [0, 8, 0], sizes = [16, 16, 4], strides = [1, 1, 1]} : vector<18x32x4xbf16> to vector<16x16x4xbf16>
    %115 = vector.shape_cast %114 : vector<16x16x4xbf16> to vector<256x4xbf16>
    %c1_91 = arith.constant 1 : index
    %c0_92 = arith.constant 0 : index
    %c0_93 = arith.constant 0 : index
    %116 = vector.load %arg6[%c1_91, %c0_92, %c0_93] : memref<9x4x4xbf16, #tpu.memory_space<vmem>>, vector<1x4x4xbf16>
    %117 = vector.shape_cast %116 : vector<1x4x4xbf16> to vector<4x4xbf16>
    %cst_94 = arith.constant dense<0.000000e+00> : vector<256x4xf32>
    %118 = tpu.matmul %115, %117, %cst_94 {dimension_numbers = #tpu.dot_dimension_numbers<[1], [0], [0], [1], [0, 0, 1, 1], [], []>} : vector<256x4xbf16>, vector<4x4xbf16>, vector<256x4xf32> -> vector<256x4xf32>
    %119 = arith.addf %113, %118 : vector<256x4xf32>
    %120 = vector.extract_strided_slice %108 {offsets = [0, 9, 0], sizes = [16, 16, 4], strides = [1, 1, 1]} : vector<18x32x4xbf16> to vector<16x16x4xbf16>
    %121 = vector.shape_cast %120 : vector<16x16x4xbf16> to vector<256x4xbf16>
    %c2_95 = arith.constant 2 : index
    %c0_96 = arith.constant 0 : index
    %c0_97 = arith.constant 0 : index
    %122 = vector.load %arg6[%c2_95, %c0_96, %c0_97] : memref<9x4x4xbf16, #tpu.memory_space<vmem>>, vector<1x4x4xbf16>
    %123 = vector.shape_cast %122 : vector<1x4x4xbf16> to vector<4x4xbf16>
    %cst_98 = arith.constant dense<0.000000e+00> : vector<256x4xf32>
    %124 = tpu.matmul %121, %123, %cst_98 {dimension_numbers = #tpu.dot_dimension_numbers<[1], [0], [0], [1], [0, 0, 1, 1], [], []>} : vector<256x4xbf16>, vector<4x4xbf16>, vector<256x4xf32> -> vector<256x4xf32>
    %125 = arith.addf %119, %124 : vector<256x4xf32>
    %126 = vector.extract_strided_slice %108 {offsets = [1, 7, 0], sizes = [16, 16, 4], strides = [1, 1, 1]} : vector<18x32x4xbf16> to vector<16x16x4xbf16>
    %127 = vector.shape_cast %126 : vector<16x16x4xbf16> to vector<256x4xbf16>
    %c3_99 = arith.constant 3 : index
    %c0_100 = arith.constant 0 : index
    %c0_101 = arith.constant 0 : index
    %128 = vector.load %arg6[%c3_99, %c0_100, %c0_101] : memref<9x4x4xbf16, #tpu.memory_space<vmem>>, vector<1x4x4xbf16>
    %129 = vector.shape_cast %128 : vector<1x4x4xbf16> to vector<4x4xbf16>
    %cst_102 = arith.constant dense<0.000000e+00> : vector<256x4xf32>
    %130 = tpu.matmul %127, %129, %cst_102 {dimension_numbers = #tpu.dot_dimension_numbers<[1], [0], [0], [1], [0, 0, 1, 1], [], []>} : vector<256x4xbf16>, vector<4x4xbf16>, vector<256x4xf32> -> vector<256x4xf32>
    %131 = arith.addf %125, %130 : vector<256x4xf32>
    %132 = vector.extract_strided_slice %108 {offsets = [1, 8, 0], sizes = [16, 16, 4], strides = [1, 1, 1]} : vector<18x32x4xbf16> to vector<16x16x4xbf16>
    %133 = vector.shape_cast %132 : vector<16x16x4xbf16> to vector<256x4xbf16>
    %c4_103 = arith.constant 4 : index
    %c0_104 = arith.constant 0 : index
    %c0_105 = arith.constant 0 : index
    %134 = vector.load %arg6[%c4_103, %c0_104, %c0_105] : memref<9x4x4xbf16, #tpu.memory_space<vmem>>, vector<1x4x4xbf16>
    %135 = vector.shape_cast %134 : vector<1x4x4xbf16> to vector<4x4xbf16>
    %cst_106 = arith.constant dense<0.000000e+00> : vector<256x4xf32>
    %136 = tpu.matmul %133, %135, %cst_106 {dimension_numbers = #tpu.dot_dimension_numbers<[1], [0], [0], [1], [0, 0, 1, 1], [], []>} : vector<256x4xbf16>, vector<4x4xbf16>, vector<256x4xf32> -> vector<256x4xf32>
    %137 = arith.addf %131, %136 : vector<256x4xf32>
    %138 = vector.extract_strided_slice %108 {offsets = [1, 9, 0], sizes = [16, 16, 4], strides = [1, 1, 1]} : vector<18x32x4xbf16> to vector<16x16x4xbf16>
    %139 = vector.shape_cast %138 : vector<16x16x4xbf16> to vector<256x4xbf16>
    %c5_107 = arith.constant 5 : index
    %c0_108 = arith.constant 0 : index
    %c0_109 = arith.constant 0 : index
    %140 = vector.load %arg6[%c5_107, %c0_108, %c0_109] : memref<9x4x4xbf16, #tpu.memory_space<vmem>>, vector<1x4x4xbf16>
    %141 = vector.shape_cast %140 : vector<1x4x4xbf16> to vector<4x4xbf16>
    %cst_110 = arith.constant dense<0.000000e+00> : vector<256x4xf32>
    %142 = tpu.matmul %139, %141, %cst_110 {dimension_numbers = #tpu.dot_dimension_numbers<[1], [0], [0], [1], [0, 0, 1, 1], [], []>} : vector<256x4xbf16>, vector<4x4xbf16>, vector<256x4xf32> -> vector<256x4xf32>
    %143 = arith.addf %137, %142 : vector<256x4xf32>
    %144 = vector.extract_strided_slice %108 {offsets = [2, 7, 0], sizes = [16, 16, 4], strides = [1, 1, 1]} : vector<18x32x4xbf16> to vector<16x16x4xbf16>
    %145 = vector.shape_cast %144 : vector<16x16x4xbf16> to vector<256x4xbf16>
    %c6_111 = arith.constant 6 : index
    %c0_112 = arith.constant 0 : index
    %c0_113 = arith.constant 0 : index
    %146 = vector.load %arg6[%c6_111, %c0_112, %c0_113] : memref<9x4x4xbf16, #tpu.memory_space<vmem>>, vector<1x4x4xbf16>
    %147 = vector.shape_cast %146 : vector<1x4x4xbf16> to vector<4x4xbf16>
    %cst_114 = arith.constant dense<0.000000e+00> : vector<256x4xf32>
    %148 = tpu.matmul %145, %147, %cst_114 {dimension_numbers = #tpu.dot_dimension_numbers<[1], [0], [0], [1], [0, 0, 1, 1], [], []>} : vector<256x4xbf16>, vector<4x4xbf16>, vector<256x4xf32> -> vector<256x4xf32>
    %149 = arith.addf %143, %148 : vector<256x4xf32>
    %150 = vector.extract_strided_slice %108 {offsets = [2, 8, 0], sizes = [16, 16, 4], strides = [1, 1, 1]} : vector<18x32x4xbf16> to vector<16x16x4xbf16>
    %151 = vector.shape_cast %150 : vector<16x16x4xbf16> to vector<256x4xbf16>
    %c7_115 = arith.constant 7 : index
    %c0_116 = arith.constant 0 : index
    %c0_117 = arith.constant 0 : index
    %152 = vector.load %arg6[%c7_115, %c0_116, %c0_117] : memref<9x4x4xbf16, #tpu.memory_space<vmem>>, vector<1x4x4xbf16>
    %153 = vector.shape_cast %152 : vector<1x4x4xbf16> to vector<4x4xbf16>
    %cst_118 = arith.constant dense<0.000000e+00> : vector<256x4xf32>
    %154 = tpu.matmul %151, %153, %cst_118 {dimension_numbers = #tpu.dot_dimension_numbers<[1], [0], [0], [1], [0, 0, 1, 1], [], []>} : vector<256x4xbf16>, vector<4x4xbf16>, vector<256x4xf32> -> vector<256x4xf32>
    %155 = arith.addf %149, %154 : vector<256x4xf32>
    %156 = vector.extract_strided_slice %108 {offsets = [2, 9, 0], sizes = [16, 16, 4], strides = [1, 1, 1]} : vector<18x32x4xbf16> to vector<16x16x4xbf16>
    %157 = vector.shape_cast %156 : vector<16x16x4xbf16> to vector<256x4xbf16>
    %c8_119 = arith.constant 8 : index
    %c0_120 = arith.constant 0 : index
    %c0_121 = arith.constant 0 : index
    %158 = vector.load %arg6[%c8_119, %c0_120, %c0_121] : memref<9x4x4xbf16, #tpu.memory_space<vmem>>, vector<1x4x4xbf16>
    %159 = vector.shape_cast %158 : vector<1x4x4xbf16> to vector<4x4xbf16>
    %cst_122 = arith.constant dense<0.000000e+00> : vector<256x4xf32>
    %160 = tpu.matmul %157, %159, %cst_122 {dimension_numbers = #tpu.dot_dimension_numbers<[1], [0], [0], [1], [0, 0, 1, 1], [], []>} : vector<256x4xbf16>, vector<4x4xbf16>, vector<256x4xf32> -> vector<256x4xf32>
    %161 = arith.addf %155, %160 : vector<256x4xf32>
    %c0_123 = arith.constant 0 : index
    %c0_124 = arith.constant 0 : index
    %162 = vector.load %arg7[%c0_123, %c0_124] : memref<1x4xf32, #tpu.memory_space<vmem>>, vector<1x4xf32>
    %163 = vector.broadcast %162 : vector<1x4xf32> to vector<256x4xf32>
    %164 = arith.addf %161, %163 : vector<256x4xf32>
    %cst_125 = arith.constant dense<0.000000e+00> : vector<4xf32>
    %165 = vector.multi_reduction <add>, %164, %cst_125 [0] : vector<256x4xf32> to vector<4xf32>
    %166 = vector.shape_cast %165 : vector<4xf32> to vector<1x4xf32>
    %167 = arith.mulf %164, %164 : vector<256x4xf32>
    %cst_126 = arith.constant dense<0.000000e+00> : vector<4xf32>
    %168 = vector.multi_reduction <add>, %167, %cst_126 [0] : vector<256x4xf32> to vector<4xf32>
    %169 = vector.shape_cast %168 : vector<4xf32> to vector<1x4xf32>
    %cst_127 = arith.constant 3.906250e-03 : f32
    %170 = vector.broadcast %cst_127 : f32 to vector<1x4xf32>
    %171 = arith.mulf %166, %170 : vector<1x4xf32>
    %cst_128 = arith.constant 3.906250e-03 : f32
    %172 = vector.broadcast %cst_128 : f32 to vector<1x4xf32>
    %173 = arith.mulf %169, %172 : vector<1x4xf32>
    %174 = arith.mulf %171, %171 : vector<1x4xf32>
    %175 = arith.subf %173, %174 : vector<1x4xf32>
    %cst_129 = arith.constant 0.000000e+00 : f32
    %176 = vector.broadcast %cst_129 : f32 to vector<1x4xf32>
    %177 = arith.maximumf %175, %176 : vector<1x4xf32>
    %178 = vector.broadcast %171 : vector<1x4xf32> to vector<256x4xf32>
    %179 = arith.subf %164, %178 : vector<256x4xf32>
    %cst_130 = arith.constant 9.99999974E-6 : f32
    %180 = vector.broadcast %cst_130 : f32 to vector<1x4xf32>
    %181 = arith.addf %177, %180 : vector<1x4xf32>
    %182 = math.rsqrt %181 : vector<1x4xf32>
    %183 = vector.broadcast %182 : vector<1x4xf32> to vector<256x4xf32>
    %184 = arith.mulf %179, %183 : vector<256x4xf32>
    %c0_131 = arith.constant 0 : index
    %c0_132 = arith.constant 0 : index
    %185 = vector.load %arg8[%c0_131, %c0_132] : memref<1x4xf32, #tpu.memory_space<vmem>>, vector<1x4xf32>
    %186 = vector.broadcast %185 : vector<1x4xf32> to vector<256x4xf32>
    %187 = arith.mulf %184, %186 : vector<256x4xf32>
    %c0_133 = arith.constant 0 : index
    %c0_134 = arith.constant 0 : index
    %188 = vector.load %arg9[%c0_133, %c0_134] : memref<1x4xf32, #tpu.memory_space<vmem>>, vector<1x4xf32>
    %189 = vector.broadcast %188 : vector<1x4xf32> to vector<256x4xf32>
    %190 = arith.addf %187, %189 : vector<256x4xf32>
    %191 = vector.shape_cast %190 : vector<256x4xf32> to vector<16x16x4xf32>
    %192 = arith.addf %191, %1 : vector<16x16x4xf32>
    %193 = vector.shape_cast %192 : vector<16x16x4xf32> to vector<1x16x16x4xf32>
    %c0_135 = arith.constant 0 : index
    %c0_136 = arith.constant 0 : index
    %c0_137 = arith.constant 0 : index
    %c0_138 = arith.constant 0 : index
    %194 = vector.load %arg10[%c0_135, %c0_136, %c0_137, %c0_138] : memref<1x16x16x4xf32, #tpu.memory_space<vmem>>, vector<1x16x16x4xf32>
    tpu.vector_store %arg10[%c0_135, %c0_136, %c0_137, %c0_138], %193 {strides = array<i32>} : memref<1x16x16x4xf32, #tpu.memory_space<vmem>>, vector<1x16x16x4xf32>,
    return
  }
  func.func @transform_0(%arg0: i32) -> (i32, i32, i32, i32) {
    %c0_i32 = arith.constant 0 : i32
    %c0_i32_0 = arith.constant 0 : i32
    %c0_i32_1 = arith.constant 0 : i32
    %c0_i32_2 = arith.constant 0 : i32
    return %arg0, %c0_i32, %c0_i32_0, %c0_i32_1 : i32, i32, i32, i32
  }
  func.func @transform_1(%arg0: i32) -> (i32, i32, i32) {
    %c0_i32 = arith.constant 0 : i32
    %c0_i32_0 = arith.constant 0 : i32
    %c0_i32_1 = arith.constant 0 : i32
    %c0_i32_2 = arith.constant 0 : i32
    return %c0_i32, %c0_i32_0, %c0_i32_1 : i32, i32, i32
  }
  func.func @transform_2(%arg0: i32) -> (i32, i32) {
    %c0_i32 = arith.constant 0 : i32
    %c0_i32_0 = arith.constant 0 : i32
    %c0_i32_1 = arith.constant 0 : i32
    return %c0_i32, %c0_i32_0 : i32, i32
  }
  func.func @transform_3(%arg0: i32) -> (i32, i32) {
    %c0_i32 = arith.constant 0 : i32
    %c0_i32_0 = arith.constant 0 : i32
    %c0_i32_1 = arith.constant 0 : i32
    return %c0_i32, %c0_i32_0 : i32, i32
  }
  func.func @transform_4(%arg0: i32) -> (i32, i32) {
    %c0_i32 = arith.constant 0 : i32
    %c0_i32_0 = arith.constant 0 : i32
    %c0_i32_1 = arith.constant 0 : i32
    return %c0_i32, %c0_i32_0 : i32, i32
  }
  func.func @transform_5(%arg0: i32) -> (i32, i32, i32) {
    %c0_i32 = arith.constant 0 : i32
    %c0_i32_0 = arith.constant 0 : i32
    %c0_i32_1 = arith.constant 0 : i32
    %c0_i32_2 = arith.constant 0 : i32
    return %c0_i32, %c0_i32_0, %c0_i32_1 : i32, i32, i32
  }
  func.func @transform_6(%arg0: i32) -> (i32, i32) {
    %c0_i32 = arith.constant 0 : i32
    %c0_i32_0 = arith.constant 0 : i32
    %c0_i32_1 = arith.constant 0 : i32
    return %c0_i32, %c0_i32_0 : i32, i32
  }
  func.func @transform_7(%arg0: i32) -> (i32, i32) {
    %c0_i32 = arith.constant 0 : i32
    %c0_i32_0 = arith.constant 0 : i32
    %c0_i32_1 = arith.constant 0 : i32
    return %c0_i32, %c0_i32_0 : i32, i32
  }
  func.func @transform_8(%arg0: i32) -> (i32, i32) {
    %c0_i32 = arith.constant 0 : i32
    %c0_i32_0 = arith.constant 0 : i32
    %c0_i32_1 = arith.constant 0 : i32
    return %c0_i32, %c0_i32_0 : i32, i32
  }
  func.func @transform_9(%arg0: i32) -> (i32, i32, i32, i32) {
    %c0_i32 = arith.constant 0 : i32
    %c0_i32_0 = arith.constant 0 : i32
    %c0_i32_1 = arith.constant 0 : i32
    %c0_i32_2 = arith.constant 0 : i32
    return %arg0, %c0_i32, %c0_i32_0, %c0_i32_1 : i32, i32, i32, i32
  }
}

</mosaic_0001>

<bundles_post_ra>
// kernel: tpu_custom_call.1
= control target key start
LH: loop header
LB: loop body
LE: loop exit
PB: predicated region body
PF: predicated region fallthrough
CT: control target
= control target key end

     0   :  { %s8698_s30 = smov 0   ;;  %s11979_s0 = inlined_call_operand.vmem [shape: f32[2,16,16,4], index: 0, kind: input, shape index: {}]   ;;  %s11980_s1 = inlined_call_operand.vmem [shape: bf16[9,4,4], index: 1, kind: input, shape index: {}]   ;;  %s11981_s2 = inlined_call_operand.vmem [shape: f32[1,4], index: 2, kind: input, shape index: {}]   ;;  %s11982_s3 = inlined_call_operand.vmem [shape: f32[1,4], index: 3, kind: input, shape index: {}]   ;;  %s11983_s4 = inlined_call_operand.vmem [shape: f32[1,4], index: 4, kind: input, shape index: {}]   ;;  %s11984_s5 = inlined_call_operand.vmem [shape: bf16[9,4,4], index: 5, kind: input, shape index: {}]   ;;  %s11985_s6 = inlined_call_operand.vmem [shape: f32[1,4], index: 6, kind: input, shape index: {}]   ;;  %s11986_s7 = inlined_call_operand.vmem [shape: f32[1,4], index: 7, kind: input, shape index: {}]   ;;  %s11987_s8 = inlined_call_operand.vmem [shape: f32[1,4], index: 8, kind: input, shape index: {}]   ;;  %s11988_s9 = inlined_call_operand.vmem [shape: f32[2,16,16,4], index: 9, kind: output, shape index: {}]  }
   0x1 LB: > { %s6825_s10 = sadd.s32 4294967295, %s8646_s30   ;;  %p6829_p0 = scmp.ge.s32.totalorder %s8646_s30, 1  ;;  %s8646_s30 = sphi %s8698_s30, %s19_s30  }
   0x2   : > { %p287_p1 = scmp.lt.s32.totalorder %s8646_s30, 3 }
   0x4   : > { %p288_p2 = pnand %p6829_p0, %p287_p1 }
   0x6   : > { %291 = sbr.rel (%p288_p2) target bundleno = 1844 (0x734), region = 56 }
   0xd   : > { %v6834_v0 = vld [vmem:[%s11980_s1 + $0x2] sm:$0x3]  ;;  %vm1169_vm0 = vcmask 1041408   ;;  %p323_p3 = scmp.lt.s32.totalorder %s6825_s10, 1  ;;  %v8716_v2 = vld [vmem:[%s11980_s1] sm:$0x3] }
   0xe   : > { %8578 = vmatprep.subr.msk.bf16.mxu0 %vm1169_vm0, %v6834_v0  ;;  %v1171_v1 = vsel %vm1169_vm0, %v6834_v0, 0  ;;  %vm431_vm1 = vcmask 31748   ;;  %vm433_vm2 = vcmask 27648   ;;  %vm542_vm3 = vcmask 27651   ;;  %v545_v37 = vld [vmem:[#allocation2] sm:$0x8] }
   0xf   : > { %7455 = vmatpush3.bf16.msra.mxu0 %v1171_v1  ;;  %s12543_s10 = smov (!%p323_p3, %s6825_s10), 1  ;;  %vm543_vm4 = vsmask.f32 7950  ;;  %vm671_vm5 = vcmask 28676   ;;  %vm672_vm6 = vsmask.f32 4352 }
  0x10   : > { %s7146_s15 = sshll.u32 %s12543_s10, 8  ;;  %8579 = vmatprep.subr.msk.bf16.mxu0 %vm1169_vm0, %v8716_v2  ;;  %vm8758_vm7 = vmand %vm542_vm3, %vm543_vm4  ;;  %v12155_v32 = vmov 0  ;;  %v674_v38 = vld [vmem:[#allocation2 + $0x8] sm:$0x10]  ;;  %v12158_v42 = vmov 0  ;;  %v8776_v45 = vsel %vm1169_vm0, %v8716_v2, 0 }
  0x11   : > { %s8726_s18 = scalar_lea.vmem %s11979_s0, %s7146_s15  ;;  %v12156_v32 = vsel %vm8758_vm7, 4294967295, %v12155_v32  ;;  %vm8770_vm8 = vmand %vm671_vm5, %vm672_vm6  ;;  %v548_v43 = vld [vmem:[#allocation2 + $0x10] sm:$0x8]  ;;  %v677_v44 = vld [vmem:[#allocation2 + $0x18] sm:$0x10]  ;;  %vm1069_vm9 = vcmask 1043456   ;;  %s11858_s12 = scalar_lea.vmem %s11988_s9, %s7146_s15 }
  0x12   : > { %v336_v3 = vld [vmem:[%s8726_s18 + $0x10] sm:$0xff]  ;;  %v337_v4 = vld [vmem:[%s8726_s18 + $0x18] sm:$0xff]  ;;  %v334_v5 = vld [vmem:[%s8726_s18] sm:$0xff]  ;;  %12157 = vst [vmem:[#allocation3_spill] sm:$0xff] %v12156_v32  ;;  %v12159_v42 = vsel %vm8770_vm8, 4294967295, %v12158_v42  ;;  %vm1120_vm10 = vcmask 31744  }
  0x13   : > { %v367_v6 = vpack.c.bf16 %v337_v4, %v336_v3  ;;  %v335_v7 = vld [vmem:[%s8726_s18 + $0x8] sm:$0xff]  ;;  %v338_v8 = vld [vmem:[%s8726_s18 + $0x20] sm:$0xff]  ;;  %v340_v12 = vld [vmem:[%s8726_s18 + $0x30] sm:$0xff]  ;;  %12160 = vst [vmem:[#allocation4_spill] sm:$0xff] %v12159_v42  ;;  %vm1546_vm11 = vsmask.f32 3328 }
  0x14   : > { %v339_v9 = vld [vmem:[%s8726_s18 + $0x28] sm:$0xff]  ;;  %v366_v10 = vpack.c.bf16 %v335_v7, %v334_v5  ;;  %v341_v13 = vld [vmem:[%s8726_s18 + $0x38] sm:$0xff]  ;;  %v342_v16 = vld [vmem:[%s8726_s18 + $0x40] sm:$0xff] }
  0x15   : > { %v368_v11 = vpack.c.bf16 %v339_v9, %v338_v8  ;;  %v399_v14 = vrot.slane %v367_v6, 4  ;;  %v369_v15 = vpack.c.bf16 %v341_v13, %v340_v12  ;;  %v343_v17 = vld [vmem:[%s8726_s18 + $0x48] sm:$0xff]  ;;  %v344_v22 = vld [vmem:[%s8726_s18 + $0x50] sm:$0xff]  ;;  %v345_v23 = vld [vmem:[%s8726_s18 + $0x58] sm:$0xff] }
  0x16   : > { %v398_v18 = vrot.slane %v366_v10, 4  ;;  %v370_v20 = vpack.c.bf16 %v343_v17, %v342_v16  ;;  %v371_v25 = vpack.c.bf16 %v345_v23, %v344_v22  ;;  %v346_v26 = vld [vmem:[%s8726_s18 + $0x60] sm:$0xff]  ;;  %v347_v27 = vld [vmem:[%s8726_s18 + $0x68] sm:$0xff]  ;;  %v348_v29 = vld [vmem:[%s8726_s18 + $0x70] sm:$0xff] }
  0x17   : > { %v400_v19 = vrot.slane %v368_v11, 4  ;;  %465 = vst.msk [vmem:[#allocation2] sm:$0xf0] %vm431_vm1, %v399_v14  ;;  %435 = vst.msk [vmem:[#allocation2 + $0x20] sm:$0xf0] %vm431_vm1, %v399_v14  ;;  %v401_v21 = vrot.slane %v369_v15, 4  ;;  %v372_v28 = vpack.c.bf16 %v347_v27, %v346_v26 }
  0x18   : > { %466 = vst.msk [vmem:[#allocation2 + $0x8] sm:$0xf] %vm433_vm2, %v399_v14  ;;  %436 = vst.msk [vmem:[#allocation2 + $0x28] sm:$0xf] %vm433_vm2, %v399_v14  ;;  %v402_v24 = vrot.slane %v370_v20, 4  ;;  %v403_v30 = vrot.slane %v371_v25, 4 }
  0x19   : > { %432 = vst.msk [vmem:[#allocation2 + $0x10] sm:$0xf0] %vm431_vm1, %v398_v18  ;;  %437 = vst.msk [vmem:[#allocation2 + $0x30] sm:$0xf0] %vm431_vm1, %v400_v19  ;;  %v349_v31 = vld [vmem:[%s8726_s18 + $0x78] sm:$0xff]  ;;  %v404_v33 = vrot.slane %v372_v28, 4 }
  0x1a   : > { %434 = vst.msk [vmem:[#allocation2 + $0x18] sm:$0xf] %vm433_vm2, %v398_v18  ;;  %438 = vst.msk [vmem:[#allocation2 + $0x38] sm:$0xf] %vm433_vm2, %v400_v19  ;;  %v373_v34 = vpack.c.bf16 %v349_v31, %v348_v29  ;;  %v350_v35 = vld [vmem:[%s8726_s18 + $0x80] sm:$0xff]  ;;  %v351_v36 = vld [vmem:[%s8726_s18 + $0x88] sm:$0xff] }
  0x1b   : > { %439 = vst.msk [vmem:[#allocation2 + $0x40] sm:$0xf0] %vm431_vm1, %v401_v21  ;;  %441 = vst.msk [vmem:[#allocation2 + $0x50] sm:$0xf0] %vm431_vm1, %v402_v24  ;;  %v374_v39 = vpack.c.bf16 %v351_v36, %v350_v35  ;;  %v352_v40 = vld [vmem:[%s8726_s18 + $0x90] sm:$0xff]  ;;  %v353_v41 = vld [vmem:[%s8726_s18 + $0x98] sm:$0xff] }
  0x1c   : > { %440 = vst.msk [vmem:[#allocation2 + $0x48] sm:$0xf] %vm433_vm2, %v401_v21  ;;  %442 = vst.msk [vmem:[#allocation2 + $0x58] sm:$0xf] %vm433_vm2, %v402_v24  ;;  %v551_v46 = vld [vmem:[#allocation2 + $0x20] sm:$0x8]  ;;  %v375_v48 = vpack.c.bf16 %v353_v41, %v352_v40 }
  0x1d   : > { %443 = vst.msk [vmem:[#allocation2 + $0x60] sm:$0xf0] %vm431_vm1, %v403_v30  ;;  %445 = vst.msk [vmem:[#allocation2 + $0x70] sm:$0xf0] %vm431_vm1, %v404_v33  ;;  %v405_v47 = vrot.slane %v373_v34, 4  ;;  %v8783_v58 = vld [vmem:[%s8726_s18 + $0xa0] sm:$0xff] }
  0x1e   : > { %444 = vst.msk [vmem:[#allocation2 + $0x68] sm:$0xf] %vm433_vm2, %v403_v30  ;;  %446 = vst.msk [vmem:[#allocation2 + $0x78] sm:$0xf] %vm433_vm2, %v404_v33  ;;  %v470_v49 = vld [vmem:[#allocation2] sm:$0x10] }
  0x1f   : > { %v599_v50 = vld [vmem:[#allocation2 + $0x8] sm:$0x8]  ;;  %v472_v51 = vld [vmem:[#allocation2 + $0x20] sm:$0x10]  ;;  %v680_v52 = vld [vmem:[#allocation2 + $0x28] sm:$0x10] }
  0x20   : > { %v506_v53 = vrot.slane %v470_v49, 1  ;;  %v635_v54 = vrot.slane %v599_v50, 7  ;;  %v471_v55 = vld [vmem:[#allocation2 + $0x10] sm:$0x10]  ;;  %v554_v57 = vld [vmem:[#allocation2 + $0x30] sm:$0x8] }
  0x21   : > { %v600_v56 = vld [vmem:[#allocation2 + $0x18] sm:$0x8]  ;;  %447 = vst.msk [vmem:[#allocation2 + $0x80] sm:$0xf0] %vm431_vm1, %v405_v47  ;;  %v507_v59 = vrot.slane %v471_v55, 1  ;;  %v508_v61 = vrot.slane %v472_v51, 1 }
  0x22   : > { %448 = vst.msk [vmem:[#allocation2 + $0x88] sm:$0xf] %vm433_vm2, %v405_v47  ;;  %v636_v60 = vrot.slane %v600_v56, 7  ;;  %v601_v62 = vld [vmem:[#allocation2 + $0x28] sm:$0x8]  ;;  %v406_v2 = vrot.slane %v374_v39, 4  ;;  %v546_v3 = vsel %vm8758_vm7, %v506_v53, %v545_v37  ;;  %v675_v4 = vsel %vm8770_vm8, %v635_v54, %v674_v38 }
  0x23   : > { %v683_v63 = vld [vmem:[#allocation2 + $0x38] sm:$0x10]  ;;  %v557_v0 = vld [vmem:[#allocation2 + $0x40] sm:$0x8]  ;;  %v686_v1 = vld [vmem:[#allocation2 + $0x48] sm:$0x10]  ;;  %v549_v10 = vsel %vm8758_vm7, %v507_v59, %v548_v43  ;;  %v552_v12 = vsel %vm8758_vm7, %v508_v61, %v551_v46 }
  0x24   : > { %v637_v5 = vrot.slane %v601_v62, 7  ;;  %v473_v6 = vld [vmem:[#allocation2 + $0x30] sm:$0x10]  ;;  %v602_v7 = vld [vmem:[#allocation2 + $0x38] sm:$0x8]  ;;  %v407_v9 = vrot.slane %v375_v48, 4  ;;  %v678_v11 = vsel %vm8770_vm8, %v636_v60, %v677_v44 }
  0x25   : > { %v560_v8 = vld [vmem:[#allocation2 + $0x50] sm:$0x8]  ;;  %547 = vst [vmem:[#allocation2] sm:$0x8] %v546_v3  ;;  %676 = vst [vmem:[#allocation2 + $0x8] sm:$0x10] %v675_v4 }
  0x26   : > { %v509_v13 = vrot.slane %v473_v6, 1  ;;  %v474_v14 = vld [vmem:[#allocation2 + $0x40] sm:$0x10]  ;;  %v603_v15 = vld [vmem:[#allocation2 + $0x48] sm:$0x8]  ;;  %v681_v18 = vsel %vm8770_vm8, %v637_v5, %v680_v52  ;;  %v638_v19 = vrot.slane %v602_v7, 7 }
  0x27   : > { %v689_v16 = vld [vmem:[#allocation2 + $0x58] sm:$0x10]  ;;  %449 = vst.msk [vmem:[#allocation2 + $0x90] sm:$0xf0] %vm431_vm1, %v406_v2  ;;  %v355_v17 = vld [vmem:[%s8726_s18 + $0xa8] sm:$0xff]  ;;  %v510_v20 = vrot.slane %v474_v14, 1 }
  0x28   : > { %450 = vst.msk [vmem:[#allocation2 + $0x98] sm:$0xf] %vm433_vm2, %v406_v2  ;;  %550 = vst [vmem:[#allocation2 + $0x10] sm:$0x8] %v549_v10  ;;  %v639_v21 = vrot.slane %v603_v15, 7  ;;  %v356_v26 = vld [vmem:[%s8726_s18 + $0xb0] sm:$0xff]  ;;  %v555_v27 = vsel %vm8758_vm7, %v509_v13, %v554_v57  ;;  %v376_v33 = vpack.c.bf16 %v355_v17, %v8783_v58  ;;  %v684_v35 = vsel %vm8770_vm8, %v638_v19, %v683_v63 }
  0x29   : > { %679 = vst [vmem:[#allocation2 + $0x18] sm:$0x10] %v678_v11  ;;  %553 = vst [vmem:[#allocation2 + $0x20] sm:$0x8] %v552_v12  ;;  %v475_v22 = vld [vmem:[#allocation2 + $0x50] sm:$0x10]  ;;  %v558_v36 = vsel %vm8758_vm7, %v510_v20, %v557_v0 }
  0x2a   : > { %v563_v23 = vld [vmem:[#allocation2 + $0x60] sm:$0x8]  ;;  %v692_v24 = vld [vmem:[#allocation2 + $0x68] sm:$0x10]  ;;  %v566_v25 = vld [vmem:[#allocation2 + $0x70] sm:$0x8]  ;;  %v687_v37 = vsel %vm8770_vm8, %v639_v21, %v686_v1 }
  0x2b   : > { %451 = vst.msk [vmem:[#allocation2 + $0xa0] sm:$0xf0] %vm431_vm1, %v407_v9  ;;  %682 = vst [vmem:[#allocation2 + $0x28] sm:$0x10] %v681_v18  ;;  %v511_v28 = vrot.slane %v475_v22, 1  ;;  %v357_v34 = vld [vmem:[%s8726_s18 + $0xb8] sm:$0xff] }
  0x2c   : > { %452 = vst.msk [vmem:[#allocation2 + $0xa8] sm:$0xf] %vm433_vm2, %v407_v9  ;;  %v604_v29 = vld [vmem:[#allocation2 + $0x58] sm:$0x8]  ;;  %v476_v30 = vld [vmem:[#allocation2 + $0x60] sm:$0x10]  ;;  %v377_v56 = vpack.c.bf16 %v357_v34, %v356_v26 }
  0x2d   : > { %v695_v31 = vld [vmem:[#allocation2 + $0x78] sm:$0x10]  ;;  %556 = vst [vmem:[#allocation2 + $0x30] sm:$0x8] %v555_v27  ;;  %v640_v38 = vrot.slane %v604_v29, 7  ;;  %v8814_v43 = vld [vmem:[%s8726_s18 + $0xc0] sm:$0xff]  ;;  %v561_v44 = vsel %vm8758_vm7, %v511_v28, %v560_v8 }
  0x2e   : > { %v605_v39 = vld [vmem:[#allocation2 + $0x68] sm:$0x8]  ;;  %v477_v40 = vld [vmem:[#allocation2 + $0x70] sm:$0x10]  ;;  %v569_v41 = vld [vmem:[#allocation2 + $0x80] sm:$0x8] }
  0x2f   : > { %685 = vst [vmem:[#allocation2 + $0x38] sm:$0x10] %v684_v35  ;;  %559 = vst [vmem:[#allocation2 + $0x40] sm:$0x8] %v558_v36  ;;  %v512_v46 = vrot.slane %v476_v30, 1  ;;  %v641_v47 = vrot.slane %v605_v39, 7  ;;  %v690_v51 = vsel %vm8770_vm8, %v640_v38, %v689_v16 }
  0x30   : > { %688 = vst [vmem:[#allocation2 + $0x48] sm:$0x10] %v687_v37  ;;  %v513_v48 = vrot.slane %v477_v40, 1  ;;  %v606_v49 = vld [vmem:[#allocation2 + $0x78] sm:$0x8]  ;;  %v359_v50 = vld [vmem:[%s8726_s18 + $0xc8] sm:$0xff] }
  0x31   : > { %562 = vst [vmem:[#allocation2 + $0x50] sm:$0x8] %v561_v44  ;;  %v642_v52 = vrot.slane %v606_v49, 7  ;;  %v478_v53 = vld [vmem:[#allocation2 + $0x80] sm:$0x10]  ;;  %v408_v55 = vrot.slane %v376_v33, 4  ;;  %v564_v57 = vsel %vm8758_vm7, %v512_v46, %v563_v23  ;;  %v693_v58 = vsel %vm8770_vm8, %v641_v47, %v692_v24 }
  0x32   : > { %v607_v54 = vld [vmem:[#allocation2 + $0x88] sm:$0x8]  ;;  %691 = vst [vmem:[#allocation2 + $0x58] sm:$0x10] %v690_v51  ;;  %v567_v59 = vsel %vm8758_vm7, %v513_v48, %v566_v25  ;;  %v514_v60 = vrot.slane %v478_v53, 1  ;;  %v8827_v63 = vld [vmem:[#allocation2] sm:$0xff]  ;;  %v378_v5 = vpack.c.bf16 %v359_v50, %v8814_v43 }
  0x33   : > { %v698_v61 = vld [vmem:[#allocation2 + $0x88] sm:$0x10]  ;;  %v572_v62 = vld [vmem:[#allocation2 + $0x90] sm:$0x8]  ;;  %12161 = vst [vmem:[#allocation5_spill] sm:$0xff] %v8827_v63  ;;  %v696_v1 = vsel %vm8770_vm8, %v642_v52, %v695_v31  ;;  %v643_v2 = vrot.slane %v607_v54, 7 }
  0x34   : > { %v8829_v0 = vld [vmem:[#allocation2 + $0x8] sm:$0xff]  ;;  %565 = vst [vmem:[#allocation2 + $0x60] sm:$0x8] %v564_v57  ;;  %694 = vst [vmem:[#allocation2 + $0x68] sm:$0x10] %v693_v58  ;;  %v409_v4 = vrot.slane %v377_v56, 4  ;;  %v570_v11 = vsel %vm8758_vm7, %v514_v60, %v569_v41 }
  0x35   : > { %12162 = vst [vmem:[#allocation6_spill] sm:$0xff] %v8829_v0  ;;  %568 = vst [vmem:[#allocation2 + $0x70] sm:$0x8] %v567_v59  ;;  %v479_v3 = vld [vmem:[#allocation2 + $0x90] sm:$0x10]  ;;  %v1070_v6 = vrot.slane %v8827_v63, 4  ;;  %v699_v19 = vsel %vm8770_vm8, %v643_v2, %v698_v61 }
  0x36   : > { %453 = vst.msk [vmem:[#allocation2 + $0xb0] sm:$0xf0] %vm431_vm1, %v408_v55  ;;  %v1071_v7 = vrot.slane %v8829_v0, 4  ;;  %v8838_v8 = vld [vmem:[#allocation2 + $0x10] sm:$0xff]  ;;  %v8840_v9 = vld [vmem:[#allocation2 + $0x18] sm:$0xff]  ;;  %v8842_v10 = vld [vmem:[#allocation2 + $0x20] sm:$0xff] }
  0x37   : > { %454 = vst.msk [vmem:[#allocation2 + $0xb8] sm:$0xf] %vm433_vm2, %v408_v55  ;;  %12163 = vst [vmem:[#allocation7_spill] sm:$0xff] %v8838_v8  ;;  %v515_v12 = vrot.slane %v479_v3, 1  ;;  %v701_v13 = vld [vmem:[#allocation2 + $0x98] sm:$0x10] }
  0x38   : > { %12164 = vst [vmem:[#allocation8_spill] sm:$0xff] %v8840_v9  ;;  %12165 = vst [vmem:[#allocation9_spill] sm:$0xff] %v8842_v10  ;;  %v575_v14 = vld [vmem:[#allocation2 + $0xa0] sm:$0x8]  ;;  %v1073_v15 = vrot.slane %v8838_v8, 4  ;;  %v1074_v16 = vrot.slane %v8840_v9, 4  ;;  %v1072_v22 = vsel %vm1069_vm9, %v1070_v6, %v1071_v7 }
  0x39   : > { %697 = vst [vmem:[#allocation2 + $0x78] sm:$0x10] %v696_v1  ;;  %v8848_v17 = vld [vmem:[#allocation2 + $0x28] sm:$0xff]  ;;  %v1076_v18 = vrot.slane %v8842_v10, 4  ;;  %571 = vst [vmem:[#allocation2 + $0x80] sm:$0x8] %v570_v11  ;;  %v573_v25 = vsel %vm8758_vm7, %v515_v12, %v572_v62  ;;  %7456 = vmatprep.mubr.msk.bf16.mxu0 %vm1120_vm10, %v1072_v22 }
  0x3a   : > { %12166 = vst [vmem:[#allocation10_spill] sm:$0xff] %v8848_v17  ;;  %v608_v20 = vld [vmem:[#allocation2 + $0x98] sm:$0x8]  ;;  %455 = vst.msk [vmem:[#allocation2 + $0xc0] sm:$0xf0] %vm431_vm1, %v409_v4  ;;  %v360_v21 = vld [vmem:[%s8726_s18 + $0xd0] sm:$0xff]  ;;  %v8865_v29 = vsel %vm1069_vm9, %v1073_v15, %v1074_v16 }
  0x3b   : > { %456 = vst.msk [vmem:[#allocation2 + $0xc8] sm:$0xf] %vm433_vm2, %v409_v4  ;;  %v1077_v23 = vrot.slane %v8848_v17, 4  ;;  %v8858_v24 = vld [vmem:[#allocation2 + $0x30] sm:$0xff]  ;;  %700 = vst [vmem:[#allocation2 + $0x88] sm:$0x10] %v699_v19  ;;  %7457 = vmatmul.mubr.msk.bf16.vlgmr.msra.gmra.mrb[0].mxu0 %vm1120_vm10, %v8865_v29 }
  0x3c   : > { %12167 = vst [vmem:[#allocation11_spill] sm:$0xff] %v8858_v24  ;;  %v644_v26 = vrot.slane %v608_v20, 7  ;;  %v480_v27 = vld [vmem:[#allocation2 + $0xa0] sm:$0x10]  ;;  %v361_v28 = vld [vmem:[%s8726_s18 + $0xd8] sm:$0xff]  ;;  %12168 = vst [vmem:[#allocation12_spill] sm:$0xff] %v8865_v29  ;;  %7489 = vmatpush3.bf16.msra.mxu0 %v8776_v45 }
  0x3d   : > { %v8867_v30 = vld [vmem:[#allocation2 + $0x38] sm:$0xff]  ;;  %v8869_v31 = vld [vmem:[#allocation2 + $0x40] sm:$0xff]  ;;  %v8871_v33 = vld [vmem:[#allocation2 + $0x48] sm:$0xff]  ;;  %574 = vst [vmem:[#allocation2 + $0x90] sm:$0x8] %v573_v25  ;;  %v516_v34 = vrot.slane %v480_v27, 1  ;;  %v8876_v36 = vsel %vm1069_vm9, %v1076_v18, %v1077_v23  ;;  %v379_v48 = vpack.c.bf16 %v361_v28, %v360_v21 }
  0x3e   : > { %12169 = vst [vmem:[#allocation13_spill] sm:$0xff] %v8867_v30  ;;  %12170 = vst [vmem:[#allocation14_spill] sm:$0xff] %v8869_v31  ;;  %v410_v35 = vrot.slane %v378_v5, 4  ;;  %v1079_v37 = vrot.slane %v8858_v24, 4  ;;  %v609_v38 = vld [vmem:[#allocation2 + $0xa8] sm:$0x8]  ;;  %7460 = vmatprep.mubr.msk.bf16.mxu0 %vm1120_vm10, %v8876_v36  ;;  %v702_v41 = vsel %vm8770_vm8, %v644_v26, %v701_v13 }
  0x3f   : > { %12171 = vst [vmem:[#allocation15_spill] sm:$0xff] %v8871_v33  ;;  %12172 = vst [vmem:[#allocation16_spill] sm:$0xff] %v8876_v36  ;;  %v704_v39 = vld [vmem:[#allocation2 + $0xa8] sm:$0x10]  ;;  %v1080_v40 = vrot.slane %v8867_v30, 4  ;;  %v576_v43 = vsel %vm8758_vm7, %v516_v34, %v575_v14  ;;  %v645_v44 = vrot.slane %v609_v38, 7 }
  0x40   : > { %457 = vst.msk [vmem:[#allocation2 + $0xd0] sm:$0xf0] %vm431_vm1, %v410_v35  ;;  %v1082_v46 = vrot.slane %v8869_v31, 4  ;;  %v1083_v45 = vrot.slane %v8871_v33, 4  ;;  %703 = vst [vmem:[#allocation2 + $0x98] sm:$0x10] %v702_v41 }
  0x41   : > { %458 = vst.msk [vmem:[#allocation2 + $0xd8] sm:$0xf] %vm433_vm2, %v410_v35  ;;  %577 = vst [vmem:[#allocation2 + $0xa0] sm:$0x8] %v576_v43  ;;  %v578_v47 = vld [vmem:[#allocation2 + $0xb0] sm:$0x8]  ;;  %v705_v50 = vsel %vm8770_vm8, %v645_v44, %v704_v39  ;;  %v8897_v57 = vsel %vm1069_vm9, %v1079_v37, %v1080_v40 }
  0x42   : > { %v8891_v49 = vld [vmem:[#allocation2 + $0x50] sm:$0xff]  ;;  %v707_v52 = vld [vmem:[#allocation2 + $0xb8] sm:$0x10]  ;;  %706 = vst [vmem:[#allocation2 + $0xa8] sm:$0x10] %v705_v50  ;;  %v411_v55 = vrot.slane %v379_v48, 4  ;;  %v8901_v62 = vsel %vm1069_vm9, %v1082_v46, %v1083_v45 }
  0x43   : > { %12173 = vst [vmem:[#allocation17_spill] sm:$0xff] %v8891_v49  ;;  %v481_v51 = vld [vmem:[#allocation2 + $0xb0] sm:$0x10]  ;;  %v610_v54 = vld [vmem:[#allocation2 + $0xb8] sm:$0x8]  ;;  %v362_v56 = vld [vmem:[%s8726_s18 + $0xe0] sm:$0xff]  ;;  %7461 = vmatmul.mubr.msk.bf16.gmra.mrb[4].mxu0 %vm1120_vm10, %v8897_v57 }
  0x44   : > { %v517_v53 = vrot.slane %v481_v51, 1  ;;  %12174 = vst [vmem:[#allocation18_spill] sm:$0xff] %v8897_v57  ;;  %v646_v58 = vrot.slane %v610_v54, 7  ;;  %v482_v59 = vld [vmem:[#allocation2 + $0xc0] sm:$0x10]  ;;  %v363_v61 = vld [vmem:[%s8726_s18 + $0xe8] sm:$0xff]  ;;  %7464 = vmatprep.mubr.msk.bf16.mxu0 %vm1120_vm10, %v8901_v62 }
  0x45   : > { %v581_v60 = vld [vmem:[#allocation2 + $0xc0] sm:$0x8]  ;;  %12175 = vst [vmem:[#allocation19_spill] sm:$0xff] %v8901_v62  ;;  %v8903_v1 = vld [vmem:[#allocation2 + $0x58] sm:$0xff]  ;;  %v1085_v2 = vrot.slane %v8891_v49, 4  ;;  %v518_v5 = vrot.slane %v482_v59, 1  ;;  %v380_v15 = vpack.c.bf16 %v363_v61, %v362_v56 }
  0x46   : > { %12176 = vst [vmem:[#allocation20_spill] sm:$0xff] %v8903_v1  ;;  %v8906_v3 = vld [vmem:[#allocation2 + $0x60] sm:$0xff]  ;;  %v579_v4 = vsel %vm8758_vm7, %v517_v53, %v578_v47  ;;  %v611_v6 = vld [vmem:[#allocation2 + $0xc8] sm:$0x8]  ;;  %459 = vst.msk [vmem:[#allocation2 + $0xe0] sm:$0xf0] %vm431_vm1, %v411_v55  ;;  %v708_v11 = vsel %vm8770_vm8, %v646_v58, %v707_v52 }
  0x47   : > { %12177 = vst [vmem:[#allocation21_spill] sm:$0xff] %v8906_v3  ;;  %460 = vst.msk [vmem:[#allocation2 + $0xe8] sm:$0xf] %vm433_vm2, %v411_v55  ;;  %v8912_v7 = vld [vmem:[#allocation2 + $0x68] sm:$0xff]  ;;  %v647_v12 = vrot.slane %v611_v6, 7  ;;  %v582_v16 = vsel %vm8758_vm7, %v518_v5, %v581_v60  ;;  %v1086_v21 = vrot.slane %v8903_v1, 4 }
  0x48   : > { %12178 = vst [vmem:[#allocation22_spill] sm:$0xff] %v8912_v7  ;;  %580 = vst [vmem:[#allocation2 + $0xb0] sm:$0x8] %v579_v4  ;;  %v710_v13 = vld [vmem:[#allocation2 + $0xc8] sm:$0x10]  ;;  %v1088_v26 = vrot.slane %v8906_v3, 4 }
  0x49   : > { %v584_v14 = vld [vmem:[#allocation2 + $0xd0] sm:$0x8]  ;;  %709 = vst [vmem:[#allocation2 + $0xb8] sm:$0x10] %v708_v11  ;;  %v483_v18 = vld [vmem:[#allocation2 + $0xd0] sm:$0x10]  ;;  %v711_v22 = vsel %vm8770_vm8, %v647_v12, %v710_v13  ;;  %v8945_v41 = vsel %vm1069_vm9, %v1085_v2, %v1086_v21 }
  0x4a   : > { %v612_v19 = vld [vmem:[#allocation2 + $0xd8] sm:$0x8]  ;;  %v713_v20 = vld [vmem:[#allocation2 + $0xd8] sm:$0x10]  ;;  %583 = vst [vmem:[#allocation2 + $0xc0] sm:$0x8] %v582_v16 }
  0x4b   : > { %v519_v23 = vrot.slane %v483_v18, 1  ;;  %v648_v25 = vrot.slane %v612_v19, 7  ;;  %v1089_v27 = vrot.slane %v8912_v7, 4  ;;  %712 = vst [vmem:[#allocation2 + $0xc8] sm:$0x10] %v711_v22  ;;  %v412_v28 = vrot.slane %v380_v15, 4  ;;  %7465 = vmatmul.mubr.msk.bf16.gmra.mrb[8].mxu0 %vm1120_vm10, %v8945_v41 }
  0x4c   : > { %v8927_v34 = vld [vmem:[#allocation2 + $0x70] sm:$0xff]  ;;  %v8933_v38 = vld [vmem:[#allocation2 + $0x78] sm:$0xff]  ;;  %v587_v39 = vld [vmem:[#allocation2 + $0xe0] sm:$0x8]  ;;  %12181 = vst [vmem:[#allocation25_spill] sm:$0xff] %v8945_v41  ;;  %v11995_v56 = vshrl.u32 %v8827_v63, 16 }
  0x4d   : > { %12179 = vst [vmem:[#allocation23_spill] sm:$0xff] %v8927_v34  ;;  %v585_v35 = vsel %vm8758_vm7, %v519_v23, %v584_v14  ;;  %v714_v37 = vsel %vm8770_vm8, %v648_v25, %v713_v20  ;;  %12180 = vst [vmem:[#allocation24_spill] sm:$0xff] %v8933_v38  ;;  %v8942_v40 = vld [vmem:[%s11980_s1 + $0x4] sm:$0x3]  ;;  %v716_v46 = vld [vmem:[#allocation2 + $0xe8] sm:$0x10]  ;;  %v8950_v45 = vsel %vm1069_vm9, %v1088_v26, %v1089_v27 }
  0x4e   : > { %586 = vst [vmem:[#allocation2 + $0xd0] sm:$0x8] %v585_v35  ;;  %715 = vst [vmem:[#allocation2 + $0xd8] sm:$0x10] %v714_v37  ;;  %v484_v43 = vld [vmem:[#allocation2 + $0xe0] sm:$0x10]  ;;  %8580 = vmatprep.subr.msk.bf16.mxu0 %vm1169_vm0, %v8942_v40  ;;  %7468 = vmatprep.mubr.msk.bf16.mxu0 %vm1120_vm10, %v8950_v45 }
  0x4f   : > { %461 = vst.msk [vmem:[#allocation2 + $0xf0] sm:$0xf0] %vm431_vm1, %v412_v28  ;;  %468 = vst.msk [vmem:[#allocation2 + $0x110] sm:$0xf0] %vm431_vm1, %v412_v28  ;;  %v613_v44 = vld [vmem:[#allocation2 + $0xe8] sm:$0x8] }
  0x50   : > { %462 = vst.msk [vmem:[#allocation2 + $0xf8] sm:$0xf] %vm433_vm2, %v412_v28  ;;  %469 = vst.msk [vmem:[#allocation2 + $0x118] sm:$0xf] %vm433_vm2, %v412_v28  ;;  %v520_v47 = vrot.slane %v484_v43, 1  ;;  %v649_v48 = vrot.slane %v613_v44, 7 }
  0x51   : > { %12182 = vst [vmem:[#allocation26_spill] sm:$0xff] %v8950_v45  ;;  %v1091_v50 = vrot.slane %v8927_v34, 4  ;;  %v8953_v51 = vld [vmem:[#allocation2 + $0x80] sm:$0xff]  ;;  %v8955_v52 = vld [vmem:[#allocation2 + $0x88] sm:$0xff]  ;;  %v1092_v53 = vrot.slane %v8933_v38, 4  ;;  %v11994_v58 = vshll.u32 %v8827_v63, 16 }
  0x52   : > { %12183 = vst [vmem:[#allocation27_spill] sm:$0xff] %v8953_v51  ;;  %12184 = vst [vmem:[#allocation28_spill] sm:$0xff] %v8955_v52  ;;  %v588_v54 = vsel %vm8758_vm7, %v520_v47, %v587_v39  ;;  %v717_v55 = vsel %vm8770_vm8, %v649_v48, %v716_v46  ;;  %v11993_v59 = vshrl.u32 %v8829_v0, 16  ;;  %v11992_v60 = vshll.u32 %v8829_v0, 16  ;;  %v8972_v4 = vld [vmem:[#allocation2 + $0x90] sm:$0xff]  ;;  %v8974_v5 = vld [vmem:[#allocation2 + $0x98] sm:$0xff] }
  0x53   : > { %589 = vst [vmem:[#allocation2 + $0xe0] sm:$0x8] %v588_v54  ;;  %718 = vst [vmem:[#allocation2 + $0xe8] sm:$0x10] %v717_v55  ;;  %v1094_v61 = vrot.slane %v8953_v51, 4  ;;  %v1095_v2 = vrot.slane %v8955_v52, 4  ;;  %v8981_v14 = vsel %vm1069_vm9, %v1091_v50, %v1092_v53 }
  0x54   : > { %12185 = vst [vmem:[#allocation29_spill] sm:$0xff] %v8972_v4  ;;  %12186 = vst [vmem:[#allocation30_spill] sm:$0xff] %v8974_v5  ;;  %v8976_v6 = vld [vmem:[#allocation2 + $0xa0] sm:$0xff]  ;;  %v8978_v11 = vld [vmem:[#allocation2 + $0xa8] sm:$0xff]  ;;  %v767_v19 = vrot.slane %v11995_v56, 3  ;;  %v770_v23 = vrot.slane %v11994_v58, 4  ;;  %7469 = vmatmul.mubr.msk.bf16.gmra.mrb[12].mxu0 %vm1120_vm10, %v8981_v14 }
  0x55   : > { %v590_v13 = vld [vmem:[#allocation2 + $0xf0] sm:$0x8]  ;;  %12187 = vst [vmem:[#allocation31_spill] sm:$0xff] %v8981_v14  ;;  %v719_v18 = vld [vmem:[#allocation2 + $0xf8] sm:$0x10]  ;;  %v775_v25 = vrot.slane %v11993_v59, 3  ;;  %v8996_v27 = vsel %vm1069_vm9, %v1094_v61, %v1095_v2 }
  0x56   : > { %v485_v12 = vld [vmem:[#allocation2 + $0xf0] sm:$0x10]  ;;  %v8987_v21 = vld [vmem:[#allocation2 + $0xb8] sm:$0xff]  ;;  %v778_v26 = vrot.slane %v11992_v60, 4  ;;  %12188 = vst [vmem:[#allocation32_spill] sm:$0xff] %v8996_v27  ;;  %v1097_v35 = vrot.slane %v8972_v4, 4  ;;  %7472 = vmatprep.mubr.msk.bf16.mxu0 %vm1120_vm10, %v8996_v27  ;;  %v771_v54 = vor.u32 %v770_v23, %v767_v19 }
  0x57   : > { %v521_v15 = vrot.slane %v485_v12, 1  ;;  %v614_v16 = vld [vmem:[#allocation2 + $0xf8] sm:$0x8]  ;;  %v8985_v20 = vld [vmem:[#allocation2 + $0xb0] sm:$0xff]  ;;  %v1098_v37 = vrot.slane %v8974_v5, 4  ;;  %v1100_v39 = vrot.slane %v8976_v6, 4 }
  0x58   : > { %v650_v22 = vrot.slane %v614_v16, 7  ;;  %v9003_v43 = vld [vmem:[#allocation2 + $0xc0] sm:$0xff]  ;;  %v9005_v44 = vld [vmem:[#allocation2 + $0xc8] sm:$0xff]  ;;  %v1101_v47 = vrot.slane %v8978_v11, 4  ;;  %v1103_v48 = vrot.slane %v8985_v20, 4  ;;  %v1104_v50 = vrot.slane %v8987_v21, 4 }
  0x59   : > { %v591_v28 = vsel %vm8758_vm7, %v521_v15, %v590_v13  ;;  %v11991_v53 = vshrl.u32 %v8838_v8, 16  ;;  %v779_v55 = vor.u32 %v778_v26, %v775_v25  ;;  %v11990_v61 = vshll.u32 %v8838_v8, 16 }
  0x5a   : > { %592 = vst [vmem:[#allocation2 + $0xf0] sm:$0x8] %v591_v28  ;;  %v720_v46 = vsel %vm8770_vm8, %v650_v22, %v719_v18  ;;  %v11989_v2 = vshrl.u32 %v8840_v9, 16  ;;  %v1106_v12 = vrot.slane %v9003_v43, 4  ;;  %v1107_v13 = vrot.slane %v9005_v44, 4  ;;  %v9030_v22 = vld [vmem:[#allocation2 + $0xd0] sm:$0xff] }
  0x5b   : > { %721 = vst [vmem:[#allocation2 + $0xf8] sm:$0x10] %v720_v46  ;;  %v9022_v15 = vsel %vm1069_vm9, %v1097_v35, %v1098_v37  ;;  %v9025_v16 = vsel %vm1069_vm9, %v1100_v39, %v1101_v47  ;;  %v9028_v18 = vsel %vm1069_vm9, %v1103_v48, %v1104_v50  ;;  %v9034_v19 = vrot.slane %v11991_v53, 3  ;;  %v9051_v37 = vld [vmem:[#allocation2 + $0xd8] sm:$0xff]  ;;  %v9057_v50 = vld [vmem:[#allocation2 + $0xe0] sm:$0xff] }
  0x5c   : > { %12189 = vst [vmem:[#allocation33_spill] sm:$0xff] %v9022_v15  ;;  %12190 = vst [vmem:[#allocation34_spill] sm:$0xff] %v9025_v16  ;;  %v9037_v23 = vsel %vm672_vm6, %v771_v54, %v779_v55  ;;  %v9041_v25 = vrot.slane %v11990_v61, 4  ;;  %v9045_v26 = vrot.slane %v11989_v2, 3  ;;  %v11996_v28 = vshll.u32 %v8840_v9, 16  ;;  %7473 = vmatmul.mubr.msk.bf16.gmra.mrb[16].mxu0 %vm1120_vm10, %v9022_v15 }
  0x5d   : > { %12191 = vst [vmem:[#allocation35_spill] sm:$0xff] %v9028_v18  ;;  %v9049_v35 = vsel %vm1069_vm9, %v1106_v12, %v1107_v13  ;;  %v11997_v39 = vshrl.u32 %v8842_v10, 16  ;;  %v12000_v46 = vshll.u32 %v8842_v10, 16  ;;  %v12003_v47 = vshrl.u32 %v8848_v17, 16  ;;  %v9064_v12 = vld [vmem:[#allocation2 + $0xe8] sm:$0xff]  ;;  %7476 = vmatprep.mubr.msk.bf16.mxu0 %vm1120_vm10, %v9025_v16 }
  0x5e   : > { %12192 = vst [vmem:[#allocation36_spill] sm:$0xff] %v9049_v35  ;;  %v1109_v48 = vrot.slane %v9030_v22, 4  ;;  %v12008_v54 = vshll.u32 %v8848_v17, 16  ;;  %v12011_v55 = vshrl.u32 %v8858_v24, 16  ;;  %v1110_v59 = vrot.slane %v9051_v37, 4 }
  0x5f   : > { %v9075_v58 = vrot.slane %v11996_v28, 4  ;;  %v1112_v13 = vrot.slane %v9057_v50, 4  ;;  %v9082_v53 = vrot.slane %v11997_v39, 3  ;;  %v9086_v60 = vrot.slane %v12000_v46, 4 }
  0x60   : > { %v9090_v61 = vrot.slane %v12003_v47, 3  ;;  %v1113_v28 = vrot.slane %v9064_v12, 4  ;;  %v9095_v56 = vrot.slane %v12008_v54, 4  ;;  %v9099_v2 = vrot.slane %v12011_v55, 3 }
  0x61   : > { %v12193_v39 = vshll.u32 %v8858_v24, 16  ;;  %v12194_v46 = vshrl.u32 %v8867_v30, 16  ;;  %v12195_v47 = vshll.u32 %v8867_v30, 16  ;;  %v12196_v14 = vshrl.u32 %v8869_v31, 16  ;;  %v9121_v41 = vld [vmem:[#allocation2 + $0xf0] sm:$0xff] }
  0x62   : > { %v12197_v45 = vshll.u32 %v8869_v31, 16  ;;  %12198 = vst [vmem:[#allocation37_spill] sm:$0xff] %v9121_v41  ;;  %v12200_v62 = vshrl.u32 %v8871_v33, 16  ;;  %v12201_v57 = vshll.u32 %v8871_v33, 16  ;;  %v9136_v29 = vsel %vm1069_vm9, %v1109_v48, %v1110_v59 }
  0x63   : > { %v9103_v16 = vrot.slane %v12193_v39, 4  ;;  %v9107_v15 = vrot.slane %v12194_v46, 3  ;;  %v9111_v27 = vrot.slane %v12195_v47, 4  ;;  %v9115_v54 = vrot.slane %v12196_v14, 3  ;;  %v9123_v39 = vld [vmem:[#allocation2 + $0xf8] sm:$0xff]  ;;  %12202 = vst [vmem:[#allocation39_spill] sm:$0xff] %v9136_v29 }
  0x64   : > { %v9119_v55 = vrot.slane %v12197_v45, 4  ;;  %12199 = vst [vmem:[#allocation38_spill] sm:$0xff] %v9123_v39  ;;  %v9127_v46 = vrot.slane %v12200_v62, 3  ;;  %v9131_v47 = vrot.slane %v12201_v57, 4  ;;  %v12035_v14 = vshll.u32 %v8891_v49, 16  ;;  %7477 = vmatmul.mubr.msk.bf16.gmra.mrb[20].mxu0 %vm1120_vm10, %v9028_v18 }
  0x65   : > { %v9143_v62 = vsel %vm1069_vm9, %v1112_v13, %v1113_v28  ;;  %v1115_v48 = vrot.slane %v9121_v41, 4  ;;  %v1116_v45 = vrot.slane %v9123_v39, 4  ;;  %7480 = vmatprep.mubr.msk.bf16.mxu0 %vm1120_vm10, %v9049_v35  ;;  %v12204_v57 = vshrl.u32 %v8891_v49, 16 }
  0x66   : > { %12203 = vst [vmem:[#allocation40_spill] sm:$0xff] %v9143_v62  ;;  %v9171_v42 = vrot.slane %v12035_v14, 4  ;;  %v12205_v28 = vshrl.u32 %v8903_v1, 16  ;;  %v12206_v18 = vshll.u32 %v8903_v1, 16  ;;  %v12208_v49 = vshll.u32 %v8906_v3, 16 }
  0x67   : > { %v9167_v32 = vrot.slane %v12204_v57, 3  ;;  %v12207_v57 = vshrl.u32 %v8906_v3, 16  ;;  %v12210_v33 = vshll.u32 %v8912_v7, 16  ;;  %v12211_v59 = vshrl.u32 %v8927_v34, 16 }
  0x68   : > { %v860_v13 = vrot.slane %v12205_v28, 3  ;;  %v863_v35 = vrot.slane %v12206_v18, 4  ;;  %v872_v14 = vrot.slane %v12208_v49, 4  ;;  %v12209_v18 = vshrl.u32 %v8912_v7, 16 }
  0x69   : > { %v869_v1 = vrot.slane %v12207_v57, 3  ;;  %v880_v36 = vrot.slane %v12210_v33, 4  ;;  %v886_v17 = vrot.slane %v12211_v59, 3  ;;  %v12212_v31 = vshll.u32 %v8927_v34, 16 }
  0x6a   : > { %v877_v24 = vrot.slane %v12209_v18, 3  ;;  %v12213_v49 = vshrl.u32 %v8933_v38, 16  ;;  %v12214_v28 = vshll.u32 %v8933_v38, 16  ;;  %v12215_v18 = vshrl.u32 %v8953_v51, 16 }
  0x6b   : > { %v889_v10 = vrot.slane %v12212_v31, 4  ;;  %v12216_v33 = vshll.u32 %v8953_v51, 16  ;;  %v12217_v31 = vshrl.u32 %v8955_v52, 16  ;;  %v12223_v8 = vshrl.u32 %v8976_v6, 16 }
  0x6c   : > { %7481 = vmatmul.mubr.msk.bf16.gmra.mrb[24].mxu0 %vm1120_vm10, %v9136_v29  ;;  %v894_v57 = vrot.slane %v12213_v49, 3  ;;  %v897_v30 = vrot.slane %v12214_v28, 4  ;;  %v903_v3 = vrot.slane %v12215_v18, 3  ;;  %v12218_v29 = vshll.u32 %v8955_v52, 16 }
  0x6d   : > { %v906_v7 = vrot.slane %v12216_v33, 4  ;;  %7484 = vmatprep.mubr.msk.bf16.mxu0 %vm1120_vm10, %v9143_v62  ;;  %v911_v59 = vrot.slane %v12217_v31, 3  ;;  %v12219_v49 = vshrl.u32 %v8972_v4, 16  ;;  %v12220_v28 = vshll.u32 %v8972_v4, 16 }
  0x6e   : > { %v914_v34 = vrot.slane %v12218_v29, 4  ;;  %v12221_v18 = vshrl.u32 %v8974_v5, 16  ;;  %v12222_v33 = vshll.u32 %v8974_v5, 16  ;;  %v9232_v31 = vsel %vm1069_vm9, %v1115_v48, %v1116_v45 }
  0x6f   : > { %v920_v39 = vrot.slane %v12219_v49, 3  ;;  %v923_v38 = vrot.slane %v12220_v28, 4  ;;  %v856_v29 = vor.u32 %v9171_v42, %v9167_v32  ;;  %v864_v49 = vor.u32 %v863_v35, %v860_v13 }
  0x70   : > { %v928_v9 = vrot.slane %v12221_v18, 3  ;;  %v931_v51 = vrot.slane %v12222_v33, 4  ;;  %v873_v52 = vor.u32 %v872_v14, %v869_v1  ;;  %v881_v4 = vor.u32 %v880_v36, %v877_v24 }
  0x71   : > { %v890_v28 = vor.u32 %v889_v10, %v886_v17  ;;  %v898_v41 = vor.u32 %v897_v30, %v894_v57  ;;  %v907_v0 = vor.u32 %v906_v7, %v903_v3  ;;  %v915_v18 = vor.u32 %v914_v34, %v911_v59  ;;  %v12236_v59 = vld [vmem:[#allocation6_spill] sm:$0xff] }
  0x72   : > { %v924_v63 = vor.u32 %v923_v38, %v920_v39  ;;  %v943_v33 = vshrl.u32 %v8978_v11, 16  ;;  %v946_v62 = vshll.u32 %v8978_v11, 16  ;;  %v932_v5 = vor.u32 %v931_v51, %v928_v9 }
  0x73   : > { %v9240_v45 = vrot.slane %v12223_v8, 3  ;;  %v12224_v48 = vshll.u32 %v8976_v6, 16  ;;  %v952_v42 = vshrl.u32 %v8985_v20, 16  ;;  %v12225_v10 = vor.u32 %v9075_v58, %v9045_v26 }
  0x74   : > { %v12226_v17 = vor.u32 %v9041_v25, %v9034_v19  ;;  %v1710_v9 = vsel %vm1169_vm0, %v8942_v40, 0  ;;  %v12227_v8 = vor.u32 %v9095_v56, %v9090_v61  ;;  %v12228_v30 = vor.u32 %v9086_v60, %v9082_v53  ;;  %7485 = vmatmul.mubr.msk.bf16.gmra.mrb[28].mxu0 %vm1120_vm10, %v9232_v31 }
  0x75   : > { %v9244_v32 = vrot.slane %v12224_v48, 4  ;;  %v12229_v1 = vor.u32 %v9111_v27, %v9107_v15  ;;  %v12230_v3 = vor.u32 %v9103_v16, %v9099_v2  ;;  %v12231_v34 = vor.u32 %v9131_v47, %v9127_v46  ;;  %7490 = vmatprep.mubr.msk.bf16.mxu0 %vm1120_vm10, %v9037_v23  ;;  %v12233_v46 = vld [vmem:[#allocation5_spill] sm:$0xff] }
  0x76   : > { %v9254_v24 = vsel %vm672_vm6, %v12226_v17, %v12225_v10  ;;  %v9265_v36 = vsel %vm672_vm6, %v12228_v30, %v12227_v8  ;;  %v12232_v38 = vor.u32 %v9119_v55, %v9115_v54  ;;  %v9288_v51 = vsel %vm672_vm6, %v856_v29, %v864_v49  ;;  %v9346_v8 = vld [vmem:[%s11980_s1 + $0x6] sm:$0x3] }
  0x77   : > { %v9274_v7 = vsel %vm672_vm6, %v12230_v3, %v12229_v1  ;;  %v9291_v56 = vsel %vm672_vm6, %v873_v52, %v881_v4  ;;  %v9294_v58 = vsel %vm672_vm6, %v890_v28, %v898_v41  ;;  %v9299_v60 = vsel %vm672_vm6, %v907_v0, %v915_v18  ;;  %v12238_v28 = vld [vmem:[#allocation37_spill] sm:$0xff]  ;;  %v12240_v30 = vld [vmem:[#allocation7_spill] sm:$0xff] }
  0x78   : > { %v9285_v40 = vsel %vm672_vm6, %v12232_v38, %v12231_v34  ;;  %v9303_v27 = vrot.slane %v943_v33, 3  ;;  %v9307_v53 = vrot.slane %v946_v62, 4  ;;  %v955_v52 = vshll.u32 %v8985_v20, 16  ;;  %v12247_v18 = vld [vmem:[#allocation9_spill] sm:$0xff] }
  0x79   : > { %v9311_v4 = vsel %vm672_vm6, %v924_v63, %v932_v5  ;;  %v9317_v0 = vrot.slane %v952_v42, 3  ;;  %v960_v61 = vshrl.u32 %v8987_v21, 16  ;;  %v963_v2 = vshll.u32 %v8987_v21, 16  ;;  %v12280_v63 = vld [vmem:[#allocation24_spill] sm:$0xff] }
  0x7a   : > { %v12234_v47 = vshrl.u32 %v12233_v46, 16  ;;  %v12235_v13 = vshll.u32 %v12233_v46, 16  ;;  %v12237_v29 = vshrl.u32 %v12236_v59, 16  ;;  %v12239_v10 = vshll.u32 %v12236_v59, 16 }
  0x7b   : > { %v12241_v1 = vshrl.u32 %v12240_v30, 16  ;;  %v12242_v38 = vshll.u32 %v12240_v30, 16  ;;  %v12248_v39 = vshrl.u32 %v12247_v18, 16  ;;  %v12282_v19 = vshll.u32 %v12280_v63, 16 }
  0x7c   : > { %v1547_v14 = vrot.slane %v12234_v47, 4  ;;  %v1548_v57 = vrot.slane %v12235_v13, 5  ;;  %v1550_v49 = vrot.slane %v12237_v29, 4  ;;  %v1551_v17 = vrot.slane %v12239_v10, 5  ;;  %7491 = vmatmul.mubr.msk.bf16.vlgmr.msra.gmra.mrb[0].mxu0 %vm1120_vm10, %v9254_v24  ;;  %v12243_v47 = vld [vmem:[#allocation8_spill] sm:$0xff]  ;;  %v12245_v29 = vld [vmem:[#allocation38_spill] sm:$0xff] }
  0x7d   : > { %v1554_v3 = vrot.slane %v12241_v1, 4  ;;  %v1555_v46 = vrot.slane %v12242_v38, 5  ;;  %v12244_v13 = vshrl.u32 %v12243_v47, 16  ;;  %7523 = vmatpush3.bf16.msra.mxu0 %v1710_v9  ;;  %7494 = vmatprep.mubr.msk.bf16.mxu0 %vm1120_vm10, %v9265_v36  ;;  %v12246_v1 = vshll.u32 %v12243_v47, 16  ;;  %v12250_v38 = vld [vmem:[#allocation10_spill] sm:$0xff] }
  0x7e   : > { %v1549_v34 = vor.u32 %v1548_v57, %v1547_v14  ;;  %v1552_v41 = vor.u32 %v1551_v17, %v1550_v49  ;;  %v1561_v55 = vrot.slane %v12248_v39, 4  ;;  %8581 = vmatprep.subr.msk.bf16.mxu0 %vm1169_vm0, %v9346_v8  ;;  %v12249_v9 = vshll.u32 %v12247_v18, 16  ;;  %v12253_v39 = vld [vmem:[#allocation11_spill] sm:$0xff] }
  0x7f   : > { %v1557_v59 = vrot.slane %v12244_v13, 4  ;;  %v1558_v48 = vrot.slane %v12246_v1, 5  ;;  %v1556_v57 = vor.u32 %v1555_v46, %v1554_v3  ;;  %v12251_v13 = vshrl.u32 %v12250_v38, 16  ;;  %v12256_v46 = vld [vmem:[#allocation13_spill] sm:$0xff] }
  0x80   : > { %v1562_v30 = vrot.slane %v12249_v9, 5  ;;  %v9371_v49 = vsel %vm1546_vm11, %v1549_v34, %v1552_v41  ;;  %v12252_v47 = vshll.u32 %v12250_v38, 16  ;;  %v12254_v10 = vshrl.u32 %v12253_v39, 16  ;;  %v12259_v34 = vld [vmem:[#allocation14_spill] sm:$0xff] }
  0x81   : > { %v1564_v54 = vrot.slane %v12251_v13, 4  ;;  %v1559_v17 = vor.u32 %v1558_v48, %v1557_v59  ;;  %v12255_v26 = vshll.u32 %v12253_v39, 16  ;;  %v12257_v18 = vshrl.u32 %v12256_v46, 16  ;;  %v12262_v39 = vld [vmem:[#allocation15_spill] sm:$0xff] }
  0x82   : > { %v1565_v1 = vrot.slane %v12252_v47, 5  ;;  %v1568_v14 = vrot.slane %v12254_v10, 4  ;;  %v1563_v35 = vor.u32 %v1562_v30, %v1561_v55  ;;  %v12258_v25 = vshll.u32 %v12256_v46, 16 }
  0x83   : > { %v1569_v3 = vrot.slane %v12255_v26, 5  ;;  %v1571_v9 = vrot.slane %v12257_v18, 4  ;;  %v9384_v41 = vsel %vm1546_vm11, %v1556_v57, %v1559_v17  ;;  %v12260_v59 = vshrl.u32 %v12259_v34, 16  ;;  %v12265_v17 = vld [vmem:[#allocation17_spill] sm:$0xff] }
  0x84   : > { %v1572_v13 = vrot.slane %v12258_v25, 5  ;;  %v1566_v48 = vor.u32 %v1565_v1, %v1564_v54  ;;  %v12261_v47 = vshll.u32 %v12259_v34, 16  ;;  %v12263_v26 = vshrl.u32 %v12262_v39, 16  ;;  %7495 = vmatmul.mubr.msk.bf16.gmra.mrb[4].mxu0 %vm1120_vm10, %v9274_v7 }
  0x85   : > { %v1575_v38 = vrot.slane %v12260_v59, 4  ;;  %v1570_v55 = vor.u32 %v1569_v3, %v1568_v14  ;;  %v12264_v18 = vshll.u32 %v12262_v39, 16  ;;  %v12266_v54 = vshrl.u32 %v12265_v17, 16  ;;  %7498 = vmatprep.mubr.msk.bf16.mxu0 %vm1120_vm10, %v9285_v40 }
  0x86   : > { %v1576_v10 = vrot.slane %v12261_v47, 5  ;;  %v1573_v30 = vor.u32 %v1572_v13, %v1571_v9  ;;  %v1578_v23 = vrot.slane %v12263_v26, 4  ;;  %v9395_v25 = vsel %vm1546_vm11, %v1563_v35, %v1566_v48  ;;  %v12268_v9 = vld [vmem:[#allocation20_spill] sm:$0xff]  ;;  %v12271_v47 = vld [vmem:[#allocation21_spill] sm:$0xff] }
  0x87   : > { %v1579_v5 = vrot.slane %v12264_v18, 5  ;;  %v1582_v1 = vrot.slane %v12266_v54, 4  ;;  %v12267_v46 = vshll.u32 %v12265_v17, 16  ;;  %v12269_v13 = vshrl.u32 %v12268_v9, 16  ;;  %v12274_v17 = vld [vmem:[#allocation22_spill] sm:$0xff] }
  0x88   : > { %v1577_v57 = vor.u32 %v1576_v10, %v1575_v38  ;;  %v9404_v14 = vsel %vm1546_vm11, %v1570_v55, %v1573_v30  ;;  %v12270_v35 = vshll.u32 %v12268_v9, 16  ;;  %v12272_v10 = vshrl.u32 %v12271_v47, 16  ;;  %v12277_v9 = vld [vmem:[#allocation23_spill] sm:$0xff] }
  0x89   : > { %v1583_v59 = vrot.slane %v12267_v46, 5  ;;  %v1580_v3 = vor.u32 %v1579_v5, %v1578_v23  ;;  %v1585_v34 = vrot.slane %v12269_v13, 4  ;;  %v12273_v26 = vshll.u32 %v12271_v47, 16 }
  0x8a   : > { %v1586_v48 = vrot.slane %v12270_v35, 5  ;;  %v1589_v39 = vrot.slane %v12272_v10, 4  ;;  %v12275_v55 = vshrl.u32 %v12274_v17, 16  ;;  %v12276_v54 = vshll.u32 %v12274_v17, 16 }
  0x8b   : > { %v1584_v38 = vor.u32 %v1583_v59, %v1582_v1  ;;  %v1590_v18 = vrot.slane %v12273_v26, 5  ;;  %v9419_v5 = vsel %vm1546_vm11, %v1577_v57, %v1580_v3  ;;  %v12278_v13 = vshrl.u32 %v12277_v9, 16 }
  0x8c   : > { %v1592_v30 = vrot.slane %v12275_v55, 4  ;;  %v1587_v23 = vor.u32 %v1586_v48, %v1585_v34  ;;  %v1593_v46 = vrot.slane %v12276_v54, 5  ;;  %v12279_v59 = vshll.u32 %v12277_v9, 16  ;;  %v12283_v34 = vld [vmem:[#allocation27_spill] sm:$0xff]  ;;  %v12286_v9 = vld [vmem:[#allocation28_spill] sm:$0xff]  ;;  %7499 = vmatmul.mubr.msk.bf16.gmra.mrb[8].mxu0 %vm1120_vm10, %v9288_v51 }
  0x8d   : > { %v1596_v35 = vrot.slane %v12278_v13, 4  ;;  %v1591_v1 = vor.u32 %v1590_v18, %v1589_v39  ;;  %v12281_v47 = vshrl.u32 %v12280_v63, 16  ;;  %v1600_v55 = vrot.slane %v12282_v19, 5  ;;  %7502 = vmatprep.mubr.msk.bf16.mxu0 %vm1120_vm10, %v9291_v56 }
  0x8e   : > { %v1597_v10 = vrot.slane %v12279_v59, 5  ;;  %v9432_v57 = vsel %vm1546_vm11, %v1584_v38, %v1587_v23  ;;  %v1594_v3 = vor.u32 %v1593_v46, %v1592_v30  ;;  %v12284_v48 = vshrl.u32 %v12283_v34, 16  ;;  %v12289_v38 = vld [vmem:[#allocation29_spill] sm:$0xff] }
  0x8f   : > { %v1599_v26 = vrot.slane %v12281_v47, 4  ;;  %v12285_v54 = vshll.u32 %v12283_v34, 16  ;;  %v12287_v59 = vshrl.u32 %v12286_v9, 16  ;;  %v12288_v47 = vshll.u32 %v12286_v9, 16 }
  0x90   : > { %v1603_v17 = vrot.slane %v12284_v48, 4  ;;  %v1598_v39 = vor.u32 %v1597_v10, %v1596_v35  ;;  %v9443_v19 = vsel %vm1546_vm11, %v1591_v1, %v1594_v3  ;;  %v12290_v30 = vshrl.u32 %v12289_v38, 16  ;;  %v12292_v10 = vld [vmem:[#allocation30_spill] sm:$0xff] }
  0x91   : > { %v1604_v13 = vrot.slane %v12285_v54, 5  ;;  %v1601_v18 = vor.u32 %v1600_v55, %v1599_v26  ;;  %v1606_v16 = vrot.slane %v12287_v59, 4  ;;  %v1607_v15 = vrot.slane %v12288_v47, 5 }
  0x92   : > { %v1610_v23 = vrot.slane %v12290_v30, 4  ;;  %v12291_v46 = vshll.u32 %v12289_v38, 16  ;;  %v12293_v26 = vshrl.u32 %v12292_v10, 16  ;;  %v12294_v54 = vshll.u32 %v12292_v10, 16 }
  0x93   : > { %v1605_v63 = vor.u32 %v1604_v13, %v1603_v17  ;;  %v9450_v34 = vsel %vm1546_vm11, %v1598_v39, %v1601_v18  ;;  %v1608_v35 = vor.u32 %v1607_v15, %v1606_v16  ;;  %v12295_v3 = vshrl.u32 %v8976_v6, 16 }
  0x94   : > { %v1611_v48 = vrot.slane %v12291_v46, 5  ;;  %v1613_v55 = vrot.slane %v12293_v26, 4  ;;  %v1614_v9 = vrot.slane %v12294_v54, 5  ;;  %v12296_v13 = vshll.u32 %v8976_v6, 16  ;;  %7503 = vmatmul.mubr.msk.bf16.gmra.mrb[12].mxu0 %vm1120_vm10, %v9294_v58 }
  0x95   : > { %v1617_v17 = vrot.slane %v12295_v3, 4  ;;  %v1620_v39 = vrot.slane %v943_v33, 4  ;;  %v9467_v15 = vsel %vm1546_vm11, %v1605_v63, %v1608_v35  ;;  %v1621_v18 = vrot.slane %v946_v62, 5  ;;  %7506 = vmatprep.mubr.msk.bf16.mxu0 %vm1120_vm10, %v9299_v60 }
  0x96   : > { %v1612_v1 = vor.u32 %v1611_v48, %v1610_v23  ;;  %v1618_v59 = vrot.slane %v12296_v13, 5  ;;  %v1615_v16 = vor.u32 %v1614_v9, %v1613_v55  ;;  %v1624_v47 = vrot.slane %v952_v42, 4 }
  0x97   : > { %v1625_v6 = vrot.slane %v955_v52, 5  ;;  %v1627_v33 = vrot.slane %v960_v61, 4  ;;  %v1628_v30 = vrot.slane %v963_v2, 5  ;;  %v1622_v23 = vor.u32 %v1621_v18, %v1620_v39 }
  0x98   : > { %v1619_v38 = vor.u32 %v1618_v59, %v1617_v17  ;;  %v9480_v63 = vsel %vm1546_vm11, %v1612_v1, %v1615_v16  ;;  %v12297_v11 = vshrl.u32 %v9003_v43, 16  ;;  %v12298_v46 = vshll.u32 %v9003_v43, 16 }
  0x99   : > { %v1626_v48 = vor.u32 %v1625_v6, %v1624_v47  ;;  %v1629_v35 = vor.u32 %v1628_v30, %v1627_v33  ;;  %v12299_v10 = vshrl.u32 %v9005_v44, 16  ;;  %v12300_v55 = vshll.u32 %v9005_v44, 16 }
  0x9a   : > { %v1631_v62 = vrot.slane %v12297_v11, 4  ;;  %v1632_v42 = vrot.slane %v12298_v46, 5  ;;  %v9491_v9 = vsel %vm1546_vm11, %v1619_v38, %v1622_v23  ;;  %v12301_v3 = vshrl.u32 %v9030_v22, 16 }
  0x9b   : > { %v1634_v26 = vrot.slane %v12299_v10, 4  ;;  %v1635_v54 = vrot.slane %v12300_v55, 5  ;;  %v12302_v13 = vshll.u32 %v9030_v22, 16  ;;  %v9498_v39 = vsel %vm1546_vm11, %v1626_v48, %v1629_v35 }
  0x9c   : > { %v1633_v1 = vor.u32 %v1632_v42, %v1631_v62  ;;  %v1638_v17 = vrot.slane %v12301_v3, 4  ;;  %v12303_v18 = vshrl.u32 %v9051_v37, 16  ;;  %v12304_v6 = vshll.u32 %v9051_v37, 16  ;;  %7507 = vmatmul.mubr.msk.bf16.gmra.mrb[16].mxu0 %vm1120_vm10, %v9311_v4 }
  0x9d   : > { %v1639_v59 = vrot.slane %v12302_v13, 5  ;;  %v1636_v16 = vor.u32 %v1635_v54, %v1634_v26  ;;  %v12305_v30 = vshrl.u32 %v9057_v50, 16  ;;  %v12306_v11 = vshll.u32 %v9057_v50, 16 }
  0x9e   : > { %v1641_v47 = vrot.slane %v12303_v18, 4  ;;  %v1642_v33 = vrot.slane %v12304_v6, 5  ;;  %v12307_v46 = vshrl.u32 %v9064_v12, 16  ;;  %v12308_v10 = vshll.u32 %v9064_v12, 16  ;;  %v365_v6 = vld [vmem:[%s8726_s18 + $0xf8] sm:$0xff] }
  0x9f   : > { %v1640_v38 = vor.u32 %v1639_v59, %v1638_v17  ;;  %v1645_v23 = vrot.slane %v12305_v30, 4  ;;  %v1646_v62 = vrot.slane %v12306_v11, 5  ;;  %v9513_v48 = vsel %vm1546_vm11, %v1633_v1, %v1636_v16 }
  0xa0   : > { %v1648_v42 = vrot.slane %v12307_v46, 4  ;;  %v1643_v35 = vor.u32 %v1642_v33, %v1641_v47  ;;  %v1649_v26 = vrot.slane %v12308_v10, 5  ;;  %v12309_v55 = vshrl.u32 %v12238_v28, 16  ;;  %v364_v47 = vld [vmem:[%s8726_s18 + $0xf0] sm:$0xff] }
  0xa1   : > { %v1647_v3 = vor.u32 %v1646_v62, %v1645_v23  ;;  %v12310_v17 = vshll.u32 %v12238_v28, 16  ;;  %v12311_v59 = vshrl.u32 %v12245_v29, 16  ;;  %v12312_v1 = vshll.u32 %v12245_v29, 16 }
  0xa2   : > { %v1652_v54 = vrot.slane %v12309_v55, 4  ;;  %v949_v33 = vor.u32 %v9307_v53, %v9303_v27  ;;  %v9532_v30 = vsel %vm1546_vm11, %v1640_v38, %v1643_v35  ;;  %v1650_v11 = vor.u32 %v1649_v26, %v1648_v42 }
  0xa3   : > { %v1653_v13 = vrot.slane %v12310_v17, 5  ;;  %v1655_v18 = vrot.slane %v12311_v59, 4  ;;  %v1656_v16 = vrot.slane %v12312_v1, 5  ;;  %v381_v46 = vpack.c.bf16 %v365_v6, %v364_v47 }
  0xa4   : > { %v957_v23 = vrot.slane %v955_v52, 4  ;;  %v962_v62 = vrot.slane %v960_v61, 3  ;;  %v965_v17 = vrot.slane %v963_v2, 4  ;;  %v12313_v59 = vshrl.u32 %v9003_v43, 16 }
  0xa5   : > { %v1654_v10 = vor.u32 %v1653_v13, %v1652_v54  ;;  %v1657_v55 = vor.u32 %v1656_v16, %v1655_v18  ;;  %v9543_v27 = vsel %vm1546_vm11, %v1647_v3, %v1650_v11  ;;  %v413_v53 = vrot.slane %v381_v46, 4 }
  0xa6   : > { %v971_v1 = vrot.slane %v12313_v59, 3  ;;  %v12314_v38 = vshll.u32 %v9003_v43, 16  ;;  %v12315_v20 = vshrl.u32 %v9005_v44, 16  ;;  %v12316_v61 = vshll.u32 %v9005_v44, 16 }
  0xa7   : > { %v9552_v26 = vsel %vm1546_vm11, %v1654_v10, %v1657_v55  ;;  %v12317_v21 = vor.u32 %v9244_v32, %v9240_v45  ;;  %463 = vst.msk [vmem:[#allocation2 + $0x100] sm:$0xf0] %vm431_vm1, %v413_v53  ;;  %v958_v43 = vor.u32 %v957_v23, %v9317_v0  ;;  %v966_v44 = vor.u32 %v965_v17, %v962_v62 }
  0xa8   : > { %v974_v42 = vrot.slane %v12314_v38, 4  ;;  %v979_v52 = vrot.slane %v12315_v20, 3  ;;  %v982_v35 = vrot.slane %v12316_v61, 4  ;;  %464 = vst.msk [vmem:[#allocation2 + $0x108] sm:$0xf] %vm433_vm2, %v413_v53  ;;  %v12318_v45 = vshrl.u32 %v9030_v22, 16 }
  0xa9   : > { %v9558_v2 = vsel %vm672_vm6, %v12317_v21, %v949_v33  ;;  %v12319_v13 = vshll.u32 %v9030_v22, 16  ;;  %v12320_v16 = vshrl.u32 %v9051_v37, 16  ;;  %v12321_v6 = vshll.u32 %v9051_v37, 16  ;;  %v722_v20 = vld [vmem:[#allocation2 + $0x108] sm:$0x10] }
  0xaa   : > { %7510 = vmatprep.mubr.msk.bf16.mxu0 %vm1120_vm10, %v9558_v2  ;;  %v975_v54 = vor.u32 %v974_v42, %v971_v1  ;;  %v983_v3 = vor.u32 %v982_v35, %v979_v52  ;;  %v988_v32 = vrot.slane %v12318_v45, 3  ;;  %v9576_v11 = vsel %vm672_vm6, %v958_v43, %v966_v44  ;;  %v593_v42 = vld [vmem:[#allocation2 + $0x100] sm:$0x8] }
  0xab   : > { %v991_v18 = vrot.slane %v12319_v13, 4  ;;  %v996_v47 = vrot.slane %v12320_v16, 3  ;;  %v999_v33 = vrot.slane %v12321_v6, 4  ;;  %v12322_v46 = vshrl.u32 %v9057_v50, 16  ;;  %7511 = vmatmul.mubr.msk.bf16.gmra.mrb[20].mxu0 %vm1120_vm10, %v9576_v11 }
  0xac   : > { %v9579_v0 = vsel %vm672_vm6, %v975_v54, %v983_v3  ;;  %v12323_v62 = vshll.u32 %v9057_v50, 16  ;;  %v12324_v17 = vshrl.u32 %v9064_v12, 16  ;;  %v12325_v37 = vshll.u32 %v9064_v12, 16 }
  0xad   : > { %v1005_v23 = vrot.slane %v12322_v46, 3  ;;  %v992_v52 = vor.u32 %v991_v18, %v988_v32  ;;  %v1000_v61 = vor.u32 %v999_v33, %v996_v47  ;;  %7514 = vmatprep.mubr.msk.bf16.mxu0 %vm1120_vm10, %v9579_v0  ;;  %v12328_v3 = vshrl.u32 %v12238_v28, 16 }
  0xae   : > { %v1008_v10 = vrot.slane %v12323_v62, 4  ;;  %v486_v22 = vld [vmem:[#allocation2 + $0x100] sm:$0x10]  ;;  %v1013_v59 = vrot.slane %v12324_v17, 3  ;;  %v1016_v1 = vrot.slane %v12325_v37, 4  ;;  %v12329_v32 = vshll.u32 %v12238_v28, 16 }
  0xaf   : > { %v615_v55 = vld [vmem:[#allocation2 + $0x108] sm:$0x8]  ;;  %v522_v53 = vrot.slane %v486_v22, 1  ;;  %v9598_v54 = vsel %vm672_vm6, %v992_v52, %v1000_v61  ;;  %v1022_v45 = vrot.slane %v12328_v3, 3  ;;  %v12330_v18 = vshrl.u32 %v12245_v29, 16  ;;  %v12335_v3 = vld [vmem:[#allocation19_spill] sm:$0xff] }
  0xb0   : > { %v651_v38 = vrot.slane %v615_v55, 7  ;;  %v1009_v12 = vor.u32 %v1008_v10, %v1005_v23  ;;  %v1017_v44 = vor.u32 %v1016_v1, %v1013_v59  ;;  %v1025_v13 = vrot.slane %v12329_v32, 4  ;;  %v6901_v62 = vld [vmem:[%s11980_s1 + $0x8] sm:$0x3]  ;;  %v12337_v32 = vld [vmem:[#allocation26_spill] sm:$0xff] }
  0xb1   : > { %v594_v50 = vsel %vm8758_vm7, %v522_v53, %v593_v42  ;;  %v1030_v16 = vrot.slane %v12330_v18, 3  ;;  %v12331_v47 = vshll.u32 %v12245_v29, 16  ;;  %v1928_v29 = vsel %vm1169_vm0, %v9346_v8, 0  ;;  %v12332_v61 = vld [vmem:[#allocation12_spill] sm:$0xff] }
  0xb2   : > { %v723_v43 = vsel %vm8770_vm8, %v651_v38, %v722_v20  ;;  %595 = vst [vmem:[#allocation2 + $0x100] sm:$0x8] %v594_v50  ;;  %v9609_v33 = vsel %vm672_vm6, %v1009_v12, %v1017_v44  ;;  %v1026_v46 = vor.u32 %v1025_v13, %v1022_v45  ;;  %v2134_v8 = vsel %vm1169_vm0, %v6901_v62, 0  ;;  %v12333_v12 = vld [vmem:[#allocation16_spill] sm:$0xff]  ;;  %v12334_v44 = vld [vmem:[#allocation18_spill] sm:$0xff]  ;;  %v12336_v45 = vld [vmem:[#allocation25_spill] sm:$0xff] }
  0xb3   : > { %724 = vst [vmem:[#allocation2 + $0x108] sm:$0x10] %v723_v43  ;;  %v1033_v6 = vrot.slane %v12331_v47, 4  ;;  %7515 = vmatmul.mubr.msk.bf16.gmra.mrb[24].mxu0 %vm1120_vm10, %v9598_v54  ;;  %v6935_v43 = vld [vmem:[%s11980_s1 + $0xc] sm:$0x3]  ;;  %v12338_v13 = vld [vmem:[#allocation31_spill] sm:$0xff] }
  0xb4   : > { %7518 = vmatprep.mubr.msk.bf16.mxu0 %vm1120_vm10, %v9609_v33  ;;  %v12339_v18 = vld [vmem:[#allocation32_spill] sm:$0xff]  ;;  %v12341_v47 = vld [vmem:[#allocation34_spill] sm:$0xff] }
  0xb5   : > { %v1034_v23 = vor.u32 %v1033_v6, %v1030_v16  ;;  %v12340_v16 = vld [vmem:[#allocation33_spill] sm:$0xff]  ;;  %v12342_v6 = vld [vmem:[#allocation35_spill] sm:$0xff] }
  0xb7   : > { %v9616_v28 = vsel %vm672_vm6, %v1026_v46, %v1034_v23  ;;  %v487_v46 = vld [vmem:[#allocation2 + $0x110] sm:$0x10]  ;;  %v616_v23 = vld [vmem:[#allocation2 + $0x118] sm:$0x8] }
  0xba   : > { %v9687_v10 = vld [vmem:[#allocation2 + $0x108] sm:$0xff] }
  0xbb   : > { %7519 = vmatmul.mubr.msk.bf16.gmra.mrb[28].mxu0 %vm1120_vm10, %v9616_v28  ;;  %v1914_v17 = vshrl.u32 %v9687_v10, 16  ;;  %v1917_v59 = vshll.u32 %v9687_v10, 16 }
  0xbc   : > { %7524 = vmatprep.mubr.msk.bf16.mxu0 %vm1120_vm10, %v9371_v49  ;;  %v6918_v49 = vld [vmem:[%s11980_s1 + $0xa] sm:$0x3] }
  0xbd   : > { %v1916_v53 = vrot.slane %v1914_v17, 3  ;;  %v1919_v38 = vrot.slane %v1917_v59, 4  ;;  %v2342_v50 = vsel %vm1169_vm0, %v6918_v49, 0 }
  0xbf   : > { %v1920_v20 = vor.u32 %v1919_v38, %v1916_v53  ;;  %v12344_v38 = vld [vmem:[#allocation39_spill] sm:$0xff] }
  0xc3   : > { %7525 = vmatmul.mubr.msk.bf16.vlgmr.msra.gmra.mrb[0].mxu0 %vm1120_vm10, %v9384_v41 }
  0xc4   : > { %7557 = vmatpush3.bf16.msra.mxu0 %v1928_v29  ;;  %7528 = vmatprep.mubr.msk.bf16.mxu0 %vm1120_vm10, %v9395_v25  ;;  %v523_v29 = vrot.slane %v487_v46, 1  ;;  %v2560_v46 = vsel %vm1169_vm0, %v6935_v43, 0 }
  0xc5   : > { %8582 = vmatprep.subr.msk.bf16.mxu0 %vm1169_vm0, %v6901_v62  ;;  %v652_v62 = vrot.slane %v616_v23, 7  ;;  %v6952_v23 = vld [vmem:[%s11980_s1 + $0xe] sm:$0x3] }
  0xcb   : > { %7529 = vmatmul.mubr.msk.bf16.gmra.mrb[4].mxu0 %vm1120_vm10, %v9404_v14 }
  0xcc   : > { %7532 = vmatprep.mubr.msk.bf16.mxu0 %vm1120_vm10, %v9419_v5 }
  0xd3   : > { %7533 = vmatmul.mubr.msk.bf16.gmra.mrb[8].mxu0 %vm1120_vm10, %v9432_v57 }
  0xd4   : > { %7536 = vmatprep.mubr.msk.bf16.mxu0 %vm1120_vm10, %v9443_v19 }
  0xdb   : > { %7537 = vmatmul.mubr.msk.bf16.gmra.mrb[12].mxu0 %vm1120_vm10, %v9450_v34 }
  0xdc   : > { %7540 = vmatprep.mubr.msk.bf16.mxu0 %vm1120_vm10, %v9467_v15 }
  0xe3   : > { %7541 = vmatmul.mubr.msk.bf16.gmra.mrb[16].mxu0 %vm1120_vm10, %v9480_v63 }
  0xe4   : > { %7544 = vmatprep.mubr.msk.bf16.mxu0 %vm1120_vm10, %v9491_v9 }
  0xeb   : > { %7545 = vmatmul.mubr.msk.bf16.gmra.mrb[20].mxu0 %vm1120_vm10, %v9498_v39 }
  0xec   : > { %7548 = vmatprep.mubr.msk.bf16.mxu0 %vm1120_vm10, %v9513_v48 }
  0xf3   : > { %7549 = vmatmul.mubr.msk.bf16.gmra.mrb[24].mxu0 %vm1120_vm10, %v9532_v30 }
  0xf4   : > { %7552 = vmatprep.mubr.msk.bf16.mxu0 %vm1120_vm10, %v9543_v27 }
  0xfb   : > { %7553 = vmatmul.mubr.msk.bf16.gmra.mrb[28].mxu0 %vm1120_vm10, %v9552_v26 }
  0xfc   : > { %7558 = vmatprep.mubr.msk.bf16.mxu0 %vm1120_vm10, %v9254_v24  ;;  %v9685_v24 = vld [vmem:[#allocation2 + $0x100] sm:$0xff] }
  0xfd   : > { %v1906_v22 = vshrl.u32 %v9685_v24, 16  ;;  %v1909_v55 = vshll.u32 %v9685_v24, 16 }
  0xff   : > { %v1908_v37 = vrot.slane %v1906_v22, 3  ;;  %v1911_v1 = vrot.slane %v1909_v55, 4 }
 0x101   : > { %v1912_v42 = vor.u32 %v1911_v1, %v1908_v37  ;;  %v12343_v37 = vld [vmem:[#allocation36_spill] sm:$0xff] }
 0x103   : > { %7559 = vmatmul.mubr.msk.bf16.vlgmr.msra.gmra.mrb[0].mxu0 %vm1120_vm10, %v9265_v36  ;;  %v9710_v52 = vsel %vm672_vm6, %v1912_v42, %v1920_v20  ;;  %v12345_v42 = vld [vmem:[#allocation40_spill] sm:$0xff]  ;;  %v2125_v20 = vrot.slane %v9685_v24, 4  ;;  %v2766_v24 = vsel %vm1169_vm0, %v6952_v23, 0 }
 0x104   : > { %7591 = vmatpush3.bf16.msra.mxu0 %v2134_v8  ;;  %7562 = vmatprep.mubr.msk.bf16.mxu0 %vm1120_vm10, %v9274_v7  ;;  %v596_v8 = vld [vmem:[#allocation2 + $0x110] sm:$0x8] }
 0x105   : > { %8583 = vmatprep.subr.msk.bf16.mxu0 %vm1169_vm0, %v6918_v49  ;;  %v725_v49 = vld [vmem:[#allocation2 + $0x118] sm:$0x10]  ;;  %v597_v1 = vsel %vm8758_vm7, %v523_v29, %v596_v8  ;;  %v2332_v29 = vrot.slane %v1914_v17, 4 }
 0x106   : > { %v726_v53 = vsel %vm8770_vm8, %v652_v62, %v725_v49  ;;  %598 = vst [vmem:[#allocation2 + $0x110] sm:$0x8] %v597_v1  ;;  %v2333_v62 = vrot.slane %v1917_v59, 5 }
 0x107   : > { %727 = vst [vmem:[#allocation2 + $0x118] sm:$0x10] %v726_v53 }
 0x108   : > { %v2334_v49 = vor.u32 %v2333_v62, %v2332_v29 }
 0x10b   : > { %7563 = vmatmul.mubr.msk.bf16.gmra.mrb[4].mxu0 %vm1120_vm10, %v9285_v40 }
 0x10c   : > { %7566 = vmatprep.mubr.msk.bf16.mxu0 %vm1120_vm10, %v9288_v51 }
 0x113   : > { %7567 = vmatmul.mubr.msk.bf16.gmra.mrb[8].mxu0 %vm1120_vm10, %v9291_v56 }
 0x114   : > { %7570 = vmatprep.mubr.msk.bf16.mxu0 %vm1120_vm10, %v9294_v58 }
 0x11b   : > { %7571 = vmatmul.mubr.msk.bf16.gmra.mrb[12].mxu0 %vm1120_vm10, %v9299_v60 }
 0x11c   : > { %7574 = vmatprep.mubr.msk.bf16.mxu0 %vm1120_vm10, %v9311_v4 }
 0x123   : > { %7575 = vmatmul.mubr.msk.bf16.gmra.mrb[16].mxu0 %vm1120_vm10, %v9558_v2 }
 0x124   : > { %7578 = vmatprep.mubr.msk.bf16.mxu0 %vm1120_vm10, %v9576_v11 }
 0x12b   : > { %7579 = vmatmul.mubr.msk.bf16.gmra.mrb[20].mxu0 %vm1120_vm10, %v9579_v0 }
 0x12c   : > { %7582 = vmatprep.mubr.msk.bf16.mxu0 %vm1120_vm10, %v9598_v54 }
 0x133   : > { %7583 = vmatmul.mubr.msk.bf16.gmra.mrb[24].mxu0 %vm1120_vm10, %v9609_v33 }
 0x134   : > { %7586 = vmatprep.mubr.msk.bf16.mxu0 %vm1120_vm10, %v9616_v28 }
 0x13b   : > { %7587 = vmatmul.mubr.msk.bf16.gmra.mrb[28].mxu0 %vm1120_vm10, %v9710_v52 }
 0x13c   : > { %7592 = vmatprep.mubr.msk.bf16.mxu0 %vm1120_vm10, %v12332_v61  ;;  %v2126_v61 = vrot.slane %v9687_v10, 4  ;;  %v6969_v10 = vld [vmem:[%s11980_s1 + $0x10] sm:$0x3] }
 0x143   : > { %7593 = vmatmul.mubr.msk.bf16.vlgmr.msra.gmra.mrb[0].mxu0 %vm1120_vm10, %v12333_v12 }
 0x144   : > { %7625 = vmatpush3.bf16.msra.mxu0 %v2342_v50  ;;  %7596 = vmatprep.mubr.msk.bf16.mxu0 %vm1120_vm10, %v12334_v44  ;;  %v9756_v50 = vsel %vm1069_vm9, %v2125_v20, %v2126_v61 }
 0x145   : > { %8584 = vmatprep.subr.msk.bf16.mxu0 %vm1169_vm0, %v6935_v43  ;;  %v2330_v43 = vrot.slane %v1909_v55, 5 }
 0x14b   : > { %7597 = vmatmul.mubr.msk.bf16.gmra.mrb[4].mxu0 %vm1120_vm10, %v12335_v3 }
 0x14c   : > { %7600 = vmatprep.mubr.msk.bf16.mxu0 %vm1120_vm10, %v12336_v45 }
 0x153   : > { %7601 = vmatmul.mubr.msk.bf16.gmra.mrb[8].mxu0 %vm1120_vm10, %v12337_v32 }
 0x154   : > { %7604 = vmatprep.mubr.msk.bf16.mxu0 %vm1120_vm10, %v12338_v13 }
 0x15b   : > { %7605 = vmatmul.mubr.msk.bf16.gmra.mrb[12].mxu0 %vm1120_vm10, %v12339_v18 }
 0x15c   : > { %7608 = vmatprep.mubr.msk.bf16.mxu0 %vm1120_vm10, %v12340_v16 }
 0x163   : > { %7609 = vmatmul.mubr.msk.bf16.gmra.mrb[16].mxu0 %vm1120_vm10, %v12341_v47 }
 0x164   : > { %7612 = vmatprep.mubr.msk.bf16.mxu0 %vm1120_vm10, %v12342_v6 }
 0x16b   : > { %7613 = vmatmul.mubr.msk.bf16.gmra.mrb[20].mxu0 %vm1120_vm10, %v12343_v37 }
 0x16c   : > { %7616 = vmatprep.mubr.msk.bf16.mxu0 %vm1120_vm10, %v12344_v38 }
 0x173   : > { %7617 = vmatmul.mubr.msk.bf16.gmra.mrb[24].mxu0 %vm1120_vm10, %v12345_v42 }
 0x174   : > { %7620 = vmatprep.mubr.msk.bf16.mxu0 %vm1120_vm10, %v9232_v31 }
 0x17b   : > { %7621 = vmatmul.mubr.msk.bf16.gmra.mrb[28].mxu0 %vm1120_vm10, %v9756_v50 }
 0x17c   : > { %7626 = vmatprep.mubr.msk.bf16.mxu0 %vm1120_vm10, %v9384_v41  ;;  %v2329_v41 = vrot.slane %v1906_v22, 4 }
 0x17e   : > { %v2331_v8 = vor.u32 %v2330_v43, %v2329_v41 }
 0x180   : > { %v9804_v1 = vsel %vm1546_vm11, %v2331_v8, %v2334_v49 }
 0x183   : > { %7627 = vmatmul.mubr.msk.bf16.vlgmr.msra.gmra.mrb[0].mxu0 %vm1120_vm10, %v9395_v25 }
 0x184   : > { %7659 = vmatpush3.bf16.msra.mxu0 %v2560_v46  ;;  %7630 = vmatprep.mubr.msk.bf16.mxu0 %vm1120_vm10, %v9404_v14 }
 0x185   : > { %8585 = vmatprep.subr.msk.bf16.mxu0 %vm1169_vm0, %v6952_v23 }
 0x18b   : > { %7631 = vmatmul.mubr.msk.bf16.gmra.mrb[4].mxu0 %vm1120_vm10, %v9419_v5 }
 0x18c   : > { %7634 = vmatprep.mubr.msk.bf16.mxu0 %vm1120_vm10, %v9432_v57 }
 0x193   : > { %7635 = vmatmul.mubr.msk.bf16.gmra.mrb[8].mxu0 %vm1120_vm10, %v9443_v19 }
 0x194   : > { %7638 = vmatprep.mubr.msk.bf16.mxu0 %vm1120_vm10, %v9450_v34 }
 0x19b   : > { %7639 = vmatmul.mubr.msk.bf16.gmra.mrb[12].mxu0 %vm1120_vm10, %v9467_v15 }
 0x19c   : > { %7642 = vmatprep.mubr.msk.bf16.mxu0 %vm1120_vm10, %v9480_v63 }
 0x1a3   : > { %7643 = vmatmul.mubr.msk.bf16.gmra.mrb[16].mxu0 %vm1120_vm10, %v9491_v9 }
 0x1a4   : > { %7646 = vmatprep.mubr.msk.bf16.mxu0 %vm1120_vm10, %v9498_v39 }
 0x1ab   : > { %7647 = vmatmul.mubr.msk.bf16.gmra.mrb[20].mxu0 %vm1120_vm10, %v9513_v48 }
 0x1ac   : > { %7650 = vmatprep.mubr.msk.bf16.mxu0 %vm1120_vm10, %v9532_v30 }
 0x1b3   : > { %7651 = vmatmul.mubr.msk.bf16.gmra.mrb[24].mxu0 %vm1120_vm10, %v9543_v27 }
 0x1b4   : > { %7654 = vmatprep.mubr.msk.bf16.mxu0 %vm1120_vm10, %v9552_v26 }
 0x1bb   : > { %7655 = vmatmul.mubr.msk.bf16.gmra.mrb[28].mxu0 %vm1120_vm10, %v9804_v1 }
 0x1bc   : > { %7660 = vmatprep.mubr.msk.bf16.mxu0 %vm1120_vm10, %v9265_v36  ;;  %v762_v36 = vld [vmem:[#allocation2 + $0x110] sm:$0xff] }
 0x1c3   : > { %7661 = vmatmul.mubr.msk.bf16.vlgmr.msra.gmra.mrb[0].mxu0 %vm1120_vm10, %v9274_v7  ;;  %v763_v7 = vld [vmem:[#allocation2 + $0x118] sm:$0xff] }
 0x1c4   : > { %7693 = vmatpush3.bf16.msra.mxu0 %v2766_v24  ;;  %7664 = vmatprep.mubr.msk.bf16.mxu0 %vm1120_vm10, %v9285_v40  ;;  %v2538_v40 = vshrl.u32 %v762_v36, 16  ;;  %v2758_v55 = vrot.slane %v763_v7, 4 }
 0x1c5   : > { %8586 = vmatprep.subr.msk.bf16.mxu0 %vm1169_vm0, %v6969_v10 }
 0x1cb   : > { %7665 = vmatmul.mubr.msk.bf16.gmra.mrb[4].mxu0 %vm1120_vm10, %v9288_v51  ;;  %v2541_v51 = vshll.u32 %v762_v36, 16 }
 0x1cc   : > { %7668 = vmatprep.mubr.msk.bf16.mxu0 %vm1120_vm10, %v9291_v56  ;;  %v2546_v56 = vshrl.u32 %v763_v7, 16 }
 0x1d3   : > { %7669 = vmatmul.mubr.msk.bf16.gmra.mrb[8].mxu0 %vm1120_vm10, %v9294_v58  ;;  %v2549_v58 = vshll.u32 %v763_v7, 16 }
 0x1d4   : > { %7672 = vmatprep.mubr.msk.bf16.mxu0 %vm1120_vm10, %v9299_v60  ;;  %v2540_v60 = vrot.slane %v2538_v40, 3 }
 0x1d5   : > { %v2551_v22 = vrot.slane %v2549_v58, 4 }
 0x1db   : > { %7673 = vmatmul.mubr.msk.bf16.gmra.mrb[12].mxu0 %vm1120_vm10, %v9311_v4  ;;  %v2543_v4 = vrot.slane %v2541_v51, 4 }
 0x1dc   : > { %7676 = vmatprep.mubr.msk.bf16.mxu0 %vm1120_vm10, %v9558_v2  ;;  %v2548_v2 = vrot.slane %v2546_v56, 3 }
 0x1e3   : > { %7677 = vmatmul.mubr.msk.bf16.gmra.mrb[16].mxu0 %vm1120_vm10, %v9576_v11  ;;  %v2544_v11 = vor.u32 %v2543_v4, %v2540_v60 }
 0x1e4   : > { %7680 = vmatprep.mubr.msk.bf16.mxu0 %vm1120_vm10, %v9579_v0  ;;  %v2552_v0 = vor.u32 %v2551_v22, %v2548_v2  ;;  %v6989_v2 = vld [vmem:[%s11984_s5 + $0x2] sm:$0x3] }
 0x1e5   : > { %8587 = vmatprep.subr.msk.bf16.mxu1 %vm1169_vm0, %v6989_v2 }
 0x1eb   : > { %7681 = vmatmul.mubr.msk.bf16.gmra.mrb[20].mxu0 %vm1120_vm10, %v9598_v54  ;;  %v2553_v54 = vsel %vm672_vm6, %v2544_v11, %v2552_v0 }
 0x1ec   : > { %7684 = vmatprep.mubr.msk.bf16.mxu0 %vm1120_vm10, %v9609_v33  ;;  %v2974_v33 = vsel %vm1169_vm0, %v6969_v10, 0 }
 0x1f3   : > { %7685 = vmatmul.mubr.msk.bf16.gmra.mrb[24].mxu0 %vm1120_vm10, %v9616_v28  ;;  %v2757_v28 = vrot.slane %v762_v36, 4 }
 0x1f4   : > { %7688 = vmatprep.mubr.msk.bf16.mxu0 %vm1120_vm10, %v9710_v52 }
 0x1f5   : > { %v2759_v17 = vsel %vm1069_vm9, %v2757_v28, %v2758_v55 }
 0x1fb   : > { %7689 = vmatmul.mubr.msk.bf16.gmra.mrb[28].mxu0 %vm1120_vm10, %v2553_v54 }
 0x1fc   : > { %7694 = vmatprep.mubr.msk.bf16.mxu0 %vm1120_vm10, %v12333_v12 }
 0x203   : > { %7695 = vmatmul.mubr.msk.bf16.vlgmr.msra.gmra.mrb[0].mxu0 %vm1120_vm10, %v12334_v44 }
 0x204   : > { %7727 = vmatpush3.bf16.msra.mxu0 %v2974_v33  ;;  %7698 = vmatprep.mubr.msk.bf16.mxu0 %vm1120_vm10, %v12335_v3  ;;  %v4351_v33 = vsel %vm1169_vm0, %v6989_v2, 0 }
 0x205   : > { %7761 = vmatpush3.bf16.msra.mxu1 %v4351_v33 }
 0x20b   : > { %7699 = vmatmul.mubr.msk.bf16.gmra.mrb[4].mxu0 %vm1120_vm10, %v12336_v45 }
 0x20c   : > { %7702 = vmatprep.mubr.msk.bf16.mxu0 %vm1120_vm10, %v12337_v32 }
 0x213   : > { %7703 = vmatmul.mubr.msk.bf16.gmra.mrb[8].mxu0 %vm1120_vm10, %v12338_v13 }
 0x214   : > { %7706 = vmatprep.mubr.msk.bf16.mxu0 %vm1120_vm10, %v12339_v18 }
 0x21b   : > { %7707 = vmatmul.mubr.msk.bf16.gmra.mrb[12].mxu0 %vm1120_vm10, %v12340_v16 }
 0x21c   : > { %7710 = vmatprep.mubr.msk.bf16.mxu0 %vm1120_vm10, %v12341_v47 }
 0x223   : > { %7711 = vmatmul.mubr.msk.bf16.gmra.mrb[16].mxu0 %vm1120_vm10, %v12342_v6 }
 0x224   : > { %7714 = vmatprep.mubr.msk.bf16.mxu0 %vm1120_vm10, %v12343_v37 }
 0x22b   : > { %7715 = vmatmul.mubr.msk.bf16.gmra.mrb[20].mxu0 %vm1120_vm10, %v12344_v38 }
 0x22c   : > { %7718 = vmatprep.mubr.msk.bf16.mxu0 %vm1120_vm10, %v12345_v42 }
 0x233   : > { %7719 = vmatmul.mubr.msk.bf16.gmra.mrb[24].mxu0 %vm1120_vm10, %v9232_v31  ;;  %v2961_v31 = vrot.slane %v2538_v40, 4 }
 0x234   : > { %7722 = vmatprep.mubr.msk.bf16.mxu0 %vm1120_vm10, %v9756_v50 }
 0x23b   : > { %7723 = vmatmul.mubr.msk.bf16.gmra.mrb[28].mxu0 %vm1120_vm10, %v2759_v17 }
 0x23c   : > { %7728 = vmatprep.mubr.msk.bf16.mxu0 %vm1120_vm10, %v9395_v25  ;;  %v2962_v25 = vrot.slane %v2541_v51, 5 }
 0x243   : > { %7729 = vmatmul.mubr.msk.bf16.vlgmr.msra.gmra.mrb[0].mxu0 %vm1120_vm10, %v9404_v14  ;;  %v2964_v14 = vrot.slane %v2546_v56, 4 }
 0x244   : > { %7732 = vmatprep.mubr.msk.bf16.mxu0 %vm1120_vm10, %v9419_v5  ;;  %v2965_v5 = vrot.slane %v2549_v58, 5 }
 0x24b   : > { %7733 = vmatmul.mubr.msk.bf16.gmra.mrb[4].mxu0 %vm1120_vm10, %v9432_v57  ;;  %v2963_v57 = vor.u32 %v2962_v25, %v2961_v31 }
 0x24c   : > { %7736 = vmatprep.mubr.msk.bf16.mxu0 %vm1120_vm10, %v9443_v19  ;;  %v2966_v19 = vor.u32 %v2965_v5, %v2964_v14 }
 0x253   : > { %7737 = vmatmul.mubr.msk.bf16.gmra.mrb[8].mxu0 %vm1120_vm10, %v9450_v34  ;;  %v2967_v34 = vsel %vm1546_vm11, %v2963_v57, %v2966_v19 }
 0x254   : > { %7740 = vmatprep.mubr.msk.bf16.mxu0 %vm1120_vm10, %v9467_v15  ;;  %v9913_v15 = vld [vmem:[%s11981_s2] ss:$0 sm:$0xff] }
 0x25b   : > { %7741 = vmatmul.mubr.msk.bf16.gmra.mrb[12].mxu0 %vm1120_vm10, %v9480_v63 }
 0x25c   : > { %7744 = vmatprep.mubr.msk.bf16.mxu0 %vm1120_vm10, %v9491_v9 }
 0x263   : > { %7745 = vmatmul.mubr.msk.bf16.gmra.mrb[16].mxu0 %vm1120_vm10, %v9498_v39 }
 0x264   : > { %7748 = vmatprep.mubr.msk.bf16.mxu0 %vm1120_vm10, %v9513_v48 }
 0x26b   : > { %7749 = vmatmul.mubr.msk.bf16.gmra.mrb[20].mxu0 %vm1120_vm10, %v9532_v30 }
 0x26c   : > { %7752 = vmatprep.mubr.msk.bf16.mxu0 %vm1120_vm10, %v9543_v27 }
 0x273   : > { %7753 = vmatmul.mubr.msk.bf16.gmra.mrb[24].mxu0 %vm1120_vm10, %v9552_v26 }
 0x274   : > { %7756 = vmatprep.mubr.msk.bf16.mxu0 %vm1120_vm10, %v9804_v1 }
 0x27b   : > { %7757 = vmatmul.mubr.msk.bf16.gmra.mrb[28].mxu0 %vm1120_vm10, %v2967_v34 }
 0x316   : > { %v7730_v63 = vpop.f32.mrb[0].mxu0 }
 0x317   : > { %v3010_v9 = vpop.f32.mrb[1].mxu0  ;;  %v9916_v39 = vadd.f32 %v7730_v63, %v9913_v15 }
 0x318   : > { %v9919_v48 = vadd.f32 %v9913_v15, %v3010_v9  ;;  %v7731_v30 = vpop.f32.mrb[2].mxu0 }
 0x319   : > { %v3013_v27 = vpop.f32.mrb[3].mxu0  ;;  %v9924_v59 = vadd.f32 %v7731_v30, %v9913_v15  ;;  %v3279_v12 = vmul.f32 %v9916_v39, %v9916_v39  ;;  %v3211_v13 = vsel %vm1120_vm10, %v9916_v39, 0.0 }
 0x31a   : > { %v3277_v26 = vmul.f32 %v9919_v48, %v9919_v48  ;;  %v9927_v52 = vadd.f32 %v9913_v15, %v3013_v27  ;;  %v3208_v44 = vsel %vm1120_vm10, %v9919_v48, 0.0 }
 0x31b   : > { %v3280_v16 = vmul.f32 %v9924_v59, %v9924_v59  ;;  %v3312_v42 = vsel %vm1120_vm10, %v3279_v12, 0.0  ;;  %v3213_v20 = vsel %vm1120_vm10, %v9924_v59, 0.0 }
 0x31c   : > { %v3209_v3 = vsel %vm1120_vm10, %v9927_v52, 0.0  ;;  %v3278_v45 = vmul.f32 %v9927_v52, %v9927_v52  ;;  %v3309_v18 = vsel %vm1120_vm10, %v3277_v26, 0.0 }
 0x31d   : > { %v3210_v32 = vadd.f32 %v3209_v3, %v3208_v44  ;;  %v3314_v29 = vsel %vm1120_vm10, %v3280_v16, 0.0 }
 0x31e   : > { %v3310_v47 = vsel %vm1120_vm10, %v3278_v45, 0.0  ;;  %v7734_v6 = vpop.f32.mrb[4].mxu0 }
 0x31f   : > { %v3212_v37 = vadd.f32 %v3211_v13, %v3210_v32  ;;  %v3311_v53 = vadd.f32 %v3310_v47, %v3309_v18  ;;  %v3026_v38 = vpop.f32.mrb[5].mxu0  ;;  %v9950_v23 = vadd.f32 %v7734_v6, %v9913_v15 }
 0x320   : > { %v9947_v61 = vadd.f32 %v9913_v15, %v3026_v38  ;;  %v7735_v50 = vpop.f32.mrb[6].mxu0 }
 0x321   : > { %v3313_v46 = vadd.f32 %v3312_v42, %v3311_v53  ;;  %v3214_v41 = vadd.f32 %v3213_v20, %v3212_v37  ;;  %v3029_v43 = vpop.f32.mrb[7].mxu0  ;;  %v9961_v10 = vadd.f32 %v7735_v50, %v9913_v15  ;;  %v3283_v40 = vmul.f32 %v9950_v23, %v9950_v23 }
 0x322   : > { %v3215_v62 = vsel %vm1120_vm10, %v9947_v61, 0.0  ;;  %v3281_v8 = vmul.f32 %v9947_v61, %v9947_v61  ;;  %v9958_v49 = vadd.f32 %v9913_v15, %v3029_v43  ;;  %v3219_v60 = vsel %vm1120_vm10, %v9950_v23, 0.0 }
 0x323   : > { %v3216_v1 = vadd.f32 %v3215_v62, %v3214_v41  ;;  %v3315_v24 = vadd.f32 %v3314_v29, %v3313_v46  ;;  %v3284_v22 = vmul.f32 %v9961_v10, %v9961_v10  ;;  %v3221_v28 = vsel %vm1120_vm10, %v9961_v10, 0.0 }
 0x324   : > { %v3316_v36 = vsel %vm1120_vm10, %v3281_v8, 0.0  ;;  %v3217_v7 = vsel %vm1120_vm10, %v9958_v49, 0.0  ;;  %v3282_v58 = vmul.f32 %v9958_v49, %v9958_v49  ;;  %v3320_v25 = vsel %vm1120_vm10, %v3283_v40, 0.0 }
 0x325   : > { %v3317_v51 = vadd.f32 %v3316_v36, %v3315_v24  ;;  %v3218_v56 = vadd.f32 %v3217_v7, %v3216_v1  ;;  %v3322_v30 = vsel %vm1120_vm10, %v3284_v22, 0.0 }
 0x326   : > { %v7738_v4 = vpop.f32.mrb[8].mxu0  ;;  %v3318_v0 = vsel %vm1120_vm10, %v3282_v58, 0.0 }
 0x327   : > { %v3220_v11 = vadd.f32 %v3219_v60, %v3218_v56  ;;  %v3042_v54 = vpop.f32.mrb[9].mxu0  ;;  %v3319_v55 = vadd.f32 %v3318_v0, %v3317_v51  ;;  %v9987_v14 = vadd.f32 %v7738_v4, %v9913_v15 }
 0x328   : > { %v9983_v17 = vadd.f32 %v9913_v15, %v3042_v54  ;;  %v7739_v31 = vpop.f32.mrb[10].mxu0 }
 0x329   : > { %v3222_v5 = vadd.f32 %v3221_v28, %v3220_v11  ;;  %v3045_v57 = vpop.f32.mrb[11].mxu0  ;;  %v3321_v19 = vadd.f32 %v3320_v25, %v3319_v55  ;;  %v9998_v26 = vadd.f32 %v7739_v31, %v9913_v15  ;;  %v3287_v32 = vmul.f32 %v9987_v14, %v9987_v14 }
 0x32a   : > { %v3223_v34 = vsel %vm1120_vm10, %v9983_v17, 0.0  ;;  %v3285_v63 = vmul.f32 %v9983_v17, %v9983_v17  ;;  %v9994_v9 = vadd.f32 %v9913_v15, %v3045_v57  ;;  %v3227_v18 = vsel %vm1120_vm10, %v9987_v14, 0.0 }
 0x32b   : > { %v3224_v27 = vadd.f32 %v3223_v34, %v3222_v5  ;;  %v3323_v12 = vadd.f32 %v3322_v30, %v3321_v19  ;;  %v3288_v37 = vmul.f32 %v9998_v26, %v9998_v26  ;;  %v3229_v42 = vsel %vm1120_vm10, %v9998_v26, 0.0 }
 0x32c   : > { %v3324_v44 = vsel %vm1120_vm10, %v3285_v63, 0.0  ;;  %v3225_v3 = vsel %vm1120_vm10, %v9994_v9, 0.0  ;;  %v3286_v45 = vmul.f32 %v9994_v9, %v9994_v9  ;;  %v3328_v41 = vsel %vm1120_vm10, %v3287_v32, 0.0  ;;  %v10063_v32 = vld [vmem:[%s11984_s5] sm:$0x3] }
 0x32d   : > { %v3226_v13 = vadd.f32 %v3225_v3, %v3224_v27  ;;  %v3325_v16 = vadd.f32 %v3324_v44, %v3323_v12  ;;  %v3330_v7 = vsel %vm1120_vm10, %v3288_v37, 0.0  ;;  %8588 = vmatprep.subr.msk.bf16.mxu1 %vm1169_vm0, %v10063_v32 }
 0x32e   : > { %v3326_v47 = vsel %vm1120_vm10, %v3286_v45, 0.0  ;;  %v7742_v6 = vpop.f32.mrb[12].mxu0 }
 0x32f   : > { %v3228_v53 = vadd.f32 %v3227_v18, %v3226_v13  ;;  %v3058_v38 = vpop.f32.mrb[13].mxu0  ;;  %v3327_v20 = vadd.f32 %v3326_v47, %v3325_v16  ;;  %v10019_v43 = vadd.f32 %v7742_v6, %v9913_v15 }
 0x330   : > { %v10015_v50 = vadd.f32 %v9913_v15, %v3058_v38  ;;  %v7743_v46 = vpop.f32.mrb[14].mxu0 }
 0x331   : > { %v3230_v29 = vadd.f32 %v3229_v42, %v3228_v53  ;;  %v3061_v62 = vpop.f32.mrb[15].mxu0  ;;  %v3329_v8 = vadd.f32 %v3328_v41, %v3327_v20  ;;  %v10030_v51 = vadd.f32 %v7743_v46, %v9913_v15  ;;  %v3291_v2 = vmul.f32 %v10019_v43, %v10019_v43 }
 0x332   : > { %v3231_v1 = vsel %vm1120_vm10, %v10015_v50, 0.0  ;;  %v3289_v24 = vmul.f32 %v10015_v50, %v10015_v50  ;;  %v10026_v36 = vadd.f32 %v9913_v15, %v3061_v62  ;;  %v3235_v11 = vsel %vm1120_vm10, %v10019_v43, 0.0 }
 0x333   : > { %v3232_v40 = vadd.f32 %v3231_v1, %v3230_v29  ;;  %v3331_v56 = vadd.f32 %v3330_v7, %v3329_v8  ;;  %v3292_v28 = vmul.f32 %v10030_v51, %v10030_v51  ;;  %v3237_v25 = vsel %vm1120_vm10, %v10030_v51, 0.0 }
 0x334   : > { %v3332_v58 = vsel %vm1120_vm10, %v3289_v24, 0.0  ;;  %v3233_v60 = vsel %vm1120_vm10, %v10026_v36, 0.0  ;;  %v3290_v4 = vmul.f32 %v10026_v36, %v10026_v36  ;;  %v3336_v34 = vsel %vm1120_vm10, %v3291_v2, 0.0 }
 0x335   : > { %v3234_v22 = vadd.f32 %v3233_v60, %v3232_v40  ;;  %v3333_v0 = vadd.f32 %v3332_v58, %v3331_v56  ;;  %v3338_v13 = vsel %vm1120_vm10, %v3292_v28, 0.0 }
 0x336   : > { %v3334_v54 = vsel %vm1120_vm10, %v3290_v4, 0.0  ;;  %v7746_v33 = vpop.f32.mrb[16].mxu0 }
 0x337   : > { %v3236_v55 = vadd.f32 %v3235_v11, %v3234_v22  ;;  %v3074_v31 = vpop.f32.mrb[17].mxu0  ;;  %v3335_v5 = vadd.f32 %v3334_v54, %v3333_v0  ;;  %v10051_v63 = vadd.f32 %v7746_v33, %v9913_v15 }
 0x338   : > { %v10047_v57 = vadd.f32 %v9913_v15, %v3074_v31  ;;  %v7747_v19 = vpop.f32.mrb[18].mxu0 }
 0x339   : > { %v3238_v30 = vadd.f32 %v3237_v25, %v3236_v55  ;;  %v3077_v27 = vpop.f32.mrb[19].mxu0  ;;  %v3337_v12 = vadd.f32 %v3336_v34, %v3335_v5  ;;  %v10067_v16 = vadd.f32 %v7747_v19, %v9913_v15  ;;  %v3295_v38 = vmul.f32 %v10051_v63, %v10051_v63 }
 0x33a   : > { %v3239_v44 = vsel %vm1120_vm10, %v10047_v57, 0.0  ;;  %v3293_v3 = vmul.f32 %v10047_v57, %v10047_v57  ;;  %v10058_v45 = vadd.f32 %v9913_v15, %v3077_v27  ;;  %v3243_v20 = vsel %vm1120_vm10, %v10051_v63, 0.0 }
 0x33b   : > { %v3240_v18 = vadd.f32 %v3239_v44, %v3238_v30  ;;  %v3339_v47 = vadd.f32 %v3338_v13, %v3337_v12  ;;  %v3296_v62 = vmul.f32 %v10067_v16, %v10067_v16  ;;  %v3245_v24 = vsel %vm1120_vm10, %v10067_v16, 0.0 }
 0x33c   : > { %v3340_v6 = vsel %vm1120_vm10, %v3293_v3, 0.0  ;;  %v3241_v37 = vsel %vm1120_vm10, %v10058_v45, 0.0  ;;  %v3294_v53 = vmul.f32 %v10058_v45, %v10058_v45  ;;  %v3344_v58 = vsel %vm1120_vm10, %v3295_v38, 0.0 }
 0x33d   : > { %v3242_v42 = vadd.f32 %v3241_v37, %v3240_v18  ;;  %v3341_v46 = vadd.f32 %v3340_v6, %v3339_v47  ;;  %v3346_v33 = vsel %vm1120_vm10, %v3296_v62, 0.0 }
 0x33e   : > { %v3342_v41 = vsel %vm1120_vm10, %v3294_v53, 0.0  ;;  %v7750_v29 = vpop.f32.mrb[20].mxu0 }
 0x33f   : > { %v3244_v8 = vadd.f32 %v3243_v20, %v3242_v42  ;;  %v3090_v1 = vpop.f32.mrb[21].mxu0  ;;  %v3343_v7 = vadd.f32 %v3342_v41, %v3341_v46  ;;  %v10090_v60 = vadd.f32 %v7750_v29, %v9913_v15 }
 0x340   : > { %v10086_v40 = vadd.f32 %v9913_v15, %v3090_v1  ;;  %v7751_v56 = vpop.f32.mrb[22].mxu0 }
 0x341   : > { %v3246_v4 = vadd.f32 %v3245_v24, %v3244_v8  ;;  %v3093_v2 = vpop.f32.mrb[23].mxu0  ;;  %v3345_v22 = vadd.f32 %v3344_v58, %v3343_v7  ;;  %v10101_v55 = vadd.f32 %v7751_v56, %v9913_v15  ;;  %v3299_v34 = vmul.f32 %v10090_v60, %v10090_v60 }
 0x342   : > { %v3247_v11 = vsel %vm1120_vm10, %v10086_v40, 0.0  ;;  %v3297_v0 = vmul.f32 %v10086_v40, %v10086_v40  ;;  %v10097_v54 = vadd.f32 %v9913_v15, %v3093_v2  ;;  %v3251_v27 = vsel %vm1120_vm10, %v10090_v60, 0.0 }
 0x343   : > { %v3248_v28 = vadd.f32 %v3247_v11, %v3246_v4  ;;  %v3347_v31 = vadd.f32 %v3346_v33, %v3345_v22  ;;  %v3300_v13 = vmul.f32 %v10101_v55, %v10101_v55  ;;  %v3253_v6 = vsel %vm1120_vm10, %v10101_v55, 0.0 }
 0x344   : > { %v3348_v25 = vsel %vm1120_vm10, %v3297_v0, 0.0  ;;  %v3249_v5 = vsel %vm1120_vm10, %v10097_v54, 0.0  ;;  %v3298_v19 = vmul.f32 %v10097_v54, %v10097_v54  ;;  %v3352_v42 = vsel %vm1120_vm10, %v3299_v34, 0.0 }
 0x345   : > { %v3250_v30 = vadd.f32 %v3249_v5, %v3248_v28  ;;  %v3349_v12 = vadd.f32 %v3348_v25, %v3347_v31  ;;  %v3354_v24 = vsel %vm1120_vm10, %v3300_v13, 0.0 }
 0x346   : > { %v3350_v44 = vsel %vm1120_vm10, %v3298_v19, 0.0  ;;  %v7754_v3 = vpop.f32.mrb[24].mxu0 }
 0x347   : > { %v3252_v18 = vadd.f32 %v3251_v27, %v3250_v30  ;;  %v3106_v47 = vpop.f32.mrb[25].mxu0  ;;  %v3351_v37 = vadd.f32 %v3350_v44, %v3349_v12  ;;  %v10122_v20 = vadd.f32 %v7754_v3, %v9913_v15 }
 0x348   : > { %v10118_v53 = vadd.f32 %v9913_v15, %v3106_v47  ;;  %v7755_v38 = vpop.f32.mrb[26].mxu0 }
 0x349   : > { %v3254_v46 = vadd.f32 %v3253_v6, %v3252_v18  ;;  %v3109_v41 = vpop.f32.mrb[27].mxu0  ;;  %v3353_v29 = vadd.f32 %v3352_v42, %v3351_v37  ;;  %v10133_v56 = vadd.f32 %v7755_v38, %v9913_v15  ;;  %v3303_v11 = vmul.f32 %v10122_v20, %v10122_v20 }
 0x34a   : > { %v3255_v62 = vsel %vm1120_vm10, %v10118_v53, 0.0  ;;  %v3301_v8 = vmul.f32 %v10118_v53, %v10118_v53  ;;  %v10129_v1 = vadd.f32 %v9913_v15, %v3109_v41  ;;  %v3259_v33 = vsel %vm1120_vm10, %v10122_v20, 0.0 }
 0x34b   : > { %v3256_v7 = vadd.f32 %v3255_v62, %v3254_v46  ;;  %v3355_v58 = vadd.f32 %v3354_v24, %v3353_v29  ;;  %v3304_v5 = vmul.f32 %v10133_v56, %v10133_v56  ;;  %v3261_v30 = vsel %vm1120_vm10, %v10133_v56, 0.0 }
 0x34c   : > { %v3356_v4 = vsel %vm1120_vm10, %v3301_v8, 0.0  ;;  %v3257_v2 = vsel %vm1120_vm10, %v10129_v1, 0.0  ;;  %v3302_v22 = vmul.f32 %v10129_v1, %v10129_v1  ;;  %v3360_v3 = vsel %vm1120_vm10, %v3303_v11, 0.0 }
 0x34d   : > { %v3258_v0 = vadd.f32 %v3257_v2, %v3256_v7  ;;  %v3357_v28 = vadd.f32 %v3356_v4, %v3355_v58  ;;  %v3362_v46 = vsel %vm1120_vm10, %v3304_v5, 0.0 }
 0x34e   : > { %v3358_v31 = vsel %vm1120_vm10, %v3302_v22, 0.0  ;;  %v7758_v25 = vpop.f32.mrb[28].mxu0 }
 0x34f   : > { %v3260_v19 = vadd.f32 %v3259_v33, %v3258_v0  ;;  %v3122_v34 = vpop.f32.mrb[29].mxu0  ;;  %v3359_v27 = vadd.f32 %v3358_v31, %v3357_v28  ;;  %v10154_v13 = vadd.f32 %v7758_v25, %v9913_v15 }
 0x350   : > { %v10150_v12 = vadd.f32 %v9913_v15, %v3122_v34  ;;  %v7759_v44 = vpop.f32.mrb[30].mxu0 }
 0x351   : > { %v3262_v18 = vadd.f32 %v3261_v30, %v3260_v19  ;;  %v3125_v47 = vpop.f32.mrb[31].mxu0  ;;  %v3361_v6 = vadd.f32 %v3360_v3, %v3359_v27  ;;  %v10165_v29 = vadd.f32 %v7759_v44, %v9913_v15  ;;  %v3307_v58 = vmul.f32 %v10154_v13, %v10154_v13 }
 0x352   : > { %v3263_v37 = vsel %vm1120_vm10, %v10150_v12, 0.0  ;;  %v3305_v38 = vmul.f32 %v10150_v12, %v10150_v12  ;;  %v10161_v42 = vadd.f32 %v9913_v15, %v3125_v47  ;;  %v3267_v2 = vsel %vm1120_vm10, %v10154_v13, 0.0 }
 0x353   : > { %v3264_v41 = vadd.f32 %v3263_v37, %v3262_v18  ;;  %v3363_v62 = vadd.f32 %v3362_v46, %v3361_v6  ;;  %v3308_v11 = vmul.f32 %v10165_v29, %v10165_v29  ;;  %v3269_v33 = vsel %vm1120_vm10, %v10165_v29, 0.0 }
 0x354   : > { %v3364_v8 = vsel %vm1120_vm10, %v3305_v38, 0.0  ;;  %v3265_v24 = vsel %vm1120_vm10, %v10161_v42, 0.0  ;;  %v3306_v7 = vmul.f32 %v10161_v42, %v10161_v42  ;;  %v3368_v31 = vsel %vm1120_vm10, %v3307_v58, 0.0 }
 0x355   : > { %v3266_v4 = vadd.f32 %v3265_v24, %v3264_v41  ;;  %v3365_v22 = vadd.f32 %v3364_v8, %v3363_v62  ;;  %v3370_v19 = vsel %vm1120_vm10, %v3308_v11, 0.0 }
 0x356   : > { %v3366_v15 = vsel %vm1120_vm10, %v3306_v7, 0.0 }
 0x357   : > { %v3268_v0 = vadd.f32 %v3267_v2, %v3266_v4  ;;  %v3367_v28 = vadd.f32 %v3366_v15, %v3365_v22 }
 0x359   : > { %v3270_v25 = vadd.f32 %v3269_v33, %v3268_v0  ;;  %v3369_v5 = vadd.f32 %v3368_v31, %v3367_v28 }
 0x35b   : > { %v3271_v34 = vrot.slane %v3270_v25, 4  ;;  %v3371_v30 = vadd.f32 %v3370_v19, %v3369_v5 }
 0x35d   : > { %v3272_v27 = vadd.f32 %v3271_v34, %v3270_v25  ;;  %v3372_v44 = vrot.slane %v3371_v30, 4  ;;  %v10259_v34 = vld [vmem:[%s11983_s4] ss:$0 sm:$0xff] }
 0x35f   : > { %v3273_v3 = vrot.slane %v3272_v27, 2  ;;  %v3373_v18 = vadd.f32 %v3372_v44, %v3371_v30 }
 0x361   : > { %v3274_v47 = vadd.f32 %v3273_v3, %v3272_v27  ;;  %v3374_v6 = vrot.slane %v3373_v18, 2 }
 0x363   : > { %v3275_v37 = vrot.slane %v3274_v47, 1  ;;  %v3375_v38 = vadd.f32 %v3374_v6, %v3373_v18 }
 0x365   : > { %v3276_v46 = vadd.f32 %v3275_v37, %v3274_v47  ;;  %v3376_v41 = vrot.slane %v3375_v38, 1 }
 0x367   : > { %v10183_v62 = vmul.f32 0.00390625, %v3276_v46  ;;  %v3377_v8 = vadd.f32 %v3376_v41, %v3375_v38 }
 0x369   : > { %v3380_v24 = vmul.f32 %v10183_v62, %v10183_v62  ;;  %v3411_v7 = vsub.f32 %v10150_v12, %v10183_v62  ;;  %v3412_v58 = vsub.f32 %v10161_v42, %v10183_v62  ;;  %v3379_v4 = vmul.f32 0.00390625, %v3377_v8 }
 0x36a   : > { %v3392_v22 = vsub.f32 %v9994_v9, %v10183_v62  ;;  %v3395_v15 = vsub.f32 %v10015_v50, %v10183_v62  ;;  %v3396_v11 = vsub.f32 %v10026_v36, %v10183_v62  ;;  %v3397_v0 = vsub.f32 %v10019_v43, %v10183_v62 }
 0x36b   : > { %v3381_v2 = vsub.f32 %v3379_v4, %v3380_v24  ;;  %v3398_v12 = vsub.f32 %v10030_v51, %v10183_v62  ;;  %v3399_v42 = vsub.f32 %v10047_v57, %v10183_v62  ;;  %v3400_v28 = vsub.f32 %v10058_v45, %v10183_v62 }
 0x36c   : > { %v3401_v9 = vsub.f32 %v10051_v63, %v10183_v62  ;;  %v3402_v50 = vsub.f32 %v10067_v16, %v10183_v62  ;;  %v3403_v36 = vsub.f32 %v10086_v40, %v10183_v62  ;;  %v3404_v43 = vsub.f32 %v10097_v54, %v10183_v62 }
 0x36d   : > { %v3382_v33 = vmax.f32 %v3381_v2, 0.0  ;;  %v3405_v51 = vsub.f32 %v10090_v60, %v10183_v62  ;;  %v3406_v57 = vsub.f32 %v10101_v55, %v10183_v62  ;;  %v3407_v45 = vsub.f32 %v10118_v53, %v10183_v62 }
 0x36e   : > { %v3408_v63 = vsub.f32 %v10129_v1, %v10183_v62  ;;  %v3409_v16 = vsub.f32 %v10122_v20, %v10183_v62  ;;  %v3410_v40 = vsub.f32 %v10133_v56, %v10183_v62  ;;  %v3413_v54 = vsub.f32 %v10154_v13, %v10183_v62 }
 0x36f   : > { %v3415_v31 = vadd.f32 1e-05, %v3382_v33  ;;  %v3414_v60 = vsub.f32 %v10165_v29, %v10183_v62  ;;  %v3383_v55 = vsub.f32 %v9919_v48, %v10183_v62  ;;  %v3384_v53 = vsub.f32 %v9927_v52, %v10183_v62  ;;  %v10246_v48 = vld [vmem:[%s11982_s3] ss:$0 sm:$0xff] }
 0x370   : > { %v3385_v1 = vsub.f32 %v9916_v39, %v10183_v62  ;;  %v3386_v20 = vsub.f32 %v9924_v59, %v10183_v62  ;;  %v3387_v56 = vsub.f32 %v9947_v61, %v10183_v62  ;;  %v3388_v13 = vsub.f32 %v9958_v49, %v10183_v62 }
 0x371   : > { %8604 = vrsqrt.f32 %v3415_v31  ;;  %v3389_v29 = vsub.f32 %v9950_v23, %v10183_v62  ;;  %v3390_v39 = vsub.f32 %v9961_v10, %v10183_v62  ;;  %v3391_v59 = vsub.f32 %v9983_v17, %v10183_v62 }
 0x372   : > { %v3393_v52 = vsub.f32 %v9987_v14, %v10183_v62  ;;  %v3394_v61 = vsub.f32 %v9998_v26, %v10183_v62 }
 0x37b   : > { %v8605_v25 = vpop.eup %8604 }
 0x37c   : > { %v3445_v49 = vmul.f32 %v8605_v25, %v3411_v7  ;;  %v3446_v23 = vmul.f32 %v8605_v25, %v3412_v58  ;;  %v3417_v5 = vmul.f32 %v8605_v25, %v3383_v55  ;;  %v3418_v19 = vmul.f32 %v8605_v25, %v3384_v53 }
 0x37d   : > { %v3419_v30 = vmul.f32 %v8605_v25, %v3385_v1  ;;  %v3420_v10 = vmul.f32 %v8605_v25, %v3386_v20  ;;  %v3421_v27 = vmul.f32 %v8605_v25, %v3387_v56  ;;  %v3422_v44 = vmul.f32 %v8605_v25, %v3388_v13 }
 0x37e   : > { %v3484_v17 = vmul.f32 %v10246_v48, %v3445_v49  ;;  %v3485_v14 = vmul.f32 %v10246_v48, %v3446_v23  ;;  %v3423_v3 = vmul.f32 %v8605_v25, %v3389_v29  ;;  %v3424_v18 = vmul.f32 %v8605_v25, %v3390_v39 }
 0x37f   : > { %v3425_v26 = vmul.f32 %v8605_v25, %v3391_v59  ;;  %v3426_v47 = vmul.f32 %v8605_v25, %v3392_v22  ;;  %v3427_v6 = vmul.f32 %v8605_v25, %v3393_v52  ;;  %v3428_v37 = vmul.f32 %v8605_v25, %v3394_v61 }
 0x380   : > { %v3523_v38 = vadd.f32 %v10259_v34, %v3484_v17  ;;  %v3524_v46 = vadd.f32 %v10259_v34, %v3485_v14  ;;  %v3429_v41 = vmul.f32 %v8605_v25, %v3395_v15  ;;  %v3430_v62 = vmul.f32 %v8605_v25, %v3396_v11 }
 0x381   : > { %v3431_v8 = vmul.f32 %v8605_v25, %v3397_v0  ;;  %v3432_v24 = vmul.f32 %v8605_v25, %v3398_v12  ;;  %v3433_v7 = vmul.f32 %v8605_v25, %v3399_v42  ;;  %v3434_v58 = vmul.f32 %v8605_v25, %v3400_v28 }
 0x382   : > { %v3555_v4 = vmax.f32 %v3523_v38, 0.0  ;;  %v3556_v2 = vmax.f32 %v3524_v46, 0.0  ;;  %v3435_v33 = vmul.f32 %v8605_v25, %v3401_v9  ;;  %v3436_v31 = vmul.f32 %v8605_v25, %v3402_v50 }
 0x383   : > { %v3437_v55 = vmul.f32 %v8605_v25, %v3403_v36  ;;  %v3438_v53 = vmul.f32 %v8605_v25, %v3404_v43  ;;  %v3439_v1 = vmul.f32 %v8605_v25, %v3405_v51  ;;  %v3440_v22 = vmul.f32 %v8605_v25, %v3406_v57 }
 0x384   : > { %v3573_v20 = vpack.c.bf16 %v3556_v2, %v3555_v4  ;;  %v3441_v56 = vmul.f32 %v8605_v25, %v3407_v45  ;;  %v3442_v13 = vmul.f32 %v8605_v25, %v3408_v63  ;;  %v3443_v29 = vmul.f32 %v8605_v25, %v3409_v16 }
 0x385   : > { %v3444_v39 = vmul.f32 %v8605_v25, %v3410_v40  ;;  %v3447_v59 = vmul.f32 %v8605_v25, %v3413_v54  ;;  %v3448_v15 = vmul.f32 %v8605_v25, %v3414_v60  ;;  %v3456_v11 = vmul.f32 %v10246_v48, %v3417_v5 }
 0x386   : > { %v3605_v0 = vrot.slane %v3573_v20, 4  ;;  %v3457_v12 = vmul.f32 %v10246_v48, %v3418_v19  ;;  %v3458_v42 = vmul.f32 %v10246_v48, %v3419_v30  ;;  %v3459_v28 = vmul.f32 %v10246_v48, %v3420_v10 }
 0x387   : > { %v3460_v9 = vmul.f32 %v10246_v48, %v3421_v27  ;;  %v3461_v50 = vmul.f32 %v10246_v48, %v3422_v44  ;;  %v3462_v36 = vmul.f32 %v10246_v48, %v3423_v3  ;;  %v3463_v43 = vmul.f32 %v10246_v48, %v3424_v18 }
 0x388   : > { %3651 = vst.msk [vmem:[#allocation2 + $0xf0] sm:$0xf0] %vm431_vm1, %v3605_v0  ;;  %3657 = vst.msk [vmem:[#allocation2 + $0x110] sm:$0xf0] %vm431_vm1, %v3605_v0  ;;  %v3464_v51 = vmul.f32 %v10246_v48, %v3425_v26  ;;  %v3465_v57 = vmul.f32 %v10246_v48, %v3426_v47  ;;  %v3466_v45 = vmul.f32 %v10246_v48, %v3427_v6 }
 0x389   : > { %3652 = vst.msk [vmem:[#allocation2 + $0xf8] sm:$0xf] %vm433_vm2, %v3605_v0  ;;  %3658 = vst.msk [vmem:[#allocation2 + $0x118] sm:$0xf] %vm433_vm2, %v3605_v0  ;;  %v3467_v63 = vmul.f32 %v10246_v48, %v3428_v37  ;;  %v3468_v16 = vmul.f32 %v10246_v48, %v3429_v41  ;;  %v3469_v40 = vmul.f32 %v10246_v48, %v3430_v62 }
 0x38a   : > { %v3470_v54 = vmul.f32 %v10246_v48, %v3431_v8  ;;  %v3471_v60 = vmul.f32 %v10246_v48, %v3432_v24  ;;  %v3472_v25 = vmul.f32 %v10246_v48, %v3433_v7  ;;  %v3473_v52 = vmul.f32 %v10246_v48, %v3434_v58 }
 0x38b   : > { %v3474_v61 = vmul.f32 %v10246_v48, %v3435_v33  ;;  %v3475_v49 = vmul.f32 %v10246_v48, %v3436_v31  ;;  %v3476_v23 = vmul.f32 %v10246_v48, %v3437_v55  ;;  %v3477_v5 = vmul.f32 %v10246_v48, %v3438_v53 }
 0x38c   : > { %v3478_v19 = vmul.f32 %v10246_v48, %v3439_v1  ;;  %v3479_v30 = vmul.f32 %v10246_v48, %v3440_v22  ;;  %v3480_v10 = vmul.f32 %v10246_v48, %v3441_v56  ;;  %v3481_v27 = vmul.f32 %v10246_v48, %v3442_v13 }
 0x38d   : > { %v3482_v44 = vmul.f32 %v10246_v48, %v3443_v29  ;;  %v3483_v17 = vmul.f32 %v10246_v48, %v3444_v39  ;;  %v3486_v14 = vmul.f32 %v10246_v48, %v3447_v59  ;;  %v3487_v3 = vmul.f32 %v10246_v48, %v3448_v15 }
 0x38e   : > { %v3495_v18 = vadd.f32 %v10259_v34, %v3456_v11  ;;  %v3496_v26 = vadd.f32 %v10259_v34, %v3457_v12  ;;  %v3497_v47 = vadd.f32 %v10259_v34, %v3458_v42  ;;  %v3498_v6 = vadd.f32 %v10259_v34, %v3459_v28 }
 0x38f   : > { %v3499_v37 = vadd.f32 %v10259_v34, %v3460_v9  ;;  %v3500_v38 = vadd.f32 %v10259_v34, %v3461_v50  ;;  %v3501_v46 = vadd.f32 %v10259_v34, %v3462_v36  ;;  %v3502_v41 = vadd.f32 %v10259_v34, %v3463_v43 }
 0x390   : > { %v3503_v62 = vadd.f32 %v10259_v34, %v3464_v51  ;;  %v3504_v48 = vadd.f32 %v10259_v34, %v3465_v57  ;;  %v3505_v8 = vadd.f32 %v10259_v34, %v3466_v45  ;;  %v3506_v24 = vadd.f32 %v10259_v34, %v3467_v63 }
 0x391   : > { %v3507_v7 = vadd.f32 %v10259_v34, %v3468_v16  ;;  %v3508_v58 = vadd.f32 %v10259_v34, %v3469_v40  ;;  %v3509_v4 = vadd.f32 %v10259_v34, %v3470_v54  ;;  %v3510_v2 = vadd.f32 %v10259_v34, %v3471_v60 }
 0x392   : > { %v3511_v33 = vadd.f32 %v10259_v34, %v3472_v25  ;;  %v3512_v31 = vadd.f32 %v10259_v34, %v3473_v52  ;;  %v3513_v55 = vadd.f32 %v10259_v34, %v3474_v61  ;;  %v3514_v53 = vadd.f32 %v10259_v34, %v3475_v49 }
 0x393   : > { %v3515_v1 = vadd.f32 %v10259_v34, %v3476_v23  ;;  %v3516_v22 = vadd.f32 %v10259_v34, %v3477_v5  ;;  %v3517_v20 = vadd.f32 %v10259_v34, %v3478_v19  ;;  %v3518_v56 = vadd.f32 %v10259_v34, %v3479_v30 }
 0x394   : > { %v3519_v13 = vadd.f32 %v10259_v34, %v3480_v10  ;;  %v3520_v29 = vadd.f32 %v10259_v34, %v3481_v27  ;;  %v3521_v39 = vadd.f32 %v10259_v34, %v3482_v44  ;;  %v3522_v59 = vadd.f32 %v10259_v34, %v3483_v17 }
 0x395   : > { %v3525_v15 = vadd.f32 %v10259_v34, %v3486_v14  ;;  %v3526_v11 = vadd.f32 %v10259_v34, %v3487_v3  ;;  %v3527_v0 = vmax.f32 %v3495_v18, 0.0  ;;  %v3528_v12 = vmax.f32 %v3496_v26, 0.0 }
 0x396   : > { %v3529_v42 = vmax.f32 %v3497_v47, 0.0  ;;  %v3530_v28 = vmax.f32 %v3498_v6, 0.0  ;;  %v3531_v9 = vmax.f32 %v3499_v37, 0.0  ;;  %v3532_v50 = vmax.f32 %v3500_v38, 0.0 }
 0x397   : > { %v3533_v36 = vmax.f32 %v3501_v46, 0.0  ;;  %v3534_v43 = vmax.f32 %v3502_v41, 0.0  ;;  %v3535_v51 = vmax.f32 %v3503_v62, 0.0  ;;  %v3536_v57 = vmax.f32 %v3504_v48, 0.0 }
 0x398   : > { %v3537_v45 = vmax.f32 %v3505_v8, 0.0  ;;  %v3538_v63 = vmax.f32 %v3506_v24, 0.0  ;;  %v3539_v16 = vmax.f32 %v3507_v7, 0.0  ;;  %v3540_v40 = vmax.f32 %v3508_v58, 0.0  ;;  %v3674_v58 = vld [vmem:[#allocation2 + $0xf0] sm:$0x10] }
 0x399   : > { %v3541_v54 = vmax.f32 %v3509_v4, 0.0  ;;  %v3542_v60 = vmax.f32 %v3510_v2, 0.0  ;;  %v3543_v25 = vmax.f32 %v3511_v33, 0.0  ;;  %v3544_v52 = vmax.f32 %v3512_v31, 0.0  ;;  %v3800_v4 = vld [vmem:[#allocation2 + $0xf8] sm:$0x8] }
 0x39a   : > { %v3545_v61 = vmax.f32 %v3513_v55, 0.0  ;;  %v3546_v34 = vmax.f32 %v3514_v53, 0.0  ;;  %v3547_v49 = vmax.f32 %v3515_v1, 0.0  ;;  %v3548_v23 = vmax.f32 %v3516_v22, 0.0  ;;  %v3676_v53 = vld [vmem:[#allocation2 + $0x110] sm:$0x10] }
 0x39b   : > { %v3549_v5 = vmax.f32 %v3517_v20, 0.0  ;;  %v3550_v19 = vmax.f32 %v3518_v56, 0.0  ;;  %v3551_v30 = vmax.f32 %v3519_v13, 0.0  ;;  %v3552_v10 = vmax.f32 %v3520_v29, 0.0  ;;  %v3776_v13 = vld [vmem:[#allocation2 + $0xf0] sm:$0x8] }
 0x39c   : > { %v3553_v27 = vmax.f32 %v3521_v39, 0.0  ;;  %v3554_v44 = vmax.f32 %v3522_v59, 0.0  ;;  %v3557_v17 = vmax.f32 %v3525_v15, 0.0  ;;  %v3558_v14 = vmax.f32 %v3526_v11, 0.0  ;;  %v3902_v29 = vld [vmem:[#allocation2 + $0xf8] sm:$0x10] }
 0x39d   : > { %v3559_v3 = vpack.c.bf16 %v3528_v12, %v3527_v0  ;;  %v3560_v18 = vpack.c.bf16 %v3530_v28, %v3529_v42  ;;  %v3561_v26 = vpack.c.bf16 %v3532_v50, %v3531_v9  ;;  %v3562_v47 = vpack.c.bf16 %v3534_v43, %v3533_v36  ;;  %v3802_v39 = vld [vmem:[#allocation2 + $0x118] sm:$0x8]  ;;  %v3782_v12 = vld [vmem:[#allocation2 + $0x110] sm:$0x8]  ;;  %v3908_v36 = vld [vmem:[#allocation2 + $0x118] sm:$0x10] }
 0x39e   : > { %v3563_v6 = vpack.c.bf16 %v3536_v57, %v3535_v51  ;;  %v3564_v37 = vpack.c.bf16 %v3538_v63, %v3537_v45  ;;  %v3565_v38 = vpack.c.bf16 %v3540_v40, %v3539_v16  ;;  %v3566_v46 = vpack.c.bf16 %v3542_v60, %v3541_v54  ;;  %v3731_v60 = vld [vmem:[#allocation2] sm:$0x8] }
 0x39f   : > { %v3567_v41 = vpack.c.bf16 %v3544_v52, %v3543_v25  ;;  %v3568_v62 = vpack.c.bf16 %v3546_v34, %v3545_v61  ;;  %v3569_v48 = vpack.c.bf16 %v3548_v23, %v3547_v49  ;;  %v3570_v8 = vpack.c.bf16 %v3550_v19, %v3549_v5  ;;  %v3857_v25 = vld [vmem:[#allocation2 + $0x8] sm:$0x10]  ;;  %v3734_v52 = vld [vmem:[#allocation2 + $0x10] sm:$0x8]  ;;  %v3860_v61 = vld [vmem:[#allocation2 + $0x18] sm:$0x10] }
 0x3a0   : > { %v3571_v24 = vpack.c.bf16 %v3552_v10, %v3551_v30  ;;  %v3572_v7 = vpack.c.bf16 %v3554_v44, %v3553_v27  ;;  %v3574_v2 = vpack.c.bf16 %v3558_v14, %v3557_v17  ;;  %v3591_v33 = vrot.slane %v3559_v3, 4  ;;  %v3737_v5 = vld [vmem:[#allocation2 + $0x20] sm:$0x8]  ;;  %v3863_v44 = vld [vmem:[#allocation2 + $0x28] sm:$0x10] }
 0x3a1   : > { %v3592_v31 = vrot.slane %v3560_v18, 4  ;;  %v3593_v55 = vrot.slane %v3561_v26, 4  ;;  %v3594_v1 = vrot.slane %v3562_v47, 4  ;;  %v3595_v22 = vrot.slane %v3563_v6, 4  ;;  %v3740_v17 = vld [vmem:[#allocation2 + $0x30] sm:$0x8] }
 0x3a2   : > { %v3596_v20 = vrot.slane %v3564_v37, 4  ;;  %v3597_v56 = vrot.slane %v3565_v38, 4  ;;  %v3598_v59 = vrot.slane %v3566_v46, 4  ;;  %v3599_v15 = vrot.slane %v3567_v41, 4  ;;  %3623 = vst.msk [vmem:[#allocation2 + $0x10] sm:$0xf0] %vm431_vm1, %v3591_v33 }
 0x3a3   : > { %v3600_v11 = vrot.slane %v3568_v62, 4  ;;  %v3601_v0 = vrot.slane %v3569_v48, 4  ;;  %3624 = vst.msk [vmem:[#allocation2 + $0x18] sm:$0xf] %vm433_vm2, %v3591_v33  ;;  %3626 = vst.msk [vmem:[#allocation2 + $0x28] sm:$0xf] %vm433_vm2, %v3592_v31 }
 0x3a4   : > { %3625 = vst.msk [vmem:[#allocation2 + $0x20] sm:$0xf0] %vm431_vm1, %v3592_v31  ;;  %3627 = vst.msk [vmem:[#allocation2 + $0x30] sm:$0xf0] %vm431_vm1, %v3593_v55  ;;  %v3602_v42 = vrot.slane %v3570_v8, 4  ;;  %v3603_v28 = vrot.slane %v3571_v24, 4 }
 0x3a5   : > { %3628 = vst.msk [vmem:[#allocation2 + $0x38] sm:$0xf] %vm433_vm2, %v3593_v55  ;;  %3656 = vst.msk [vmem:[#allocation2 + $0x8] sm:$0xf] %vm433_vm2, %v3592_v31  ;;  %v3604_v9 = vrot.slane %v3572_v7, 4  ;;  %v3606_v50 = vrot.slane %v3574_v2, 4 }
 0x3a6   : > { %3655 = vst.msk [vmem:[#allocation2] sm:$0xf0] %vm431_vm1, %v3592_v31  ;;  %3629 = vst.msk [vmem:[#allocation2 + $0x40] sm:$0xf0] %vm431_vm1, %v3594_v1  ;;  %v3710_v43 = vrot.slane %v3674_v58, 1  ;;  %v3836_v51 = vrot.slane %v3800_v4, 7 }
 0x3a7   : > { %3630 = vst.msk [vmem:[#allocation2 + $0x48] sm:$0xf] %vm433_vm2, %v3594_v1  ;;  %3632 = vst.msk [vmem:[#allocation2 + $0x58] sm:$0xf] %vm433_vm2, %v3595_v22  ;;  %v3712_v57 = vrot.slane %v3676_v53, 1  ;;  %v3838_v45 = vrot.slane %v3802_v39, 7 }
 0x3a8   : > { %3631 = vst.msk [vmem:[#allocation2 + $0x50] sm:$0xf0] %vm431_vm1, %v3595_v22  ;;  %3633 = vst.msk [vmem:[#allocation2 + $0x60] sm:$0xf0] %vm431_vm1, %v3596_v20  ;;  %v3777_v63 = vsel %vm8758_vm7, %v3710_v43, %v3776_v13  ;;  %v3903_v16 = vsel %vm8770_vm8, %v3836_v51, %v3902_v29  ;;  %v3866_v14 = vld [vmem:[#allocation2 + $0x38] sm:$0x10] }
 0x3a9   : > { %3634 = vst.msk [vmem:[#allocation2 + $0x68] sm:$0xf] %vm433_vm2, %v3596_v20  ;;  %3636 = vst.msk [vmem:[#allocation2 + $0x78] sm:$0xf] %vm433_vm2, %v3597_v56  ;;  %v3783_v40 = vsel %vm8758_vm7, %v3712_v57, %v3782_v12  ;;  %v3909_v54 = vsel %vm8770_vm8, %v3838_v45, %v3908_v36  ;;  %v3660_v23 = vld [vmem:[#allocation2 + $0x10] sm:$0x10] }
 0x3aa   : > { %3635 = vst.msk [vmem:[#allocation2 + $0x70] sm:$0xf0] %vm431_vm1, %v3597_v56  ;;  %3637 = vst.msk [vmem:[#allocation2 + $0x80] sm:$0xf0] %vm431_vm1, %v3598_v59  ;;  %v3696_v10 = vrot.slane %v3660_v23, 1 }
 0x3ab   : > { %3638 = vst.msk [vmem:[#allocation2 + $0x88] sm:$0xf] %vm433_vm2, %v3598_v59  ;;  %3640 = vst.msk [vmem:[#allocation2 + $0x98] sm:$0xf] %vm433_vm2, %v3599_v15  ;;  %v3786_v27 = vld [vmem:[#allocation2 + $0x18] sm:$0x8] }
 0x3ac   : > { %3639 = vst.msk [vmem:[#allocation2 + $0x90] sm:$0xf0] %vm431_vm1, %v3599_v15  ;;  %3641 = vst.msk [vmem:[#allocation2 + $0xa0] sm:$0xf0] %vm431_vm1, %v3600_v11  ;;  %v3785_v49 = vld [vmem:[#allocation2 + $0x8] sm:$0x8]  ;;  %v3735_v38 = vsel %vm8758_vm7, %v3696_v10, %v3734_v52 }
 0x3ad   : > { %3642 = vst.msk [vmem:[#allocation2 + $0xa8] sm:$0xf] %vm433_vm2, %v3600_v11  ;;  %3644 = vst.msk [vmem:[#allocation2 + $0xb8] sm:$0xf] %vm433_vm2, %v3601_v0  ;;  %v3659_v34 = vld [vmem:[#allocation2] sm:$0x10] }
 0x3ae   : > { %3643 = vst.msk [vmem:[#allocation2 + $0xb0] sm:$0xf0] %vm431_vm1, %v3601_v0  ;;  %3645 = vst.msk [vmem:[#allocation2 + $0xc0] sm:$0xf0] %vm431_vm1, %v3602_v42  ;;  %v3695_v19 = vrot.slane %v3659_v34, 1  ;;  %v3821_v30 = vrot.slane %v3785_v49, 7 }
 0x3af   : > { %3646 = vst.msk [vmem:[#allocation2 + $0xc8] sm:$0xf] %vm433_vm2, %v3602_v42  ;;  %3648 = vst.msk [vmem:[#allocation2 + $0xd8] sm:$0xf] %vm433_vm2, %v3603_v28  ;;  %v3822_v3 = vrot.slane %v3786_v27, 7 }
 0x3b0   : > { %3647 = vst.msk [vmem:[#allocation2 + $0xd0] sm:$0xf0] %vm431_vm1, %v3603_v28  ;;  %3649 = vst.msk [vmem:[#allocation2 + $0xe0] sm:$0xf0] %vm431_vm1, %v3604_v9  ;;  %v3661_v18 = vld [vmem:[#allocation2 + $0x20] sm:$0x10]  ;;  %v3732_v6 = vsel %vm8758_vm7, %v3695_v19, %v3731_v60  ;;  %v3858_v37 = vsel %vm8770_vm8, %v3821_v30, %v3857_v25 }
 0x3b1   : > { %3650 = vst.msk [vmem:[#allocation2 + $0xe8] sm:$0xf] %vm433_vm2, %v3604_v9  ;;  %3654 = vst.msk [vmem:[#allocation2 + $0x108] sm:$0xf] %vm433_vm2, %v3606_v50  ;;  %v3787_v26 = vld [vmem:[#allocation2 + $0x28] sm:$0x8]  ;;  %v3861_v8 = vsel %vm8770_vm8, %v3822_v3, %v3860_v61 }
 0x3b2   : > { %3653 = vst.msk [vmem:[#allocation2 + $0x100] sm:$0xf0] %vm431_vm1, %v3606_v50  ;;  %3778 = vst [vmem:[#allocation2 + $0xf0] sm:$0x8] %v3777_v63  ;;  %v3743_v47 = vld [vmem:[#allocation2 + $0x40] sm:$0x8] }
 0x3b3   : > { %3904 = vst [vmem:[#allocation2 + $0xf8] sm:$0x10] %v3903_v16  ;;  %3784 = vst [vmem:[#allocation2 + $0x110] sm:$0x8] %v3783_v40  ;;  %v3697_v46 = vrot.slane %v3661_v18, 1  ;;  %v3823_v24 = vrot.slane %v3787_v26, 7 }
 0x3b4   : > { %3910 = vst [vmem:[#allocation2 + $0x118] sm:$0x10] %v3909_v54  ;;  %v3662_v41 = vld [vmem:[#allocation2 + $0x30] sm:$0x10]  ;;  %v3788_v62 = vld [vmem:[#allocation2 + $0x38] sm:$0x8] }
 0x3b5   : > { %v3869_v48 = vld [vmem:[#allocation2 + $0x48] sm:$0x10]  ;;  %3733 = vst [vmem:[#allocation2] sm:$0x8] %v3732_v6  ;;  %3859 = vst [vmem:[#allocation2 + $0x8] sm:$0x10] %v3858_v37  ;;  %v3738_v55 = vsel %vm8758_vm7, %v3697_v46, %v3737_v5  ;;  %v3864_v56 = vsel %vm8770_vm8, %v3823_v24, %v3863_v44 }
 0x3b6   : > { %3736 = vst [vmem:[#allocation2 + $0x10] sm:$0x8] %v3735_v38  ;;  %v3698_v7 = vrot.slane %v3662_v41, 1  ;;  %v3824_v58 = vrot.slane %v3788_v62, 7  ;;  %v3663_v4 = vld [vmem:[#allocation2 + $0x40] sm:$0x10] }
 0x3b7   : > { %v3746_v2 = vld [vmem:[#allocation2 + $0x50] sm:$0x8]  ;;  %v3872_v33 = vld [vmem:[#allocation2 + $0x58] sm:$0x10]  ;;  %v3749_v31 = vld [vmem:[#allocation2 + $0x60] sm:$0x8] }
 0x3b8   : > { %3862 = vst [vmem:[#allocation2 + $0x18] sm:$0x10] %v3861_v8  ;;  %v3699_v53 = vrot.slane %v3663_v4, 1  ;;  %v3789_v1 = vld [vmem:[#allocation2 + $0x48] sm:$0x8]  ;;  %v3741_v13 = vsel %vm8758_vm7, %v3698_v7, %v3740_v17  ;;  %v3867_v29 = vsel %vm8770_vm8, %v3824_v58, %v3866_v14  ;;  %v4563_v14 = vsel %vm1169_vm0, %v10063_v32, 0 }
 0x3b9   : > { %v3664_v22 = vld [vmem:[#allocation2 + $0x50] sm:$0x10]  ;;  %v3875_v20 = vld [vmem:[#allocation2 + $0x68] sm:$0x10]  ;;  %3739 = vst [vmem:[#allocation2 + $0x20] sm:$0x8] %v3738_v55 }
 0x3ba   : > { %v3825_v39 = vrot.slane %v3789_v1, 7  ;;  %v3790_v59 = vld [vmem:[#allocation2 + $0x58] sm:$0x8]  ;;  %v3665_v15 = vld [vmem:[#allocation2 + $0x60] sm:$0x10]  ;;  %v3744_v11 = vsel %vm8758_vm7, %v3699_v53, %v3743_v47  ;;  %v3700_v0 = vrot.slane %v3664_v22, 1 }
 0x3bb   : > { %3865 = vst [vmem:[#allocation2 + $0x28] sm:$0x10] %v3864_v56  ;;  %3742 = vst [vmem:[#allocation2 + $0x30] sm:$0x8] %v3741_v13  ;;  %v3826_v12 = vrot.slane %v3790_v59, 7  ;;  %v3701_v42 = vrot.slane %v3665_v15, 1 }
 0x3bc   : > { %3868 = vst [vmem:[#allocation2 + $0x38] sm:$0x10] %v3867_v29  ;;  %v3791_v28 = vld [vmem:[#allocation2 + $0x68] sm:$0x8]  ;;  %3745 = vst [vmem:[#allocation2 + $0x40] sm:$0x8] %v3744_v11  ;;  %v3870_v9 = vsel %vm8770_vm8, %v3825_v39, %v3869_v48  ;;  %v3747_v51 = vsel %vm8758_vm7, %v3700_v0, %v3746_v2 }
 0x3bd   : > { %v3827_v50 = vrot.slane %v3791_v28, 7  ;;  %v3666_v36 = vld [vmem:[#allocation2 + $0x70] sm:$0x10]  ;;  %v3752_v43 = vld [vmem:[#allocation2 + $0x70] sm:$0x8]  ;;  %v3873_v57 = vsel %vm8770_vm8, %v3826_v12, %v3872_v33  ;;  %v3750_v45 = vsel %vm8758_vm7, %v3701_v42, %v3749_v31  ;;  %v10397_v40 = vld [vmem:[#allocation2] sm:$0xff] }
 0x3be   : > { %3871 = vst [vmem:[#allocation2 + $0x48] sm:$0x10] %v3870_v9  ;;  %v3702_v63 = vrot.slane %v3666_v36, 1  ;;  %3748 = vst [vmem:[#allocation2 + $0x50] sm:$0x8] %v3747_v51  ;;  %v10399_v54 = vld [vmem:[#allocation2 + $0x8] sm:$0xff] }
 0x3bf   : > { %3874 = vst [vmem:[#allocation2 + $0x58] sm:$0x10] %v3873_v57  ;;  %3751 = vst [vmem:[#allocation2 + $0x60] sm:$0x8] %v3750_v45  ;;  %v3876_v16 = vsel %vm8770_vm8, %v3827_v50, %v3875_v20  ;;  %v10401_v60 = vld [vmem:[#allocation2 + $0x10] sm:$0xff]  ;;  %v10405_v52 = vld [vmem:[#allocation2 + $0x18] sm:$0xff] }
 0x3c0   : > { %12346 = vst [vmem:[#allocation5_spill] sm:$0xff] %v10399_v54  ;;  %3877 = vst [vmem:[#allocation2 + $0x68] sm:$0x10] %v3876_v16  ;;  %v3753_v25 = vsel %vm8758_vm7, %v3702_v63, %v3752_v43  ;;  %v3792_v61 = vld [vmem:[#allocation2 + $0x78] sm:$0x8]  ;;  %v4252_v34 = vrot.slane %v10397_v40, 4 }
 0x3c1   : > { %3754 = vst [vmem:[#allocation2 + $0x70] sm:$0x8] %v3753_v25  ;;  %v4253_v49 = vrot.slane %v10399_v54, 4  ;;  %v3667_v23 = vld [vmem:[#allocation2 + $0x80] sm:$0x10]  ;;  %v4255_v19 = vrot.slane %v10401_v60, 4 }
 0x3c2   : > { %v3793_v5 = vld [vmem:[#allocation2 + $0x88] sm:$0x8]  ;;  %v4256_v30 = vrot.slane %v10405_v52, 4  ;;  %v10411_v10 = vld [vmem:[#allocation2 + $0x20] sm:$0xff]  ;;  %v3668_v44 = vld [vmem:[#allocation2 + $0x90] sm:$0x10] }
 0x3c3   : > { %12347 = vst [vmem:[#allocation6_spill] sm:$0xff] %v10411_v10  ;;  %v10413_v27 = vld [vmem:[#allocation2 + $0x28] sm:$0xff]  ;;  %v4254_v17 = vsel %vm1069_vm9, %v4252_v34, %v4253_v49  ;;  %v10418_v3 = vld [vmem:[#allocation2 + $0x30] sm:$0xff]  ;;  %v10420_v18 = vld [vmem:[#allocation2 + $0x38] sm:$0xff]  ;;  %v3828_v38 = vrot.slane %v3792_v61, 7  ;;  %v3703_v46 = vrot.slane %v3667_v23, 1 }
 0x3c4   : > { %12348 = vst [vmem:[#allocation37_spill] sm:$0xff] %v10413_v27  ;;  %12349 = vst [vmem:[#allocation7_spill] sm:$0xff] %v10418_v3  ;;  %v10422_v26 = vld [vmem:[#allocation2 + $0x40] sm:$0xff]  ;;  %v3878_v47 = vld [vmem:[#allocation2 + $0x78] sm:$0x10]  ;;  %7762 = vmatprep.mubr.msk.bf16.mxu1 %vm1120_vm10, %v4254_v17  ;;  %v10426_v6 = vsel %vm1069_vm9, %v4255_v19, %v4256_v30  ;;  %v4258_v62 = vrot.slane %v10411_v10, 4 }
 0x3c5   : > { %12350 = vst [vmem:[#allocation8_spill] sm:$0xff] %v10420_v18  ;;  %12351 = vst [vmem:[#allocation38_spill] sm:$0xff] %v10422_v26  ;;  %v10428_v37 = vld [vmem:[#allocation2 + $0x48] sm:$0xff]  ;;  %v3755_v41 = vld [vmem:[#allocation2 + $0x80] sm:$0x8]  ;;  %7763 = vmatmul.mubr.msk.bf16.vlgmr.msra.gmra.mrb[0].mxu1 %vm1120_vm10, %v10426_v6  ;;  %v4259_v48 = vrot.slane %v10413_v27, 4  ;;  %v3879_v39 = vsel %vm8770_vm8, %v3828_v38, %v3878_v47 }
 0x3c6   : > { %12352 = vst [vmem:[#allocation9_spill] sm:$0xff] %v10426_v6  ;;  %12353 = vst [vmem:[#allocation10_spill] sm:$0xff] %v10428_v37  ;;  %v10433_v32 = vld [vmem:[%s11984_s5 + $0x4] sm:$0x3]  ;;  %v3829_v8 = vrot.slane %v3793_v5, 7  ;;  %v3704_v7 = vrot.slane %v3668_v44, 1  ;;  %7795 = vmatpush3.bf16.msra.mxu1 %v4563_v14  ;;  %v3756_v50 = vsel %vm8758_vm7, %v3703_v46, %v3755_v41 }
 0x3c7   : > { %v3881_v24 = vld [vmem:[#allocation2 + $0x88] sm:$0x10]  ;;  %v4261_v58 = vrot.slane %v10418_v3, 4  ;;  %v4262_v4 = vrot.slane %v10420_v18, 4  ;;  %v4264_v2 = vrot.slane %v10422_v26, 4  ;;  %v4265_v33 = vrot.slane %v10428_v37, 4  ;;  %8589 = vmatprep.subr.msk.bf16.mxu1 %vm1169_vm0, %v10433_v32 }
 0x3c8   : > { %v3758_v31 = vld [vmem:[#allocation2 + $0x90] sm:$0x8]  ;;  %v3965_v55 = vshrl.u32 %v10401_v60, 16  ;;  %v10445_v53 = vsel %vm1069_vm9, %v4258_v62, %v4259_v48  ;;  %v3794_v1 = vld [vmem:[#allocation2 + $0x98] sm:$0x8]  ;;  %v3968_v13 = vshll.u32 %v10401_v60, 16  ;;  %v3882_v36 = vsel %vm8770_vm8, %v3829_v8, %v3881_v24 }
 0x3c9   : > { %12354 = vst [vmem:[#allocation11_spill] sm:$0xff] %v10445_v53  ;;  %v3884_v22 = vld [vmem:[#allocation2 + $0x98] sm:$0x10]  ;;  %v3669_v20 = vld [vmem:[#allocation2 + $0xa0] sm:$0x10]  ;;  %v3973_v29 = vshrl.u32 %v10405_v52, 16  ;;  %7766 = vmatprep.mubr.msk.bf16.mxu1 %vm1120_vm10, %v10445_v53  ;;  %v10457_v9 = vsel %vm1069_vm9, %v4261_v58, %v4262_v4  ;;  %v10464_v63 = vsel %vm1069_vm9, %v4264_v2, %v4265_v33  ;;  %v3759_v16 = vsel %vm8758_vm7, %v3704_v7, %v3758_v31 }
 0x3ca   : > { %v3761_v56 = vld [vmem:[#allocation2 + $0xa0] sm:$0x8]  ;;  %v3795_v59 = vld [vmem:[#allocation2 + $0xa8] sm:$0x8]  ;;  %v3887_v15 = vld [vmem:[#allocation2 + $0xa8] sm:$0x10] }
 0x3cb   : > { %v3670_v11 = vld [vmem:[#allocation2 + $0xb0] sm:$0x10]  ;;  %v3764_v0 = vld [vmem:[#allocation2 + $0xb0] sm:$0x8]  ;;  %v3890_v12 = vld [vmem:[#allocation2 + $0xb8] sm:$0x10] }
 0x3cc   : > { %v3767_v42 = vld [vmem:[#allocation2 + $0xc0] sm:$0x8]  ;;  %v3976_v28 = vshll.u32 %v10405_v52, 16  ;;  %12355 = vst [vmem:[#allocation13_spill] sm:$0xff] %v10457_v9  ;;  %3880 = vst [vmem:[#allocation2 + $0x78] sm:$0x10] %v3879_v39 }
 0x3cd   : > { %v3796_v43 = vld [vmem:[#allocation2 + $0xb8] sm:$0x8]  ;;  %v3671_v51 = vld [vmem:[#allocation2 + $0xc0] sm:$0x10]  ;;  %v3893_v57 = vld [vmem:[#allocation2 + $0xc8] sm:$0x10]  ;;  %7767 = vmatmul.mubr.msk.bf16.gmra.mrb[4].mxu1 %vm1120_vm10, %v10457_v9 }
 0x3ce   : > { %v3770_v45 = vld [vmem:[#allocation2 + $0xd0] sm:$0x8]  ;;  %12356 = vst [vmem:[#allocation14_spill] sm:$0xff] %v10464_v63  ;;  %3757 = vst [vmem:[#allocation2 + $0x80] sm:$0x8] %v3756_v50  ;;  %v3830_v25 = vrot.slane %v3794_v1, 7  ;;  %7770 = vmatprep.mubr.msk.bf16.mxu1 %vm1120_vm10, %v10464_v63 }
 0x3cf   : > { %3883 = vst [vmem:[#allocation2 + $0x88] sm:$0x10] %v3882_v36  ;;  %v3705_v61 = vrot.slane %v3669_v20, 1  ;;  %v3797_v34 = vld [vmem:[#allocation2 + $0xc8] sm:$0x8]  ;;  %v3831_v23 = vrot.slane %v3795_v59, 7 }
 0x3d0   : > { %v3672_v49 = vld [vmem:[#allocation2 + $0xd0] sm:$0x10]  ;;  %3760 = vst [vmem:[#allocation2 + $0x90] sm:$0x8] %v3759_v16  ;;  %v3706_v5 = vrot.slane %v3670_v11, 1  ;;  %v3832_v19 = vrot.slane %v3796_v43, 7  ;;  %v3885_v14 = vsel %vm8770_vm8, %v3830_v25, %v3884_v22 }
 0x3d1   : > { %v3707_v30 = vrot.slane %v3671_v51, 1  ;;  %v3798_v44 = vld [vmem:[#allocation2 + $0xd8] sm:$0x8]  ;;  %v3896_v17 = vld [vmem:[#allocation2 + $0xd8] sm:$0x10]  ;;  %v3762_v47 = vsel %vm8758_vm7, %v3705_v61, %v3761_v56  ;;  %v3833_v38 = vrot.slane %v3797_v34, 7  ;;  %v3888_v24 = vsel %vm8770_vm8, %v3831_v23, %v3887_v15 }
 0x3d2   : > { %v3708_v46 = vrot.slane %v3672_v49, 1  ;;  %v3673_v41 = vld [vmem:[#allocation2 + $0xe0] sm:$0x10]  ;;  %v3799_v62 = vld [vmem:[#allocation2 + $0xe8] sm:$0x8]  ;;  %v10474_v48 = vld [vmem:[#allocation2 + $0x50] sm:$0xff]  ;;  %v3765_v7 = vsel %vm8758_vm7, %v3706_v5, %v3764_v0  ;;  %v3891_v58 = vsel %vm8770_vm8, %v3832_v19, %v3890_v12 }
 0x3d3   : > { %12357 = vst [vmem:[#allocation15_spill] sm:$0xff] %v10474_v48  ;;  %v10476_v8 = vld [vmem:[#allocation2 + $0x58] sm:$0xff]  ;;  %3886 = vst [vmem:[#allocation2 + $0x98] sm:$0x10] %v3885_v14  ;;  %v3768_v4 = vsel %vm8758_vm7, %v3707_v30, %v3767_v42  ;;  %v3773_v2 = vld [vmem:[#allocation2 + $0xe0] sm:$0x8]  ;;  %v3894_v1 = vsel %vm8770_vm8, %v3833_v38, %v3893_v57 }
 0x3d4   : > { %12358 = vst [vmem:[#allocation17_spill] sm:$0xff] %v10476_v8  ;;  %3763 = vst [vmem:[#allocation2 + $0xa0] sm:$0x8] %v3762_v47  ;;  %v10488_v33 = vld [vmem:[#allocation2 + $0x60] sm:$0xff]  ;;  %v10490_v31 = vld [vmem:[#allocation2 + $0x68] sm:$0xff]  ;;  %v3771_v22 = vsel %vm8758_vm7, %v3708_v46, %v3770_v45  ;;  %v3834_v20 = vrot.slane %v3798_v44, 7 }
 0x3d5   : > { %12359 = vst [vmem:[#allocation20_spill] sm:$0xff] %v10488_v33  ;;  %12360 = vst [vmem:[#allocation21_spill] sm:$0xff] %v10490_v31  ;;  %v3709_v56 = vrot.slane %v3673_v41, 1  ;;  %v3899_v39 = vld [vmem:[#allocation2 + $0xe8] sm:$0x10]  ;;  %v10498_v59 = vrot.slane %v3965_v55, 4 }
 0x3d6   : > { %3889 = vst [vmem:[#allocation2 + $0xa8] sm:$0x10] %v3888_v24  ;;  %3766 = vst [vmem:[#allocation2 + $0xb0] sm:$0x8] %v3765_v7  ;;  %v3835_v15 = vrot.slane %v3799_v62, 7  ;;  %v4267_v11 = vrot.slane %v10474_v48, 4  ;;  %v3897_v12 = vsel %vm8770_vm8, %v3834_v20, %v3896_v17 }
 0x3d7   : > { %3892 = vst [vmem:[#allocation2 + $0xb8] sm:$0x10] %v3891_v58  ;;  %3769 = vst [vmem:[#allocation2 + $0xc0] sm:$0x8] %v3768_v4  ;;  %v4268_v0 = vrot.slane %v10476_v8, 4  ;;  %v3774_v42 = vsel %vm8758_vm7, %v3709_v56, %v3773_v2  ;;  %v10508_v50 = vrot.slane %v3968_v13, 5 }
 0x3d8   : > { %12361 = vst [vmem:[#allocation22_spill] sm:$0xff] %v10498_v59  ;;  %3895 = vst [vmem:[#allocation2 + $0xc8] sm:$0x10] %v3894_v1  ;;  %v4270_v36 = vrot.slane %v10488_v33, 4  ;;  %v4271_v43 = vrot.slane %v10490_v31, 4  ;;  %v3900_v51 = vsel %vm8770_vm8, %v3835_v15, %v3899_v39  ;;  %v10516_v57 = vrot.slane %v3973_v29, 4 }
 0x3d9   : > { %3772 = vst [vmem:[#allocation2 + $0xd0] sm:$0x8] %v3771_v22  ;;  %12362 = vst [vmem:[#allocation23_spill] sm:$0xff] %v10508_v50  ;;  %v10520_v45 = vrot.slane %v3976_v28, 5  ;;  %v10523_v16 = vsel %vm1069_vm9, %v4267_v11, %v4268_v0  ;;  %v10530_v61 = vld [vmem:[#allocation2 + $0x70] sm:$0xff]  ;;  %v10532_v34 = vld [vmem:[#allocation2 + $0x78] sm:$0xff] }
 0x3da   : > { %3898 = vst [vmem:[#allocation2 + $0xd8] sm:$0x10] %v3897_v12  ;;  %3775 = vst [vmem:[#allocation2 + $0xe0] sm:$0x8] %v3774_v42  ;;  %7771 = vmatmul.mubr.msk.bf16.gmra.mrb[8].mxu1 %vm1120_vm10, %v10523_v16  ;;  %v10528_v25 = vsel %vm1069_vm9, %v4270_v36, %v4271_v43  ;;  %v12081_v23 = vshrl.u32 %v10397_v40, 16  ;;  %v12080_v5 = vshll.u32 %v10397_v40, 16 }
 0x3db   : > { %12363 = vst [vmem:[#allocation24_spill] sm:$0xff] %v10516_v57  ;;  %12364 = vst [vmem:[#allocation27_spill] sm:$0xff] %v10520_v45  ;;  %7774 = vmatprep.mubr.msk.bf16.mxu1 %vm1120_vm10, %v10528_v25  ;;  %v10540_v19 = vld [vmem:[#allocation2 + $0x80] sm:$0xff]  ;;  %v10542_v30 = vld [vmem:[#allocation2 + $0x88] sm:$0xff]  ;;  %v12079_v17 = vshrl.u32 %v10399_v54, 16  ;;  %v12078_v14 = vshll.u32 %v10399_v54, 16 }
 0x3dc   : > { %3901 = vst [vmem:[#allocation2 + $0xe8] sm:$0x10] %v3900_v51  ;;  %12365 = vst [vmem:[#allocation28_spill] sm:$0xff] %v10523_v16  ;;  %v4273_v47 = vrot.slane %v10530_v61, 4  ;;  %v4274_v38 = vrot.slane %v10532_v34, 4  ;;  %v10550_v46 = vld [vmem:[#allocation2 + $0xf0] sm:$0xff] }
 0x3dd   : > { %12366 = vst [vmem:[#allocation29_spill] sm:$0xff] %v10528_v25  ;;  %12367 = vst [vmem:[#allocation30_spill] sm:$0xff] %v10530_v61  ;;  %v4276_v41 = vrot.slane %v10540_v19, 4  ;;  %v4277_v62 = vrot.slane %v10542_v30, 4  ;;  %v10554_v24 = vld [vmem:[#allocation2 + $0xf8] sm:$0xff]  ;;  %v10558_v7 = vrot.slane %v12081_v23, 3 }
 0x3de   : > { %12368 = vst [vmem:[#allocation12_spill] sm:$0xff] %v10532_v34  ;;  %12369 = vst [vmem:[#allocation16_spill] sm:$0xff] %v10540_v19  ;;  %v10562_v58 = vrot.slane %v12080_v5, 4  ;;  %v10566_v4 = vrot.slane %v3965_v55, 3  ;;  %v10570_v2 = vrot.slane %v3968_v13, 4  ;;  %v10572_v1 = vld [vmem:[#allocation2 + $0x90] sm:$0xff]  ;;  %v10582_v39 = vsel %vm1069_vm9, %v4273_v47, %v4274_v38 }
 0x3df   : > { %v10574_v22 = vld [vmem:[#allocation2 + $0x98] sm:$0xff]  ;;  %v10579_v56 = vsel %vm1169_vm0, %v10433_v32, 0  ;;  %12371 = vst [vmem:[#allocation19_spill] sm:$0xff] %v10582_v39  ;;  %v10587_v60 = vrot.slane %v12079_v17, 3  ;;  %v10591_v13 = vrot.slane %v12078_v14, 4  ;;  %v10595_v15 = vrot.slane %v3973_v29, 3 }
 0x3e0   : > { %12370 = vst [vmem:[#allocation18_spill] sm:$0xff] %v10579_v56  ;;  %v10600_v32 = vsel %vm1069_vm9, %v4276_v41, %v4277_v62  ;;  %v10602_v11 = vld [vmem:[#allocation2 + $0xa0] sm:$0xff]  ;;  %v12090_v0 = vshrl.u32 %v10411_v10, 16  ;;  %v10608_v42 = vrot.slane %v3976_v28, 4  ;;  %v4279_v29 = vrot.slane %v10572_v1, 4  ;;  %v10614_v43 = vld [vmem:[#allocation2 + $0xa8] sm:$0xff] }
 0x3e1   : > { %12372 = vst [vmem:[#allocation25_spill] sm:$0xff] %v10600_v32  ;;  %v4280_v36 = vrot.slane %v10574_v22, 4  ;;  %v10616_v51 = vld [vmem:[#allocation2 + $0xb0] sm:$0xff]  ;;  %v10618_v47 = vld [vmem:[#allocation2 + $0xb8] sm:$0xff]  ;;  %v10622_v41 = vld [vmem:[#allocation2 + $0xc0] sm:$0xff]  ;;  %v4282_v14 = vrot.slane %v10602_v11, 4 }
 0x3e2   : > { %7775 = vmatmul.mubr.msk.bf16.gmra.mrb[12].mxu1 %vm1120_vm10, %v10582_v39  ;;  %v10624_v52 = vld [vmem:[#allocation2 + $0xc8] sm:$0xff]  ;;  %v10626_v28 = vld [vmem:[#allocation2 + $0xd0] sm:$0xff]  ;;  %v10634_v17 = vld [vmem:[#allocation2 + $0xd8] sm:$0xff]  ;;  %v4283_v20 = vrot.slane %v10614_v43, 4  ;;  %v4285_v62 = vrot.slane %v10616_v51, 4  ;;  %v4286_v55 = vrot.slane %v10618_v47, 4 }
 0x3e3   : > { %7778 = vmatprep.mubr.msk.bf16.mxu1 %vm1120_vm10, %v10600_v32  ;;  %v10645_v44 = vrot.slane %v12090_v0, 3  ;;  %v10648_v49 = vsel %vm1069_vm9, %v4279_v29, %v4280_v36  ;;  %v4288_v12 = vrot.slane %v10622_v41, 4  ;;  %v4289_v5 = vrot.slane %v10624_v52, 4  ;;  %v10666_v36 = vld [vmem:[#allocation2 + $0xe0] sm:$0xff]  ;;  %v10668_v63 = vld [vmem:[#allocation2 + $0xe8] sm:$0xff] }
 0x3e4   : > { %12373 = vst [vmem:[#allocation26_spill] sm:$0xff] %v10648_v49  ;;  %v4291_v23 = vrot.slane %v10626_v28, 4  ;;  %v4292_v38 = vrot.slane %v10634_v17, 4  ;;  %v12374_v32 = vshll.u32 %v10411_v10, 16  ;;  %v12375_v25 = vshrl.u32 %v10413_v27, 16  ;;  %12377 = vst [vmem:[#allocation31_spill] sm:$0xff] %v10666_v36 }
 0x3e5   : > { %v12376_v0 = vshll.u32 %v10413_v27, 16  ;;  %12378 = vst [vmem:[#allocation32_spill] sm:$0xff] %v10668_v63  ;;  %v12379_v9 = vshrl.u32 %v10418_v3, 16  ;;  %v12380_v6 = vshll.u32 %v10418_v3, 16  ;;  %v4294_v35 = vrot.slane %v10666_v36, 4 }
 0x3e6   : > { %v10656_v39 = vrot.slane %v12374_v32, 4  ;;  %v10660_v16 = vrot.slane %v12375_v25, 3  ;;  %v10695_v25 = vsel %vm1069_vm9, %v4288_v12, %v4289_v5  ;;  %v4295_v56 = vrot.slane %v10668_v63, 4 }
 0x3e7   : > { %v10664_v29 = vrot.slane %v12376_v0, 4  ;;  %v10672_v53 = vrot.slane %v12379_v9, 3  ;;  %v10676_v32 = vrot.slane %v12380_v6, 4  ;;  %v10683_v0 = vsel %vm1069_vm9, %v4282_v14, %v4283_v20  ;;  %12383 = vst [vmem:[#allocation35_spill] sm:$0xff] %v10695_v25 }
 0x3e8   : > { %12381 = vst [vmem:[#allocation33_spill] sm:$0xff] %v10683_v0  ;;  %v10692_v6 = vsel %vm1069_vm9, %v4285_v62, %v4286_v55  ;;  %v10700_v20 = vsel %vm1069_vm9, %v4291_v23, %v4292_v38  ;;  %v12385_v12 = vshrl.u32 %v10420_v18, 16  ;;  %v12386_v23 = vshll.u32 %v10420_v18, 16 }
 0x3e9   : > { %12382 = vst [vmem:[#allocation34_spill] sm:$0xff] %v10692_v6  ;;  %12384 = vst [vmem:[#allocation36_spill] sm:$0xff] %v10700_v20  ;;  %v12387_v14 = vshrl.u32 %v10422_v26, 16  ;;  %v12388_v9 = vshll.u32 %v10422_v26, 16  ;;  %v12390_v3 = vshll.u32 %v10428_v37, 16  ;;  %v12391_v27 = vshrl.u32 %v10474_v48, 16 }
 0x3ea   : > { %7779 = vmatmul.mubr.msk.bf16.gmra.mrb[16].mxu1 %vm1120_vm10, %v10648_v49  ;;  %v10712_v62 = vrot.slane %v12385_v12, 3  ;;  %v10716_v38 = vrot.slane %v12386_v23, 4  ;;  %v12389_v49 = vshrl.u32 %v10428_v37, 16  ;;  %v12392_v26 = vshll.u32 %v10474_v48, 16 }
 0x3eb   : > { %7782 = vmatprep.mubr.msk.bf16.mxu1 %vm1120_vm10, %v10683_v0  ;;  %v10720_v21 = vrot.slane %v12387_v14, 3  ;;  %v10724_v0 = vrot.slane %v12388_v9, 4  ;;  %v4029_v18 = vrot.slane %v12390_v3, 4  ;;  %v4035_v14 = vrot.slane %v12391_v27, 3 }
 0x3ec   : > { %v4026_v12 = vrot.slane %v12389_v49, 3  ;;  %v4038_v23 = vrot.slane %v12392_v26, 4  ;;  %v12393_v49 = vshrl.u32 %v10476_v8, 16  ;;  %v12394_v3 = vshll.u32 %v10476_v8, 16 }
 0x3ed   : > { %v12395_v48 = vshrl.u32 %v10488_v33, 16  ;;  %v12396_v9 = vshll.u32 %v10488_v33, 16  ;;  %v12397_v55 = vshrl.u32 %v10490_v31, 16  ;;  %v12401_v27 = vshrl.u32 %v10532_v34, 16 }
 0x3ee   : > { %v4043_v10 = vrot.slane %v12393_v49, 3  ;;  %v4046_v5 = vrot.slane %v12394_v3, 4  ;;  %v12399_v49 = vshrl.u32 %v10530_v61, 16  ;;  %v12400_v3 = vshll.u32 %v10530_v61, 16 }
 0x3ef   : > { %v4052_v26 = vrot.slane %v12395_v48, 3  ;;  %v4055_v37 = vrot.slane %v12396_v9, 4  ;;  %v4060_v59 = vrot.slane %v12397_v55, 3  ;;  %v4077_v57 = vrot.slane %v12401_v27, 3 }
 0x3f0   : > { %v4069_v8 = vrot.slane %v12399_v49, 3  ;;  %v12402_v48 = vshll.u32 %v10532_v34, 16  ;;  %v4013_v9 = vor.u32 %v10716_v38, %v10712_v62  ;;  %v4022_v55 = vor.u32 %v10724_v0, %v10720_v21 }
 0x3f1   : > { %v12404_v49 = vshll.u32 %v10540_v19, 16  ;;  %v12406_v27 = vshll.u32 %v10542_v30, 16  ;;  %v4104_v34 = vshll.u32 %v10572_v1, 16  ;;  %v4030_v62 = vor.u32 %v4029_v18, %v4026_v12 }
 0x3f2   : > { %7783 = vmatmul.mubr.msk.bf16.gmra.mrb[20].mxu1 %vm1120_vm10, %v10692_v6  ;;  %v4072_v6 = vrot.slane %v12400_v3, 4  ;;  %v4080_v45 = vrot.slane %v12402_v48, 4  ;;  %v12405_v3 = vshrl.u32 %v10542_v30, 16  ;;  %v4101_v48 = vshrl.u32 %v10572_v1, 16 }
 0x3f3   : > { %7786 = vmatprep.mubr.msk.bf16.mxu1 %vm1120_vm10, %v10695_v25  ;;  %v12398_v25 = vshll.u32 %v10490_v31, 16  ;;  %v4089_v33 = vrot.slane %v12404_v49, 4  ;;  %v4097_v63 = vrot.slane %v12406_v27, 4  ;;  %v4039_v38 = vor.u32 %v4038_v23, %v4035_v14  ;;  %v12441_v23 = vld [vmem:[#allocation8_spill] sm:$0xff] }
 0x3f4   : > { %v4094_v61 = vrot.slane %v12405_v3, 3  ;;  %v4047_v54 = vor.u32 %v4046_v5, %v4043_v10  ;;  %v4056_v21 = vor.u32 %v4055_v37, %v4052_v26  ;;  %v4073_v36 = vor.u32 %v4072_v6, %v4069_v8  ;;  %v12447_v5 = vld [vmem:[#allocation10_spill] sm:$0xff] }
 0x3f5   : > { %v4063_v50 = vrot.slane %v12398_v25, 4  ;;  %v12403_v25 = vshrl.u32 %v10540_v19, 16  ;;  %v4109_v19 = vshrl.u32 %v10574_v22, 16  ;;  %v10792_v49 = vsel %vm1069_vm9, %v4294_v35, %v4295_v56 }
 0x3f6   : > { %12407 = vst [vmem:[#allocation39_spill] sm:$0xff] %v10792_v49  ;;  %v12408_v3 = vrot.slane %v10554_v24, 4  ;;  %v12409_v27 = vrot.slane %v10550_v46, 4  ;;  %v12411_v10 = vor.u32 %v10591_v13, %v10587_v60  ;;  %v12412_v37 = vor.u32 %v10562_v58, %v10558_v7 }
 0x3f7   : > { %v4086_v31 = vrot.slane %v12403_v25, 3  ;;  %v4064_v0 = vor.u32 %v4063_v50, %v4060_v59  ;;  %v4081_v25 = vor.u32 %v4080_v45, %v4077_v57  ;;  %v4112_v59 = vshll.u32 %v10574_v22, 16 }
 0x3f8   : > { %v10799_v18 = vsel %vm1069_vm9, %v12409_v27, %v12408_v3  ;;  %v3963_v8 = vsel %vm672_vm6, %v12412_v37, %v12411_v10  ;;  %v4098_v50 = vor.u32 %v4097_v63, %v4094_v61  ;;  %v10813_v57 = vrot.slane %v4101_v48, 3  ;;  %v12421_v10 = vld [vmem:[#allocation31_spill] sm:$0xff] }
 0x3f9   : > { %12410 = vst [vmem:[#allocation40_spill] sm:$0xff] %v10799_v18  ;;  %v4090_v35 = vor.u32 %v4089_v33, %v4086_v31  ;;  %v10817_v45 = vrot.slane %v4104_v34, 4  ;;  %v12413_v7 = vor.u32 %v10608_v42, %v10595_v15  ;;  %v12414_v58 = vor.u32 %v10570_v2, %v10566_v4 }
 0x3fa   : > { %7787 = vmatmul.mubr.msk.bf16.gmra.mrb[24].mxu1 %vm1120_vm10, %v10700_v20  ;;  %v12415_v63 = vor.u32 %v10664_v29, %v10660_v16  ;;  %v12416_v33 = vor.u32 %v10656_v39, %v10645_v44  ;;  %v12417_v61 = vor.u32 %v10676_v32, %v10672_v53  ;;  %v10844_v4 = vsel %vm672_vm6, %v4022_v55, %v4030_v62  ;;  %v12460_v32 = vld [vmem:[#allocation21_spill] sm:$0xff] }
 0x3fb   : > { %7790 = vmatprep.mubr.msk.bf16.mxu1 %vm1120_vm10, %v10792_v49  ;;  %v10826_v56 = vsel %vm672_vm6, %v12414_v58, %v12413_v7  ;;  %v10847_v2 = vsel %vm672_vm6, %v4039_v38, %v4047_v54  ;;  %v10850_v16 = vsel %vm672_vm6, %v4056_v21, %v4064_v0  ;;  %v10853_v44 = vsel %vm672_vm6, %v4073_v36, %v4081_v25  ;;  %v12426_v0 = vld [vmem:[#allocation27_spill] sm:$0xff] }
 0x3fc   : > { %v10835_v31 = vsel %vm672_vm6, %v12416_v33, %v12415_v63  ;;  %v10841_v60 = vsel %vm672_vm6, %v12417_v61, %v4013_v9  ;;  %12418 = vst [vmem:[#allocation41_spill] sm:$0xff] %v10850_v16  ;;  %v10857_v39 = vrot.slane %v4109_v19, 3  ;;  %v10861_v53 = vrot.slane %v4112_v59, 4  ;;  %v12424_v63 = vld [vmem:[#allocation32_spill] sm:$0xff]  ;;  %v12429_v21 = vld [vmem:[#allocation23_spill] sm:$0xff]  ;;  %v12432_v33 = vld [vmem:[#allocation6_spill] sm:$0xff] }
 0x3fd   : > { %v4118_v13 = vshrl.u32 %v10602_v11, 16  ;;  %v10867_v42 = vsel %vm672_vm6, %v4090_v35, %v4098_v50  ;;  %v12419_v55 = vshrl.u32 %v10397_v40, 16  ;;  %v12420_v25 = vshll.u32 %v10397_v40, 16  ;;  %v12422_v50 = vld [vmem:[#allocation5_spill] sm:$0xff]  ;;  %v12427_v40 = vld [vmem:[#allocation24_spill] sm:$0xff] }
 0x3fe   : > { %v12423_v7 = vshrl.u32 %v12422_v50, 16  ;;  %v12476_v22 = vshll.u32 %v10614_v43, 16 }
 0x3ff   : > { %v4726_v62 = vrot.slane %v12419_v55, 4  ;;  %v4727_v3 = vrot.slane %v12420_v25, 5  ;;  %v12425_v55 = vshll.u32 %v12422_v50, 16  ;;  %v12428_v25 = vor.u32 %v12426_v0, %v12427_v40  ;;  %v12435_v0 = vld [vmem:[#allocation37_spill] sm:$0xff] }
 0x400   : > { %v4729_v58 = vrot.slane %v12423_v7, 4  ;;  %v12436_v40 = vshrl.u32 %v12435_v0, 16 }
 0x401   : > { %v4728_v61 = vor.u32 %v4727_v3, %v4726_v62  ;;  %v4730_v29 = vrot.slane %v12425_v55, 5  ;;  %v12433_v62 = vshrl.u32 %v12432_v33, 16  ;;  %v12434_v55 = vshll.u32 %v12432_v33, 16 }
 0x402   : > { %7791 = vmatmul.mubr.msk.bf16.gmra.mrb[28].mxu1 %vm1120_vm10, %v10799_v18  ;;  %v4743_v26 = vrot.slane %v12436_v40, 4  ;;  %v12443_v40 = vshll.u32 %v12441_v23, 16 }
 0x403   : > { %7796 = vmatprep.mubr.msk.bf16.mxu1 %vm1120_vm10, %v3963_v8  ;;  %v12430_v8 = vld [vmem:[#allocation22_spill] sm:$0xff]  ;;  %v4740_v3 = vrot.slane %v12433_v62, 4  ;;  %v4731_v50 = vor.u32 %v4730_v29, %v4729_v58  ;;  %v4741_v9 = vrot.slane %v12434_v55, 5  ;;  %v12442_v62 = vshrl.u32 %v12441_v23, 16 }
 0x404   : > { %v12431_v38 = vor.u32 %v12429_v21, %v12430_v8  ;;  %v12437_v21 = vshll.u32 %v12435_v0, 16  ;;  %v12438_v8 = vld [vmem:[#allocation7_spill] sm:$0xff]  ;;  %v4751_v0 = vrot.slane %v12443_v40, 5  ;;  %v12452_v40 = vld [vmem:[#allocation18_spill] sm:$0xff] }
 0x405   : > { %v12439_v35 = vshrl.u32 %v12438_v8, 16  ;;  %v12440_v7 = vshll.u32 %v12438_v8, 16  ;;  %v4750_v29 = vrot.slane %v12442_v62, 4  ;;  %v10926_v58 = vsel %vm1546_vm11, %v4728_v61, %v4731_v50 }
 0x406   : > { %v10905_v27 = vsel %vm1546_vm11, %v12431_v38, %v12428_v25  ;;  %v4744_v38 = vrot.slane %v12437_v21, 5  ;;  %v4742_v33 = vor.u32 %v4741_v9, %v4740_v3  ;;  %v10933_v21 = vld [vmem:[%s11984_s5 + $0x6] sm:$0x3]  ;;  %v12444_v25 = vld [vmem:[#allocation38_spill] sm:$0xff]  ;;  %v12448_v61 = vshrl.u32 %v12447_v5, 16 }
 0x407   : > { %v4747_v37 = vrot.slane %v12439_v35, 4  ;;  %v4748_v14 = vrot.slane %v12440_v7, 5  ;;  %v12445_v8 = vshrl.u32 %v12444_v25, 16  ;;  %v12446_v12 = vshll.u32 %v12444_v25, 16 }
 0x408   : > { %v4745_v55 = vor.u32 %v4744_v38, %v4743_v26  ;;  %v4757_v50 = vrot.slane %v12448_v61, 4  ;;  %v4752_v26 = vor.u32 %v4751_v0, %v4750_v29  ;;  %v12449_v9 = vshll.u32 %v12447_v5, 16  ;;  %v12454_v61 = vld [vmem:[#allocation17_spill] sm:$0xff] }
 0x409   : > { %v4749_v35 = vor.u32 %v4748_v14, %v4747_v37  ;;  %v4754_v7 = vrot.slane %v12445_v8, 4  ;;  %v4755_v62 = vrot.slane %v12446_v12, 5  ;;  %v12450_v14 = vld [vmem:[#allocation15_spill] sm:$0xff]  ;;  %v12455_v6 = vshrl.u32 %v12454_v61, 16 }
 0x40a   : > { %7797 = vmatmul.mubr.msk.bf16.vlgmr.msra.gmra.mrb[0].mxu1 %vm1120_vm10, %v10826_v56  ;;  %v10944_v23 = vsel %vm1546_vm11, %v4742_v33, %v4745_v55  ;;  %v4758_v3 = vrot.slane %v12449_v9, 5  ;;  %v12451_v37 = vshrl.u32 %v12450_v14, 16  ;;  %v12453_v25 = vshll.u32 %v12450_v14, 16  ;;  %v12457_v9 = vld [vmem:[#allocation20_spill] sm:$0xff] }
 0x40b   : > { %7829 = vmatpush3.bf16.msra.mxu1 %v12452_v40  ;;  %7800 = vmatprep.mubr.msk.bf16.mxu1 %vm1120_vm10, %v10835_v31  ;;  %v4756_v12 = vor.u32 %v4755_v62, %v4754_v7  ;;  %v4764_v33 = vrot.slane %v12455_v6, 4  ;;  %v12456_v29 = vshll.u32 %v12454_v61, 16  ;;  %v10962_v5 = vsel %vm1546_vm11, %v4749_v35, %v4752_v26  ;;  %v12463_v26 = vld [vmem:[#allocation30_spill] sm:$0xff] }
 0x40c   : > { %v4761_v38 = vrot.slane %v12451_v37, 4  ;;  %v4762_v8 = vrot.slane %v12453_v25, 5  ;;  %8590 = vmatprep.subr.msk.bf16.mxu1 %vm1169_vm0, %v10933_v21  ;;  %v4759_v0 = vor.u32 %v4758_v3, %v4757_v50  ;;  %v12458_v37 = vshrl.u32 %v12457_v9, 16 }
 0x40d   : > { %v4765_v55 = vrot.slane %v12456_v29, 5  ;;  %v12459_v7 = vshll.u32 %v12457_v9, 16  ;;  %v12461_v6 = vshrl.u32 %v12460_v32, 16  ;;  %v12462_v61 = vshll.u32 %v12460_v32, 16 }
 0x40e   : > { %v4768_v40 = vrot.slane %v12458_v37, 4  ;;  %v4763_v14 = vor.u32 %v4762_v8, %v4761_v38  ;;  %v10973_v54 = vsel %vm1546_vm11, %v4756_v12, %v4759_v0  ;;  %v12464_v50 = vshrl.u32 %v12463_v26, 16  ;;  %v12466_v8 = vld [vmem:[#allocation12_spill] sm:$0xff] }
 0x40f   : > { %v4769_v62 = vrot.slane %v12459_v7, 5  ;;  %v4766_v25 = vor.u32 %v4765_v55, %v4764_v33  ;;  %v4771_v36 = vrot.slane %v12461_v6, 4  ;;  %v4772_v29 = vrot.slane %v12462_v61, 5  ;;  %v12469_v12 = vld [vmem:[#allocation16_spill] sm:$0xff] }
 0x410   : > { %v4775_v3 = vrot.slane %v12464_v50, 4  ;;  %v12465_v37 = vshll.u32 %v12463_v26, 16  ;;  %v12467_v33 = vshrl.u32 %v12466_v8, 16  ;;  %v12468_v32 = vshll.u32 %v12466_v8, 16 }
 0x411   : > { %v4770_v35 = vor.u32 %v4769_v62, %v4768_v40  ;;  %v10980_v9 = vsel %vm1546_vm11, %v4763_v14, %v4766_v25  ;;  %v4773_v38 = vor.u32 %v4772_v29, %v4771_v36  ;;  %v12470_v0 = vshrl.u32 %v12469_v12, 16 }
 0x412   : > { %v4776_v15 = vrot.slane %v12465_v37, 5  ;;  %v4778_v55 = vrot.slane %v12467_v33, 4  ;;  %v4779_v7 = vrot.slane %v12468_v32, 5  ;;  %v12471_v62 = vshll.u32 %v12469_v12, 16  ;;  %7801 = vmatmul.mubr.msk.bf16.gmra.mrb[4].mxu1 %vm1120_vm10, %v10841_v60 }
 0x413   : > { %v4782_v40 = vrot.slane %v12470_v0, 4  ;;  %v12472_v26 = vshrl.u32 %v10542_v30, 16  ;;  %v10993_v14 = vsel %vm1546_vm11, %v4770_v35, %v4773_v38  ;;  %v12473_v25 = vshll.u32 %v10542_v30, 16  ;;  %7804 = vmatprep.mubr.msk.bf16.mxu1 %vm1120_vm10, %v10844_v4 }
 0x414   : > { %v4777_v6 = vor.u32 %v4776_v15, %v4775_v3  ;;  %v4783_v61 = vrot.slane %v12471_v62, 5  ;;  %v4780_v36 = vor.u32 %v4779_v7, %v4778_v55  ;;  %v4789_v37 = vrot.slane %v4101_v48, 4 }
 0x415   : > { %v4785_v50 = vrot.slane %v12472_v26, 4  ;;  %v4786_v29 = vrot.slane %v12473_v25, 5  ;;  %v4790_v3 = vrot.slane %v4104_v34, 5  ;;  %v4792_v8 = vrot.slane %v4109_v19, 4 }
 0x416   : > { %v4784_v15 = vor.u32 %v4783_v61, %v4782_v40  ;;  %v4793_v35 = vrot.slane %v4112_v59, 5  ;;  %v11010_v30 = vsel %vm1546_vm11, %v4777_v6, %v4780_v36  ;;  %v4796_v38 = vrot.slane %v4118_v13, 4 }
 0x417   : > { %v4787_v48 = vor.u32 %v4786_v29, %v4785_v50  ;;  %v12474_v33 = vshll.u32 %v10602_v11, 16  ;;  %v4791_v34 = vor.u32 %v4790_v3, %v4789_v37  ;;  %v12475_v19 = vshrl.u32 %v10614_v43, 16 }
 0x418   : > { %v4794_v55 = vor.u32 %v4793_v35, %v4792_v8  ;;  %v4800_v59 = vrot.slane %v12476_v22, 5  ;;  %v12477_v12 = vshrl.u32 %v10616_v51, 16  ;;  %v12478_v40 = vshll.u32 %v10616_v51, 16 }
 0x419   : > { %v4797_v1 = vrot.slane %v12474_v33, 5  ;;  %v4799_v32 = vrot.slane %v12475_v19, 4  ;;  %v11021_v7 = vsel %vm1546_vm11, %v4784_v15, %v4787_v48  ;;  %v12479_v50 = vshrl.u32 %v10618_v47, 16 }
 0x41a   : > { %v4803_v0 = vrot.slane %v12477_v12, 4  ;;  %v4804_v62 = vrot.slane %v12478_v40, 5  ;;  %v11028_v61 = vsel %vm1546_vm11, %v4791_v34, %v4794_v55  ;;  %v12480_v25 = vshll.u32 %v10618_v47, 16  ;;  %7805 = vmatmul.mubr.msk.bf16.gmra.mrb[8].mxu1 %vm1120_vm10, %v10847_v2 }
 0x41b   : > { %v4798_v6 = vor.u32 %v4797_v1, %v4796_v38  ;;  %v4801_v26 = vor.u32 %v4800_v59, %v4799_v32  ;;  %v4806_v36 = vrot.slane %v12479_v50, 4  ;;  %v12481_v15 = vshrl.u32 %v10622_v41, 16  ;;  %7808 = vmatprep.mubr.msk.bf16.mxu1 %vm1120_vm10, %v10850_v16 }
 0x41c   : > { %v4807_v29 = vrot.slane %v12480_v25, 5  ;;  %v4805_v37 = vor.u32 %v4804_v62, %v4803_v0  ;;  %v12482_v8 = vshll.u32 %v10622_v41, 16  ;;  %v12483_v48 = vshrl.u32 %v10624_v52, 16 }
 0x41d   : > { %v4810_v3 = vrot.slane %v12481_v15, 4  ;;  %v11041_v33 = vsel %vm1546_vm11, %v4798_v6, %v4801_v26  ;;  %v12484_v34 = vshll.u32 %v10624_v52, 16  ;;  %v12485_v19 = vshrl.u32 %v10626_v28, 16 }
 0x41e   : > { %v4811_v35 = vrot.slane %v12482_v8, 5  ;;  %v4813_v38 = vrot.slane %v12483_v48, 4  ;;  %v4808_v1 = vor.u32 %v4807_v29, %v4806_v36  ;;  %v12486_v59 = vshll.u32 %v10626_v28, 16 }
 0x41f   : > { %v4814_v55 = vrot.slane %v12484_v34, 5  ;;  %v4817_v32 = vrot.slane %v12485_v19, 4  ;;  %v12487_v0 = vshrl.u32 %v10634_v17, 16  ;;  %v12488_v62 = vshll.u32 %v10634_v17, 16 }
 0x420   : > { %v4812_v22 = vor.u32 %v4811_v35, %v4810_v3  ;;  %v4818_v12 = vrot.slane %v12486_v59, 5  ;;  %v11056_v6 = vsel %vm1546_vm11, %v4805_v37, %v4808_v1  ;;  %v12489_v36 = vshrl.u32 %v12421_v10, 16  ;;  %v3675_v37 = vld [vmem:[#allocation2 + $0x100] sm:$0x10]  ;;  %v3801_v1 = vld [vmem:[#allocation2 + $0x108] sm:$0x8] }
 0x421   : > { %v4820_v40 = vrot.slane %v12487_v0, 4  ;;  %v4821_v50 = vrot.slane %v12488_v62, 5  ;;  %v4815_v26 = vor.u32 %v4814_v55, %v4813_v38  ;;  %v12490_v29 = vshll.u32 %v12421_v10, 16 }
 0x422   : > { %v4824_v25 = vrot.slane %v12489_v36, 4  ;;  %v4819_v3 = vor.u32 %v4818_v12, %v4817_v32  ;;  %v12491_v35 = vshrl.u32 %v12424_v63, 16  ;;  %v12492_v34 = vshll.u32 %v12424_v63, 16  ;;  %v3779_v32 = vld [vmem:[#allocation2 + $0x100] sm:$0x8]  ;;  %v11075_v12 = vld [vmem:[#allocation2 + $0x110] sm:$0xff]  ;;  %7809 = vmatmul.mubr.msk.bf16.gmra.mrb[12].mxu1 %vm1120_vm10, %v10853_v44 }
 0x423   : > { %v4825_v15 = vrot.slane %v12490_v29, 5  ;;  %v4822_v8 = vor.u32 %v4821_v50, %v4820_v40  ;;  %v11069_v38 = vsel %vm1546_vm11, %v4812_v22, %v4815_v26  ;;  %v12493_v59 = vshrl.u32 %v10550_v46, 16  ;;  %7812 = vmatprep.mubr.msk.bf16.mxu1 %vm1120_vm10, %v10867_v42 }
 0x424   : > { %v4827_v48 = vrot.slane %v12491_v35, 4  ;;  %v4828_v19 = vrot.slane %v12492_v34, 5  ;;  %v12494_v62 = vshll.u32 %v10550_v46, 16  ;;  %v12495_v29 = vshrl.u32 %v10554_v24, 16 }
 0x425   : > { %v4826_v55 = vor.u32 %v4825_v15, %v4824_v25  ;;  %v4831_v0 = vrot.slane %v12493_v59, 4  ;;  %v11078_v40 = vsel %vm1546_vm11, %v4819_v3, %v4822_v8  ;;  %v12496_v22 = vshll.u32 %v10554_v24, 16  ;;  %v3905_v25 = vld [vmem:[#allocation2 + $0x108] sm:$0x10]  ;;  %v11084_v15 = vld [vmem:[#allocation2 + $0x118] sm:$0xff] }
 0x426   : > { %v4832_v36 = vrot.slane %v12494_v62, 5  ;;  %v4829_v50 = vor.u32 %v4828_v19, %v4827_v48  ;;  %v4834_v35 = vrot.slane %v12495_v29, 4  ;;  %v4120_v34 = vrot.slane %v4118_v13, 3 }
 0x427   : > { %v4835_v26 = vrot.slane %v12496_v22, 5  ;;  %v3711_v62 = vrot.slane %v3675_v37, 1  ;;  %v3837_v18 = vrot.slane %v3801_v1, 7  ;;  %v5717_v8 = vshrl.u32 %v11075_v12, 16 }
 0x428   : > { %v4833_v59 = vor.u32 %v4832_v36, %v4831_v0  ;;  %v11089_v49 = vsel %vm1546_vm11, %v4826_v55, %v4829_v50  ;;  %v12154_v48 = vshll.u32 %v11075_v12, 16  ;;  %v12153_v16 = vshrl.u32 %v11084_v15, 16 }
 0x429   : > { %v4836_v3 = vor.u32 %v4835_v26, %v4834_v35  ;;  %v3780_v29 = vsel %vm8758_vm7, %v3711_v62, %v3779_v32  ;;  %v3906_v20 = vsel %vm8770_vm8, %v3837_v18, %v3905_v25  ;;  %v12152_v13 = vshll.u32 %v11084_v15, 16 }
 0x42a   : > { %v4115_v37 = vor.u32 %v10861_v53, %v10857_v39  ;;  %v12499_v1 = vshll.u32 %v10602_v11, 16  ;;  %3781 = vst [vmem:[#allocation2 + $0x100] sm:$0x8] %v3780_v29  ;;  %3907 = vst [vmem:[#allocation2 + $0x108] sm:$0x10] %v3906_v20  ;;  %v5936_v36 = vrot.slane %v11075_v12, 4  ;;  %v12502_v62 = vor.u32 %v10817_v45, %v10813_v57 }
 0x42b   : > { %v11104_v0 = vsel %vm1546_vm11, %v4833_v59, %v4836_v3  ;;  %v12500_v18 = vshrl.u32 %v10614_v43, 16  ;;  %v12501_v50 = vshll.u32 %v10614_v43, 16  ;;  %v5937_v39 = vrot.slane %v11084_v15, 4 }
 0x42c   : > { %v4123_v55 = vrot.slane %v12499_v1, 4  ;;  %v6140_v11 = vrot.slane %v5717_v8, 4  ;;  %v6141_v20 = vrot.slane %v12154_v48, 5  ;;  %v6143_v53 = vrot.slane %v12153_v16, 4 }
 0x42d   : > { %v4128_v32 = vrot.slane %v12500_v18, 3  ;;  %v4131_v35 = vrot.slane %v12501_v50, 4  ;;  %v6144_v26 = vrot.slane %v12152_v13, 5  ;;  %v11125_v43 = vsel %vm1069_vm9, %v5936_v36, %v5937_v39 }
 0x42e   : > { %v6142_v25 = vor.u32 %v6141_v20, %v6140_v11  ;;  %v11131_v3 = vsel %vm672_vm6, %v12502_v62, %v4115_v37  ;;  %v4124_v19 = vor.u32 %v4123_v55, %v4120_v34  ;;  %v12503_v22 = vshrl.u32 %v10616_v51, 16 }
 0x42f   : > { %v6145_v59 = vor.u32 %v6144_v26, %v6143_v53  ;;  %v4132_v29 = vor.u32 %v4131_v35, %v4128_v32  ;;  %v12504_v18 = vshll.u32 %v10616_v51, 16  ;;  %v12505_v13 = vshrl.u32 %v10618_v47, 16  ;;  %7813 = vmatmul.mubr.msk.bf16.gmra.mrb[16].mxu1 %vm1120_vm10, %v11131_v3 }
 0x430   : > { %v4137_v1 = vrot.slane %v12503_v22, 3  ;;  %v12506_v39 = vshll.u32 %v10618_v47, 16  ;;  %v12507_v57 = vshrl.u32 %v10622_v41, 16  ;;  %v12508_v34 = vshll.u32 %v10622_v41, 16 }
 0x431   : > { %v4140_v50 = vrot.slane %v12504_v18, 4  ;;  %v4145_v36 = vrot.slane %v12505_v13, 3  ;;  %v11142_v20 = vsel %vm1546_vm11, %v6142_v25, %v6145_v59  ;;  %v12509_v55 = vshrl.u32 %v10624_v52, 16  ;;  %v11152_v53 = vld [vmem:[#allocation2 + $0x100] sm:$0xff]  ;;  %v11154_v13 = vld [vmem:[#allocation2 + $0x108] sm:$0xff] }
 0x432   : > { %v4148_v11 = vrot.slane %v12506_v39, 4  ;;  %v4154_v45 = vrot.slane %v12507_v57, 3  ;;  %v4157_v37 = vrot.slane %v12508_v34, 4  ;;  %v12510_v51 = vshll.u32 %v10624_v52, 16 }
 0x433   : > { %v4162_v32 = vrot.slane %v12509_v55, 3  ;;  %v5085_v47 = vshrl.u32 %v11152_v53, 16  ;;  %v5088_v26 = vshll.u32 %v11152_v53, 16  ;;  %v5093_v25 = vshrl.u32 %v11154_v13, 16 }
 0x434   : > { %v4165_v35 = vrot.slane %v12510_v51, 4  ;;  %v5096_v59 = vshll.u32 %v11154_v13, 16  ;;  %v11163_v41 = vsel %vm672_vm6, %v4124_v19, %v4132_v29  ;;  %v5304_v52 = vrot.slane %v11152_v53, 4  ;;  %v12524_v53 = vld [vmem:[#allocation9_spill] sm:$0xff] }
 0x435   : > { %v5305_v62 = vrot.slane %v11154_v13, 4  ;;  %7816 = vmatprep.mubr.msk.bf16.mxu1 %vm1120_vm10, %v11163_v41  ;;  %v4141_v22 = vor.u32 %v4140_v50, %v4137_v1  ;;  %v4149_v18 = vor.u32 %v4148_v11, %v4145_v36  ;;  %v5508_v57 = vrot.slane %v5085_v47, 4 }
 0x436   : > { %v5509_v34 = vrot.slane %v5088_v26, 5  ;;  %v5511_v19 = vrot.slane %v5093_v25, 4  ;;  %v4158_v29 = vor.u32 %v4157_v37, %v4154_v45  ;;  %v4166_v55 = vor.u32 %v4165_v35, %v4162_v32 }
 0x437   : > { %v11170_v39 = vsel %vm1069_vm9, %v5304_v52, %v5305_v62  ;;  %v5512_v51 = vrot.slane %v5096_v59, 5  ;;  %v11181_v50 = vsel %vm672_vm6, %v4141_v22, %v4149_v18  ;;  %v12511_v36 = vshrl.u32 %v10626_v28, 16 }
 0x438   : > { %v5510_v16 = vor.u32 %v5509_v34, %v5508_v57  ;;  %v12512_v52 = vshll.u32 %v10626_v28, 16  ;;  %v11188_v48 = vsel %vm672_vm6, %v4158_v29, %v4166_v55  ;;  %v12513_v45 = vshrl.u32 %v10634_v17, 16  ;;  %7817 = vmatmul.mubr.msk.bf16.gmra.mrb[20].mxu1 %vm1120_vm10, %v11181_v50 }
 0x439   : > { %v5513_v1 = vor.u32 %v5512_v51, %v5511_v19  ;;  %v4171_v11 = vrot.slane %v12511_v36, 3  ;;  %v12514_v32 = vshll.u32 %v10634_v17, 16  ;;  %v12515_v22 = vshrl.u32 %v12421_v10, 16  ;;  %7820 = vmatprep.mubr.msk.bf16.mxu1 %vm1120_vm10, %v11188_v48 }
 0x43a   : > { %v4174_v62 = vrot.slane %v12512_v52, 4  ;;  %v4179_v37 = vrot.slane %v12513_v45, 3  ;;  %v12516_v28 = vshll.u32 %v12421_v10, 16  ;;  %v12517_v19 = vshrl.u32 %v12424_v63, 16 }
 0x43b   : > { %v4182_v35 = vrot.slane %v12514_v32, 4  ;;  %v11195_v57 = vsel %vm1546_vm11, %v5510_v16, %v5513_v1  ;;  %v4188_v18 = vrot.slane %v12515_v22, 3  ;;  %v12518_v55 = vshll.u32 %v12424_v63, 16 }
 0x43c   : > { %v4191_v34 = vrot.slane %v12516_v28, 4  ;;  %v4196_v29 = vrot.slane %v12517_v19, 3  ;;  %v4175_v17 = vor.u32 %v4174_v62, %v4171_v11  ;;  %v12519_v52 = vshrl.u32 %v10550_v46, 16 }
 0x43d   : > { %v4199_v51 = vrot.slane %v12518_v55, 4  ;;  %v4183_v16 = vor.u32 %v4182_v35, %v4179_v37  ;;  %v12520_v10 = vshll.u32 %v10550_v46, 16  ;;  %v12521_v28 = vshrl.u32 %v10554_v24, 16  ;;  %v7056_v35 = vld [vmem:[%s11984_s5 + $0x8] sm:$0x3] }
 0x43e   : > { %v4192_v1 = vor.u32 %v4191_v34, %v4188_v18  ;;  %v4205_v45 = vrot.slane %v12519_v52, 3  ;;  %v12522_v19 = vshll.u32 %v10554_v24, 16  ;;  %v5107_v24 = vsel %vm1169_vm0, %v10933_v21, 0  ;;  %v7073_v21 = vld [vmem:[%s11984_s5 + $0xa] sm:$0x3]  ;;  %v12529_v52 = vld [vmem:[#allocation29_spill] sm:$0xff] }
 0x43f   : > { %v4200_v36 = vor.u32 %v4199_v51, %v4196_v29  ;;  %v11212_v32 = vsel %vm672_vm6, %v4175_v17, %v4183_v16  ;;  %v4208_v22 = vrot.slane %v12520_v10, 4  ;;  %v4213_v63 = vrot.slane %v12521_v28, 3  ;;  %v12531_v10 = vld [vmem:[#allocation25_spill] sm:$0xff] }
 0x440   : > { %v4216_v55 = vrot.slane %v12522_v19, 4  ;;  %7821 = vmatmul.mubr.msk.bf16.gmra.mrb[24].mxu1 %vm1120_vm10, %v11212_v32  ;;  %v5087_v18 = vrot.slane %v5085_v47, 3  ;;  %v5090_v34 = vrot.slane %v5088_v26, 4  ;;  %v5095_v29 = vrot.slane %v5093_v25, 3  ;;  %v7090_v47 = vld [vmem:[%s11984_s5 + $0xc] sm:$0x3] }
 0x441   : > { %v11223_v11 = vsel %vm672_vm6, %v4192_v1, %v4200_v36  ;;  %v4209_v62 = vor.u32 %v4208_v22, %v4205_v45  ;;  %v5098_v51 = vrot.slane %v5096_v59, 4  ;;  %v5521_v13 = vsel %vm1169_vm0, %v7073_v21, 0  ;;  %v12525_v26 = vld [vmem:[#allocation11_spill] sm:$0xff]  ;;  %v12526_v25 = vld [vmem:[#allocation13_spill] sm:$0xff]  ;;  %v12527_v59 = vld [vmem:[#allocation14_spill] sm:$0xff] }
 0x442   : > { %7824 = vmatprep.mubr.msk.bf16.mxu1 %vm1120_vm10, %v11223_v11  ;;  %v4217_v37 = vor.u32 %v4216_v55, %v4213_v63  ;;  %v5091_v17 = vor.u32 %v5090_v34, %v5087_v18  ;;  %v12528_v36 = vld [vmem:[#allocation28_spill] sm:$0xff]  ;;  %v12530_v45 = vld [vmem:[#allocation19_spill] sm:$0xff]  ;;  %v12532_v22 = vld [vmem:[#allocation26_spill] sm:$0xff] }
 0x443   : > { %v5099_v16 = vor.u32 %v5098_v51, %v5095_v29  ;;  %v12533_v28 = vld [vmem:[#allocation33_spill] sm:$0xff]  ;;  %v12534_v63 = vld [vmem:[#allocation34_spill] sm:$0xff]  ;;  %v12535_v19 = vld [vmem:[#allocation35_spill] sm:$0xff] }
 0x444   : > { %v11228_v46 = vsel %vm672_vm6, %v4209_v62, %v4217_v37  ;;  %v12536_v55 = vld [vmem:[#allocation36_spill] sm:$0xff]  ;;  %v12537_v62 = vld [vmem:[#allocation39_spill] sm:$0xff] }
 0x445   : > { %v11314_v1 = vsel %vm672_vm6, %v5091_v17, %v5099_v16  ;;  %v12538_v37 = vld [vmem:[#allocation40_spill] sm:$0xff] }
 0x448   : > { %7825 = vmatmul.mubr.msk.bf16.gmra.mrb[28].mxu1 %vm1120_vm10, %v11228_v46 }
 0x449   : > { %7830 = vmatprep.mubr.msk.bf16.mxu1 %vm1120_vm10, %v10926_v58  ;;  %v5313_v58 = vsel %vm1169_vm0, %v7056_v35, 0 }
 0x450   : > { %7831 = vmatmul.mubr.msk.bf16.vlgmr.msra.gmra.mrb[0].mxu1 %vm1120_vm10, %v10905_v27 }
 0x451   : > { %7863 = vmatpush3.bf16.msra.mxu1 %v5107_v24  ;;  %7834 = vmatprep.mubr.msk.bf16.mxu1 %vm1120_vm10, %v10944_v23  ;;  %v5739_v24 = vsel %vm1169_vm0, %v7090_v47, 0 }
 0x452   : > { %8591 = vmatprep.subr.msk.bf16.mxu1 %vm1169_vm0, %v7056_v35  ;;  %v7107_v35 = vld [vmem:[%s11984_s5 + $0xe] sm:$0x3] }
 0x458   : > { %7835 = vmatmul.mubr.msk.bf16.gmra.mrb[4].mxu1 %vm1120_vm10, %v10962_v5 }
 0x459   : > { %7838 = vmatprep.mubr.msk.bf16.mxu1 %vm1120_vm10, %v10973_v54 }
 0x460   : > { %7839 = vmatmul.mubr.msk.bf16.gmra.mrb[8].mxu1 %vm1120_vm10, %v10980_v9 }
 0x461   : > { %7842 = vmatprep.mubr.msk.bf16.mxu1 %vm1120_vm10, %v10993_v14 }
 0x468   : > { %7843 = vmatmul.mubr.msk.bf16.gmra.mrb[12].mxu1 %vm1120_vm10, %v11010_v30 }
 0x469   : > { %7846 = vmatprep.mubr.msk.bf16.mxu1 %vm1120_vm10, %v11021_v7 }
 0x470   : > { %7847 = vmatmul.mubr.msk.bf16.gmra.mrb[16].mxu1 %vm1120_vm10, %v11028_v61 }
 0x471   : > { %7850 = vmatprep.mubr.msk.bf16.mxu1 %vm1120_vm10, %v11041_v33 }
 0x478   : > { %7851 = vmatmul.mubr.msk.bf16.gmra.mrb[20].mxu1 %vm1120_vm10, %v11056_v6 }
 0x479   : > { %7854 = vmatprep.mubr.msk.bf16.mxu1 %vm1120_vm10, %v11069_v38 }
 0x480   : > { %7855 = vmatmul.mubr.msk.bf16.gmra.mrb[24].mxu1 %vm1120_vm10, %v11078_v40 }
 0x481   : > { %7858 = vmatprep.mubr.msk.bf16.mxu1 %vm1120_vm10, %v11089_v49 }
 0x488   : > { %7859 = vmatmul.mubr.msk.bf16.gmra.mrb[28].mxu1 %vm1120_vm10, %v11104_v0 }
 0x489   : > { %7864 = vmatprep.mubr.msk.bf16.mxu1 %vm1120_vm10, %v10826_v56  ;;  %v12523_v56 = vld [vmem:[#allocation41_spill] sm:$0xff] }
 0x490   : > { %7865 = vmatmul.mubr.msk.bf16.vlgmr.msra.gmra.mrb[0].mxu1 %vm1120_vm10, %v10835_v31 }
 0x491   : > { %7897 = vmatpush3.bf16.msra.mxu1 %v5313_v58  ;;  %7868 = vmatprep.mubr.msk.bf16.mxu1 %vm1120_vm10, %v10841_v60  ;;  %v7124_v58 = vld [vmem:[%s11984_s5 + $0x10] sm:$0x3] }
 0x492   : > { %8592 = vmatprep.subr.msk.bf16.mxu1 %vm1169_vm0, %v7073_v21 }
 0x498   : > { %7869 = vmatmul.mubr.msk.bf16.gmra.mrb[4].mxu1 %vm1120_vm10, %v10844_v4 }
 0x499   : > { %7872 = vmatprep.mubr.msk.bf16.mxu1 %vm1120_vm10, %v10847_v2 }
 0x4a0   : > { %7873 = vmatmul.mubr.msk.bf16.gmra.mrb[8].mxu1 %vm1120_vm10, %v12523_v56 }
 0x4a1   : > { %7876 = vmatprep.mubr.msk.bf16.mxu1 %vm1120_vm10, %v10853_v44 }
 0x4a8   : > { %7877 = vmatmul.mubr.msk.bf16.gmra.mrb[12].mxu1 %vm1120_vm10, %v10867_v42 }
 0x4a9   : > { %7880 = vmatprep.mubr.msk.bf16.mxu1 %vm1120_vm10, %v11131_v3 }
 0x4b0   : > { %7881 = vmatmul.mubr.msk.bf16.gmra.mrb[16].mxu1 %vm1120_vm10, %v11163_v41 }
 0x4b1   : > { %7884 = vmatprep.mubr.msk.bf16.mxu1 %vm1120_vm10, %v11181_v50 }
 0x4b8   : > { %7885 = vmatmul.mubr.msk.bf16.gmra.mrb[20].mxu1 %vm1120_vm10, %v11188_v48 }
 0x4b9   : > { %7888 = vmatprep.mubr.msk.bf16.mxu1 %vm1120_vm10, %v11212_v32 }
 0x4c0   : > { %7889 = vmatmul.mubr.msk.bf16.gmra.mrb[24].mxu1 %vm1120_vm10, %v11223_v11 }
 0x4c1   : > { %7892 = vmatprep.mubr.msk.bf16.mxu1 %vm1120_vm10, %v11228_v46 }
 0x4c8   : > { %7893 = vmatmul.mubr.msk.bf16.gmra.mrb[28].mxu1 %vm1120_vm10, %v11314_v1 }
 0x4c9   : > { %7898 = vmatprep.mubr.msk.bf16.mxu1 %vm1120_vm10, %v12524_v53 }
 0x4d0   : > { %7899 = vmatmul.mubr.msk.bf16.vlgmr.msra.gmra.mrb[0].mxu1 %vm1120_vm10, %v12525_v26 }
 0x4d1   : > { %7931 = vmatpush3.bf16.msra.mxu1 %v5521_v13  ;;  %7902 = vmatprep.mubr.msk.bf16.mxu1 %vm1120_vm10, %v12526_v25 }
 0x4d2   : > { %8593 = vmatprep.subr.msk.bf16.mxu1 %vm1169_vm0, %v7090_v47 }
 0x4d8   : > { %7903 = vmatmul.mubr.msk.bf16.gmra.mrb[4].mxu1 %vm1120_vm10, %v12527_v59 }
 0x4d9   : > { %7906 = vmatprep.mubr.msk.bf16.mxu1 %vm1120_vm10, %v12528_v36 }
 0x4e0   : > { %7907 = vmatmul.mubr.msk.bf16.gmra.mrb[8].mxu1 %vm1120_vm10, %v12529_v52 }
 0x4e1   : > { %7910 = vmatprep.mubr.msk.bf16.mxu1 %vm1120_vm10, %v12530_v45 }
 0x4e8   : > { %7911 = vmatmul.mubr.msk.bf16.gmra.mrb[12].mxu1 %vm1120_vm10, %v12531_v10 }
 0x4e9   : > { %7914 = vmatprep.mubr.msk.bf16.mxu1 %vm1120_vm10, %v12532_v22 }
 0x4f0   : > { %7915 = vmatmul.mubr.msk.bf16.gmra.mrb[16].mxu1 %vm1120_vm10, %v12533_v28 }
 0x4f1   : > { %7918 = vmatprep.mubr.msk.bf16.mxu1 %vm1120_vm10, %v12534_v63 }
 0x4f8   : > { %7919 = vmatmul.mubr.msk.bf16.gmra.mrb[20].mxu1 %vm1120_vm10, %v12535_v19 }
 0x4f9   : > { %7922 = vmatprep.mubr.msk.bf16.mxu1 %vm1120_vm10, %v12536_v55 }
 0x500   : > { %7923 = vmatmul.mubr.msk.bf16.gmra.mrb[24].mxu1 %vm1120_vm10, %v12537_v62 }
 0x501   : > { %7926 = vmatprep.mubr.msk.bf16.mxu1 %vm1120_vm10, %v12538_v37 }
 0x508   : > { %7927 = vmatmul.mubr.msk.bf16.gmra.mrb[28].mxu1 %vm1120_vm10, %v11170_v39 }
 0x509   : > { %7932 = vmatprep.mubr.msk.bf16.mxu1 %vm1120_vm10, %v10905_v27  ;;  %v5945_v27 = vsel %vm1169_vm0, %v7107_v35, 0 }
 0x510   : > { %7933 = vmatmul.mubr.msk.bf16.vlgmr.msra.gmra.mrb[0].mxu1 %vm1120_vm10, %v10944_v23 }
 0x511   : > { %7965 = vmatpush3.bf16.msra.mxu1 %v5739_v24  ;;  %7936 = vmatprep.mubr.msk.bf16.mxu1 %vm1120_vm10, %v10962_v5 }
 0x512   : > { %8594 = vmatprep.subr.msk.bf16.mxu1 %vm1169_vm0, %v7107_v35 }
 0x518   : > { %7937 = vmatmul.mubr.msk.bf16.gmra.mrb[4].mxu1 %vm1120_vm10, %v10973_v54 }
 0x519   : > { %7940 = vmatprep.mubr.msk.bf16.mxu1 %vm1120_vm10, %v10980_v9 }
 0x520   : > { %7941 = vmatmul.mubr.msk.bf16.gmra.mrb[8].mxu1 %vm1120_vm10, %v10993_v14 }
 0x521   : > { %7944 = vmatprep.mubr.msk.bf16.mxu1 %vm1120_vm10, %v11010_v30 }
 0x528   : > { %7945 = vmatmul.mubr.msk.bf16.gmra.mrb[12].mxu1 %vm1120_vm10, %v11021_v7 }
 0x529   : > { %7948 = vmatprep.mubr.msk.bf16.mxu1 %vm1120_vm10, %v11028_v61 }
 0x530   : > { %7949 = vmatmul.mubr.msk.bf16.gmra.mrb[16].mxu1 %vm1120_vm10, %v11041_v33 }
 0x531   : > { %7952 = vmatprep.mubr.msk.bf16.mxu1 %vm1120_vm10, %v11056_v6 }
 0x538   : > { %7953 = vmatmul.mubr.msk.bf16.gmra.mrb[20].mxu1 %vm1120_vm10, %v11069_v38 }
 0x539   : > { %7956 = vmatprep.mubr.msk.bf16.mxu1 %vm1120_vm10, %v11078_v40 }
 0x540   : > { %7957 = vmatmul.mubr.msk.bf16.gmra.mrb[24].mxu1 %vm1120_vm10, %v11089_v49 }
 0x541   : > { %7960 = vmatprep.mubr.msk.bf16.mxu1 %vm1120_vm10, %v11104_v0 }
 0x548   : > { %7961 = vmatmul.mubr.msk.bf16.gmra.mrb[28].mxu1 %vm1120_vm10, %v11195_v57 }
 0x549   : > { %7966 = vmatprep.mubr.msk.bf16.mxu1 %vm1120_vm10, %v10835_v31  ;;  %v5719_v31 = vrot.slane %v5717_v8, 3 }
 0x550   : > { %7967 = vmatmul.mubr.msk.bf16.vlgmr.msra.gmra.mrb[0].mxu1 %vm1120_vm10, %v10841_v60  ;;  %v12539_v60 = vshll.u32 %v11075_v12, 16  ;;  %v6153_v12 = vsel %vm1169_vm0, %v7124_v58, 0 }
 0x551   : > { %7999 = vmatpush3.bf16.msra.mxu1 %v5945_v27  ;;  %7970 = vmatprep.mubr.msk.bf16.mxu1 %vm1120_vm10, %v10844_v4 }
 0x552   : > { %8595 = vmatprep.subr.msk.bf16.mxu1 %vm1169_vm0, %v7124_v58  ;;  %v5722_v4 = vrot.slane %v12539_v60, 4 }
 0x558   : > { %7971 = vmatmul.mubr.msk.bf16.gmra.mrb[4].mxu1 %vm1120_vm10, %v10847_v2  ;;  %v12540_v2 = vshrl.u32 %v11084_v15, 16 }
 0x559   : > { %7974 = vmatprep.mubr.msk.bf16.mxu1 %vm1120_vm10, %v12523_v56 }
 0x560   : > { %7975 = vmatmul.mubr.msk.bf16.gmra.mrb[8].mxu1 %vm1120_vm10, %v10853_v44  ;;  %v5727_v44 = vrot.slane %v12540_v2, 3 }
 0x561   : > { %7978 = vmatprep.mubr.msk.bf16.mxu1 %vm1120_vm10, %v10867_v42  ;;  %v12541_v42 = vshll.u32 %v11084_v15, 16 }
 0x568   : > { %7979 = vmatmul.mubr.msk.bf16.gmra.mrb[12].mxu1 %vm1120_vm10, %v11131_v3  ;;  %v5730_v3 = vrot.slane %v12541_v42, 4 }
 0x569   : > { %7982 = vmatprep.mubr.msk.bf16.mxu1 %vm1120_vm10, %v11163_v41 }
 0x56a   : > { %v5731_v41 = vor.u32 %v5730_v3, %v5727_v44 }
 0x570   : > { %7983 = vmatmul.mubr.msk.bf16.gmra.mrb[16].mxu1 %vm1120_vm10, %v11181_v50 }
 0x571   : > { %7986 = vmatprep.mubr.msk.bf16.mxu1 %vm1120_vm10, %v11188_v48  ;;  %v5723_v48 = vor.u32 %v5722_v4, %v5719_v31 }
 0x573   : > { %v5732_v50 = vsel %vm672_vm6, %v5723_v48, %v5731_v41 }
 0x578   : > { %7987 = vmatmul.mubr.msk.bf16.gmra.mrb[20].mxu1 %vm1120_vm10, %v11212_v32 }
 0x579   : > { %7990 = vmatprep.mubr.msk.bf16.mxu1 %vm1120_vm10, %v11223_v11 }
 0x580   : > { %7991 = vmatmul.mubr.msk.bf16.gmra.mrb[24].mxu1 %vm1120_vm10, %v11228_v46 }
 0x581   : > { %7994 = vmatprep.mubr.msk.bf16.mxu1 %vm1120_vm10, %v11314_v1 }
 0x588   : > { %7995 = vmatmul.mubr.msk.bf16.gmra.mrb[28].mxu1 %vm1120_vm10, %v5732_v50 }
 0x589   : > { %8000 = vmatprep.mubr.msk.bf16.mxu1 %vm1120_vm10, %v12525_v26 }
 0x590   : > { %8001 = vmatmul.mubr.msk.bf16.vlgmr.msra.gmra.mrb[0].mxu1 %vm1120_vm10, %v12526_v25 }
 0x591   : > { %8033 = vmatpush3.bf16.msra.mxu1 %v6153_v12  ;;  %8004 = vmatprep.mubr.msk.bf16.mxu1 %vm1120_vm10, %v12527_v59 }
 0x598   : > { %8005 = vmatmul.mubr.msk.bf16.gmra.mrb[4].mxu1 %vm1120_vm10, %v12528_v36 }
 0x599   : > { %8008 = vmatprep.mubr.msk.bf16.mxu1 %vm1120_vm10, %v12529_v52 }
 0x5a0   : > { %8009 = vmatmul.mubr.msk.bf16.gmra.mrb[8].mxu1 %vm1120_vm10, %v12530_v45 }
 0x5a1   : > { %8012 = vmatprep.mubr.msk.bf16.mxu1 %vm1120_vm10, %v12531_v10 }
 0x5a8   : > { %8013 = vmatmul.mubr.msk.bf16.gmra.mrb[12].mxu1 %vm1120_vm10, %v12532_v22 }
 0x5a9   : > { %8016 = vmatprep.mubr.msk.bf16.mxu1 %vm1120_vm10, %v12533_v28 }
 0x5b0   : > { %8017 = vmatmul.mubr.msk.bf16.gmra.mrb[16].mxu1 %vm1120_vm10, %v12534_v63 }
 0x5b1   : > { %8020 = vmatprep.mubr.msk.bf16.mxu1 %vm1120_vm10, %v12535_v19 }
 0x5b8   : > { %8021 = vmatmul.mubr.msk.bf16.gmra.mrb[20].mxu1 %vm1120_vm10, %v12536_v55 }
 0x5b9   : > { %8024 = vmatprep.mubr.msk.bf16.mxu1 %vm1120_vm10, %v12537_v62 }
 0x5c0   : > { %8025 = vmatmul.mubr.msk.bf16.gmra.mrb[24].mxu1 %vm1120_vm10, %v12538_v37 }
 0x5c1   : > { %8028 = vmatprep.mubr.msk.bf16.mxu1 %vm1120_vm10, %v11170_v39 }
 0x5c8   : > { %8029 = vmatmul.mubr.msk.bf16.gmra.mrb[28].mxu1 %vm1120_vm10, %v11125_v43 }
 0x5c9   : > { %8034 = vmatprep.mubr.msk.bf16.mxu1 %vm1120_vm10, %v10944_v23 }
 0x5d0   : > { %8035 = vmatmul.mubr.msk.bf16.vlgmr.msra.gmra.mrb[0].mxu1 %vm1120_vm10, %v10962_v5 }
 0x5d1   : > { %8038 = vmatprep.mubr.msk.bf16.mxu1 %vm1120_vm10, %v10973_v54  ;;  %v11505_v54 = vld [vmem:[%s11985_s6] ss:$0 sm:$0xff] }
 0x5d8   : > { %8039 = vmatmul.mubr.msk.bf16.gmra.mrb[4].mxu1 %vm1120_vm10, %v10980_v9 }
 0x5d9   : > { %8042 = vmatprep.mubr.msk.bf16.mxu1 %vm1120_vm10, %v10993_v14 }
 0x5e0   : > { %8043 = vmatmul.mubr.msk.bf16.gmra.mrb[8].mxu1 %vm1120_vm10, %v11010_v30 }
 0x5e1   : > { %8046 = vmatprep.mubr.msk.bf16.mxu1 %vm1120_vm10, %v11021_v7 }
 0x5e8   : > { %8047 = vmatmul.mubr.msk.bf16.gmra.mrb[12].mxu1 %vm1120_vm10, %v11028_v61 }
 0x5e9   : > { %8050 = vmatprep.mubr.msk.bf16.mxu1 %vm1120_vm10, %v11041_v33 }
 0x5f0   : > { %8051 = vmatmul.mubr.msk.bf16.gmra.mrb[16].mxu1 %vm1120_vm10, %v11056_v6 }
 0x5f1   : > { %8054 = vmatprep.mubr.msk.bf16.mxu1 %vm1120_vm10, %v11069_v38 }
 0x5f8   : > { %8055 = vmatmul.mubr.msk.bf16.gmra.mrb[20].mxu1 %vm1120_vm10, %v11078_v40 }
 0x5f9   : > { %8058 = vmatprep.mubr.msk.bf16.mxu1 %vm1120_vm10, %v11089_v49 }
 0x600   : > { %8059 = vmatmul.mubr.msk.bf16.gmra.mrb[24].mxu1 %vm1120_vm10, %v11104_v0 }
 0x601   : > { %8062 = vmatprep.mubr.msk.bf16.mxu1 %vm1120_vm10, %v11195_v57 }
 0x608   : > { %8063 = vmatmul.mubr.msk.bf16.gmra.mrb[28].mxu1 %vm1120_vm10, %v11142_v20 }
 0x6a3   : > { %v8036_v23 = vpop.f32.mrb[0].mxu1 }
 0x6a4   : > { %v6189_v5 = vpop.f32.mrb[1].mxu1  ;;  %v11508_v9 = vadd.f32 %v8036_v23, %v11505_v54 }
 0x6a5   : > { %v11511_v49 = vadd.f32 %v11505_v54, %v6189_v5  ;;  %v8037_v14 = vpop.f32.mrb[2].mxu1 }
 0x6a6   : > { %v6192_v30 = vpop.f32.mrb[3].mxu1  ;;  %v11516_v61 = vadd.f32 %v8037_v14, %v11505_v54  ;;  %v6458_v6 = vmul.f32 %v11508_v9, %v11508_v9  ;;  %v6390_v0 = vsel %vm1120_vm10, %v11508_v9, 0.0 }
 0x6a7   : > { %v6456_v7 = vmul.f32 %v11511_v49, %v11511_v49  ;;  %v11519_v33 = vadd.f32 %v11505_v54, %v6192_v30  ;;  %v6387_v38 = vsel %vm1120_vm10, %v11511_v49, 0.0 }
 0x6a8   : > { %v6459_v20 = vmul.f32 %v11516_v61, %v11516_v61  ;;  %v6491_v21 = vsel %vm1120_vm10, %v6458_v6, 0.0  ;;  %v6392_v56 = vsel %vm1120_vm10, %v11516_v61, 0.0 }
 0x6a9   : > { %v6388_v40 = vsel %vm1120_vm10, %v11519_v33, 0.0  ;;  %v6457_v15 = vmul.f32 %v11519_v33, %v11519_v33  ;;  %v6488_v43 = vsel %vm1120_vm10, %v6456_v7, 0.0 }
 0x6aa   : > { %v6389_v8 = vadd.f32 %v6388_v40, %v6387_v38  ;;  %v6493_v1 = vsel %vm1120_vm10, %v6459_v20, 0.0 }
 0x6ab   : > { %v6489_v39 = vsel %vm1120_vm10, %v6457_v15, 0.0  ;;  %v8040_v57 = vpop.f32.mrb[4].mxu1 }
 0x6ac   : > { %v6391_v32 = vadd.f32 %v6390_v0, %v6389_v8  ;;  %v6490_v11 = vadd.f32 %v6489_v39, %v6488_v43  ;;  %v6205_v46 = vpop.f32.mrb[5].mxu1  ;;  %v11542_v51 = vadd.f32 %v8040_v57, %v11505_v54 }
 0x6ad   : > { %v11539_v18 = vadd.f32 %v11505_v54, %v6205_v46  ;;  %v8041_v34 = vpop.f32.mrb[6].mxu1 }
 0x6ae   : > { %v6492_v29 = vadd.f32 %v6491_v21, %v6490_v11  ;;  %v6393_v17 = vadd.f32 %v6392_v56, %v6391_v32  ;;  %v6208_v16 = vpop.f32.mrb[7].mxu1  ;;  %v11553_v59 = vadd.f32 %v8041_v34, %v11505_v54  ;;  %v6462_v45 = vmul.f32 %v11542_v51, %v11542_v51 }
 0x6af   : > { %v6394_v53 = vsel %vm1120_vm10, %v11539_v18, 0.0  ;;  %v6460_v13 = vmul.f32 %v11539_v18, %v11539_v18  ;;  %v11550_v47 = vadd.f32 %v11505_v54, %v6208_v16  ;;  %v6398_v63 = vsel %vm1120_vm10, %v11542_v51, 0.0 }
 0x6b0   : > { %v6395_v26 = vadd.f32 %v6394_v53, %v6393_v17  ;;  %v6494_v25 = vadd.f32 %v6493_v1, %v6492_v29  ;;  %v6463_v55 = vmul.f32 %v11553_v59, %v11553_v59  ;;  %v6400_v35 = vsel %vm1120_vm10, %v11553_v59, 0.0 }
 0x6b1   : > { %v6495_v36 = vsel %vm1120_vm10, %v6460_v13, 0.0  ;;  %v6396_v52 = vsel %vm1120_vm10, %v11550_v47, 0.0  ;;  %v6461_v28 = vmul.f32 %v11550_v47, %v11550_v47  ;;  %v6499_v60 = vsel %vm1120_vm10, %v6462_v45, 0.0 }
 0x6b2   : > { %v6496_v10 = vadd.f32 %v6495_v36, %v6494_v25  ;;  %v6397_v22 = vadd.f32 %v6396_v52, %v6395_v26  ;;  %v6501_v50 = vsel %vm1120_vm10, %v6463_v55, 0.0 }
 0x6b3   : > { %v8044_v19 = vpop.f32.mrb[8].mxu1  ;;  %v6497_v37 = vsel %vm1120_vm10, %v6461_v28, 0.0 }
 0x6b4   : > { %v6399_v62 = vadd.f32 %v6398_v63, %v6397_v22  ;;  %v6221_v24 = vpop.f32.mrb[9].mxu1  ;;  %v6498_v27 = vadd.f32 %v6497_v37, %v6496_v10  ;;  %v11574_v4 = vadd.f32 %v8044_v19, %v11505_v54 }
 0x6b5   : > { %v11570_v58 = vadd.f32 %v11505_v54, %v6221_v24  ;;  %v8045_v31 = vpop.f32.mrb[10].mxu1 }
 0x6b6   : > { %v6401_v2 = vadd.f32 %v6400_v35, %v6399_v62  ;;  %v6224_v44 = vpop.f32.mrb[11].mxu1  ;;  %v6500_v42 = vadd.f32 %v6499_v60, %v6498_v27  ;;  %v11585_v23 = vadd.f32 %v8045_v31, %v11505_v54  ;;  %v6466_v6 = vmul.f32 %v11574_v4, %v11574_v4 }
 0x6b7   : > { %v6402_v3 = vsel %vm1120_vm10, %v11570_v58, 0.0  ;;  %v6464_v48 = vmul.f32 %v11570_v58, %v11570_v58  ;;  %v11581_v41 = vadd.f32 %v11505_v54, %v6224_v44  ;;  %v6406_v40 = vsel %vm1120_vm10, %v11574_v4, 0.0 }
 0x6b8   : > { %v6403_v12 = vadd.f32 %v6402_v3, %v6401_v2  ;;  %v6502_v5 = vadd.f32 %v6501_v50, %v6500_v42  ;;  %v6467_v43 = vmul.f32 %v11585_v23, %v11585_v23  ;;  %v6408_v57 = vsel %vm1120_vm10, %v11585_v23, 0.0 }
 0x6b9   : > { %v6503_v14 = vsel %vm1120_vm10, %v6464_v48, 0.0  ;;  %v6404_v30 = vsel %vm1120_vm10, %v11581_v41, 0.0  ;;  %v6465_v7 = vmul.f32 %v11581_v41, %v11581_v41  ;;  %v6507_v21 = vsel %vm1120_vm10, %v6466_v6, 0.0 }
 0x6ba   : > { %v6405_v38 = vadd.f32 %v6404_v30, %v6403_v12  ;;  %v6504_v15 = vadd.f32 %v6503_v14, %v6502_v5  ;;  %v6509_v13 = vsel %vm1120_vm10, %v6467_v43, 0.0 }
 0x6bb   : > { %v6505_v8 = vsel %vm1120_vm10, %v6465_v7, 0.0  ;;  %v8048_v0 = vpop.f32.mrb[12].mxu1 }
 0x6bc   : > { %v6407_v20 = vadd.f32 %v6406_v40, %v6405_v38  ;;  %v6237_v39 = vpop.f32.mrb[13].mxu1  ;;  %v6506_v32 = vadd.f32 %v6505_v8, %v6504_v15  ;;  %v11606_v56 = vadd.f32 %v8048_v0, %v11505_v54 }
 0x6bd   : > { %v11602_v11 = vadd.f32 %v11505_v54, %v6237_v39  ;;  %v8049_v46 = vpop.f32.mrb[14].mxu1 }
 0x6be   : > { %v6409_v34 = vadd.f32 %v6408_v57, %v6407_v20  ;;  %v6240_v29 = vpop.f32.mrb[15].mxu1  ;;  %v6508_v17 = vadd.f32 %v6507_v21, %v6506_v32  ;;  %v11617_v25 = vadd.f32 %v8049_v46, %v11505_v54  ;;  %v6470_v22 = vmul.f32 %v11606_v56, %v11606_v56 }
 0x6bf   : > { %v6410_v16 = vsel %vm1120_vm10, %v11602_v11, 0.0  ;;  %v6468_v1 = vmul.f32 %v11602_v11, %v11602_v11  ;;  %v11613_v53 = vadd.f32 %v11505_v54, %v6240_v29  ;;  %v6414_v63 = vsel %vm1120_vm10, %v11606_v56, 0.0 }
 0x6c0   : > { %v6411_v26 = vadd.f32 %v6410_v16, %v6409_v34  ;;  %v6510_v36 = vadd.f32 %v6509_v13, %v6508_v17  ;;  %v6471_v37 = vmul.f32 %v11617_v25, %v11617_v25  ;;  %v6416_v27 = vsel %vm1120_vm10, %v11617_v25, 0.0 }
 0x6c1   : > { %v6511_v52 = vsel %vm1120_vm10, %v6468_v1, 0.0  ;;  %v6412_v45 = vsel %vm1120_vm10, %v11613_v53, 0.0  ;;  %v6469_v10 = vmul.f32 %v11613_v53, %v11613_v53  ;;  %v6515_v44 = vsel %vm1120_vm10, %v6470_v22, 0.0 }
 0x6c2   : > { %v6413_v28 = vadd.f32 %v6412_v45, %v6411_v26  ;;  %v6512_v19 = vadd.f32 %v6511_v52, %v6510_v36  ;;  %v6517_v30 = vsel %vm1120_vm10, %v6471_v37, 0.0 }
 0x6c3   : > { %v6513_v55 = vsel %vm1120_vm10, %v6469_v10, 0.0  ;;  %v8052_v62 = vpop.f32.mrb[16].mxu1 }
 0x6c4   : > { %v6415_v24 = vadd.f32 %v6414_v63, %v6413_v28  ;;  %v6253_v35 = vpop.f32.mrb[17].mxu1  ;;  %v6514_v31 = vadd.f32 %v6513_v55, %v6512_v19  ;;  %v11638_v42 = vadd.f32 %v8052_v62, %v11505_v54 }
 0x6c5   : > { %v11634_v60 = vadd.f32 %v11505_v54, %v6253_v35  ;;  %v8053_v2 = vpop.f32.mrb[18].mxu1 }
 0x6c6   : > { %v6417_v3 = vadd.f32 %v6416_v27, %v6415_v24  ;;  %v6256_v48 = vpop.f32.mrb[19].mxu1  ;;  %v6516_v50 = vadd.f32 %v6515_v44, %v6514_v31  ;;  %v11649_v6 = vadd.f32 %v8053_v2, %v11505_v54  ;;  %v6474_v0 = vmul.f32 %v11638_v42, %v11638_v42 }
 0x6c7   : > { %v6418_v12 = vsel %vm1120_vm10, %v11634_v60, 0.0  ;;  %v6472_v5 = vmul.f32 %v11634_v60, %v11634_v60  ;;  %v11645_v14 = vadd.f32 %v11505_v54, %v6256_v48  ;;  %v6422_v20 = vsel %vm1120_vm10, %v11638_v42, 0.0 }
 0x6c8   : > { %v6419_v7 = vadd.f32 %v6418_v12, %v6417_v3  ;;  %v6518_v38 = vadd.f32 %v6517_v30, %v6516_v50  ;;  %v6475_v46 = vmul.f32 %v11649_v6, %v11649_v6  ;;  %v6424_v29 = vsel %vm1120_vm10, %v11649_v6, 0.0 }
 0x6c9   : > { %v6519_v40 = vsel %vm1120_vm10, %v6472_v5, 0.0  ;;  %v6420_v15 = vsel %vm1120_vm10, %v11645_v14, 0.0  ;;  %v6473_v8 = vmul.f32 %v11645_v14, %v11645_v14  ;;  %v6523_v13 = vsel %vm1120_vm10, %v6474_v0, 0.0 }
 0x6ca   : > { %v6421_v43 = vadd.f32 %v6420_v15, %v6419_v7  ;;  %v6520_v39 = vadd.f32 %v6519_v40, %v6518_v38  ;;  %v6525_v63 = vsel %vm1120_vm10, %v6475_v46, 0.0 }
 0x6cb   : > { %v6521_v57 = vsel %vm1120_vm10, %v6473_v8, 0.0  ;;  %v8056_v32 = vpop.f32.mrb[20].mxu1 }
 0x6cc   : > { %v6423_v21 = vadd.f32 %v6422_v20, %v6421_v43  ;;  %v6269_v34 = vpop.f32.mrb[21].mxu1  ;;  %v6522_v17 = vadd.f32 %v6521_v57, %v6520_v39  ;;  %v11670_v26 = vadd.f32 %v8056_v32, %v11505_v54 }
 0x6cd   : > { %v11666_v16 = vadd.f32 %v11505_v54, %v6269_v34  ;;  %v8057_v1 = vpop.f32.mrb[22].mxu1 }
 0x6ce   : > { %v6425_v36 = vadd.f32 %v6424_v29, %v6423_v21  ;;  %v6272_v52 = vpop.f32.mrb[23].mxu1  ;;  %v6524_v45 = vadd.f32 %v6523_v13, %v6522_v17  ;;  %v11681_v55 = vadd.f32 %v8057_v1, %v11505_v54  ;;  %v6478_v27 = vmul.f32 %v11670_v26, %v11670_v26 }
 0x6cf   : > { %v6426_v10 = vsel %vm1120_vm10, %v11666_v16, 0.0  ;;  %v6476_v22 = vmul.f32 %v11666_v16, %v11666_v16  ;;  %v11677_v28 = vadd.f32 %v11505_v54, %v6272_v52  ;;  %v6430_v2 = vsel %vm1120_vm10, %v11670_v26, 0.0 }
 0x6d0   : > { %v6427_v19 = vadd.f32 %v6426_v10, %v6425_v36  ;;  %v6526_v62 = vadd.f32 %v6525_v63, %v6524_v45  ;;  %v6479_v50 = vmul.f32 %v11681_v55, %v11681_v55  ;;  %v6432_v30 = vsel %vm1120_vm10, %v11681_v55, 0.0 }
 0x6d1   : > { %v6527_v37 = vsel %vm1120_vm10, %v6476_v22, 0.0  ;;  %v6428_v24 = vsel %vm1120_vm10, %v11677_v28, 0.0  ;;  %v6477_v35 = vmul.f32 %v11677_v28, %v11677_v28  ;;  %v6531_v15 = vsel %vm1120_vm10, %v6478_v27, 0.0 }
 0x6d2   : > { %v6429_v31 = vadd.f32 %v6428_v24, %v6427_v19  ;;  %v6528_v44 = vadd.f32 %v6527_v37, %v6526_v62  ;;  %v6533_v46 = vsel %vm1120_vm10, %v6479_v50, 0.0 }
 0x6d3   : > { %v6529_v3 = vsel %vm1120_vm10, %v6477_v35, 0.0  ;;  %v8060_v48 = vpop.f32.mrb[24].mxu1 }
 0x6d4   : > { %v6431_v12 = vadd.f32 %v6430_v2, %v6429_v31  ;;  %v6285_v5 = vpop.f32.mrb[25].mxu1  ;;  %v6530_v7 = vadd.f32 %v6529_v3, %v6528_v44  ;;  %v11702_v8 = vadd.f32 %v8060_v48, %v11505_v54 }
 0x6d5   : > { %v11698_v38 = vadd.f32 %v11505_v54, %v6285_v5  ;;  %v8061_v40 = vpop.f32.mrb[26].mxu1 }
 0x6d6   : > { %v6433_v0 = vadd.f32 %v6432_v30, %v6431_v12  ;;  %v6288_v43 = vpop.f32.mrb[27].mxu1  ;;  %v6532_v20 = vadd.f32 %v6531_v15, %v6530_v7  ;;  %v11713_v34 = vadd.f32 %v8061_v40, %v11505_v54  ;;  %v6482_v36 = vmul.f32 %v11702_v8, %v11702_v8 }
 0x6d7   : > { %v6434_v39 = vsel %vm1120_vm10, %v11698_v38, 0.0  ;;  %v6480_v57 = vmul.f32 %v11698_v38, %v11698_v38  ;;  %v11709_v32 = vadd.f32 %v11505_v54, %v6288_v43  ;;  %v6438_v45 = vsel %vm1120_vm10, %v11702_v8, 0.0 }
 0x6d8   : > { %v6435_v21 = vadd.f32 %v6434_v39, %v6433_v0  ;;  %v6534_v29 = vadd.f32 %v6533_v46, %v6532_v20  ;;  %v6483_v19 = vmul.f32 %v11713_v34, %v11713_v34  ;;  %v6440_v24 = vsel %vm1120_vm10, %v11713_v34, 0.0 }
 0x6d9   : > { %v6535_v17 = vsel %vm1120_vm10, %v6480_v57, 0.0  ;;  %v6436_v1 = vsel %vm1120_vm10, %v11709_v32, 0.0  ;;  %v6481_v13 = vmul.f32 %v11709_v32, %v11709_v32  ;;  %v6539_v2 = vsel %vm1120_vm10, %v6482_v36, 0.0 }
 0x6da   : > { %v6437_v52 = vadd.f32 %v6436_v1, %v6435_v21  ;;  %v6536_v10 = vadd.f32 %v6535_v17, %v6534_v29  ;;  %v6541_v7 = vsel %vm1120_vm10, %v6483_v19, 0.0 }
 0x6db   : > { %v6537_v22 = vsel %vm1120_vm10, %v6481_v13, 0.0  ;;  %v8064_v63 = vpop.f32.mrb[28].mxu1 }
 0x6dc   : > { %v6439_v62 = vadd.f32 %v6438_v45, %v6437_v52  ;;  %v6301_v37 = vpop.f32.mrb[29].mxu1  ;;  %v6538_v35 = vadd.f32 %v6537_v22, %v6536_v10  ;;  %v11734_v44 = vadd.f32 %v8064_v63, %v11505_v54 }
 0x6dd   : > { %v11730_v27 = vadd.f32 %v11505_v54, %v6301_v37  ;;  %v8065_v31 = vpop.f32.mrb[30].mxu1 }
 0x6de   : > { %v6441_v3 = vadd.f32 %v6440_v24, %v6439_v62  ;;  %v6304_v48 = vpop.f32.mrb[31].mxu1  ;;  %v6540_v50 = vadd.f32 %v6539_v2, %v6538_v35  ;;  %v11745_v15 = vadd.f32 %v8065_v31, %v11505_v54  ;;  %v6486_v57 = vmul.f32 %v11734_v44, %v11734_v44 }
 0x6df   : > { %v6442_v12 = vsel %vm1120_vm10, %v11730_v27, 0.0  ;;  %v6484_v5 = vmul.f32 %v11730_v27, %v11730_v27  ;;  %v11741_v30 = vadd.f32 %v11505_v54, %v6304_v48  ;;  %v6446_v21 = vsel %vm1120_vm10, %v11734_v44, 0.0 }
 0x6e0   : > { %v6443_v40 = vadd.f32 %v6442_v12, %v6441_v3  ;;  %v6542_v0 = vadd.f32 %v6541_v7, %v6540_v50  ;;  %v6487_v17 = vmul.f32 %v11745_v15, %v11745_v15  ;;  %v6448_v13 = vsel %vm1120_vm10, %v11745_v15, 0.0 }
 0x6e1   : > { %v6543_v43 = vsel %vm1120_vm10, %v6484_v5, 0.0  ;;  %v6444_v20 = vsel %vm1120_vm10, %v11741_v30, 0.0  ;;  %v6485_v39 = vmul.f32 %v11741_v30, %v11741_v30  ;;  %v6547_v52 = vsel %vm1120_vm10, %v6486_v57, 0.0 }
 0x6e2   : > { %v6445_v46 = vadd.f32 %v6444_v20, %v6443_v40  ;;  %v6544_v29 = vadd.f32 %v6543_v43, %v6542_v0  ;;  %v6549_v22 = vsel %vm1120_vm10, %v6487_v17, 0.0 }
 0x6e3   : > { %v6545_v54 = vsel %vm1120_vm10, %v6485_v39, 0.0 }
 0x6e4   : > { %v6447_v1 = vadd.f32 %v6446_v21, %v6445_v46  ;;  %v6546_v36 = vadd.f32 %v6545_v54, %v6544_v29 }
 0x6e6   : > { %v6449_v45 = vadd.f32 %v6448_v13, %v6447_v1  ;;  %v6548_v10 = vadd.f32 %v6547_v52, %v6546_v36 }
 0x6e8   : > { %v6450_v63 = vrot.slane %v6449_v45, 4  ;;  %v6550_v19 = vadd.f32 %v6549_v22, %v6548_v10 }
 0x6ea   : > { %v6451_v62 = vadd.f32 %v6450_v63, %v6449_v45  ;;  %v6551_v37 = vrot.slane %v6550_v19, 4 }
 0x6ec   : > { %v6452_v24 = vrot.slane %v6451_v62, 2  ;;  %v6552_v35 = vadd.f32 %v6551_v37, %v6550_v19 }
 0x6ee   : > { %v6453_v31 = vadd.f32 %v6452_v24, %v6451_v62  ;;  %v6553_v2 = vrot.slane %v6552_v35, 2 }
 0x6f0   : > { %v6454_v3 = vrot.slane %v6453_v31, 1  ;;  %v6554_v48 = vadd.f32 %v6553_v2, %v6552_v35 }
 0x6f2   : > { %v6455_v50 = vadd.f32 %v6454_v3, %v6453_v31  ;;  %v6555_v12 = vrot.slane %v6554_v48, 1 }
 0x6f4   : > { %v11763_v5 = vmul.f32 0.00390625, %v6455_v50  ;;  %v6556_v7 = vadd.f32 %v6555_v12, %v6554_v48 }
 0x6f6   : > { %v6559_v40 = vmul.f32 %v11763_v5, %v11763_v5  ;;  %v6558_v0 = vmul.f32 0.00390625, %v6556_v7  ;;  %v6571_v43 = vsub.f32 %v11581_v41, %v11763_v5  ;;  %v6574_v39 = vsub.f32 %v11602_v11, %v11763_v5 }
 0x6f7   : > { %v6575_v57 = vsub.f32 %v11613_v53, %v11763_v5  ;;  %v6576_v46 = vsub.f32 %v11606_v56, %v11763_v5  ;;  %v6577_v21 = vsub.f32 %v11617_v25, %v11763_v5  ;;  %v6578_v29 = vsub.f32 %v11634_v60, %v11763_v5 }
 0x6f8   : > { %v6560_v20 = vsub.f32 %v6558_v0, %v6559_v40  ;;  %v6579_v41 = vsub.f32 %v11645_v14, %v11763_v5  ;;  %v6580_v17 = vsub.f32 %v11638_v42, %v11763_v5  ;;  %v6581_v11 = vsub.f32 %v11649_v6, %v11763_v5 }
 0x6f9   : > { %v6582_v53 = vsub.f32 %v11666_v16, %v11763_v5  ;;  %v6583_v56 = vsub.f32 %v11677_v28, %v11763_v5  ;;  %v6584_v25 = vsub.f32 %v11670_v26, %v11763_v5  ;;  %v6585_v60 = vsub.f32 %v11681_v55, %v11763_v5 }
 0x6fa   : > { %v6561_v54 = vmax.f32 %v6560_v20, 0.0  ;;  %v6586_v14 = vsub.f32 %v11698_v38, %v11763_v5  ;;  %v6587_v42 = vsub.f32 %v11709_v32, %v11763_v5  ;;  %v6588_v6 = vsub.f32 %v11702_v8, %v11763_v5 }
 0x6fb   : > { %v6589_v16 = vsub.f32 %v11713_v34, %v11763_v5  ;;  %v6590_v28 = vsub.f32 %v11730_v27, %v11763_v5  ;;  %v6591_v26 = vsub.f32 %v11741_v30, %v11763_v5  ;;  %v6592_v55 = vsub.f32 %v11734_v44, %v11763_v5 }
 0x6fc   : > { %v6593_v38 = vsub.f32 %v11745_v15, %v11763_v5  ;;  %v6594_v1 = vadd.f32 1e-05, %v6561_v54  ;;  %v6562_v8 = vsub.f32 %v11511_v49, %v11763_v5  ;;  %v6563_v32 = vsub.f32 %v11519_v33, %v11763_v5 }
 0x6fd   : > { %v6564_v34 = vsub.f32 %v11508_v9, %v11763_v5  ;;  %v6565_v27 = vsub.f32 %v11516_v61, %v11763_v5  ;;  %v6566_v44 = vsub.f32 %v11539_v18, %v11763_v5  ;;  %v6567_v30 = vsub.f32 %v11550_v47, %v11763_v5 }
 0x6fe   : > { %8606 = vrsqrt.f32 %v6594_v1  ;;  %v6568_v15 = vsub.f32 %v11542_v51, %v11763_v5  ;;  %v6569_v49 = vsub.f32 %v11553_v59, %v11763_v5  ;;  %v6570_v33 = vsub.f32 %v11570_v58, %v11763_v5 }
 0x6ff   : > { %v6572_v9 = vsub.f32 %v11574_v4, %v11763_v5  ;;  %v6573_v61 = vsub.f32 %v11585_v23, %v11763_v5  ;;  %v7142_v5 = vld [vmem:[%s11986_s7] ss:$0 sm:$0xff] }
 0x708   : > { %v8607_v13 = vpop.eup %8606 }
 0x709   : > { %v6596_v18 = vmul.f32 %v8607_v13, %v6562_v8  ;;  %v6597_v36 = vmul.f32 %v8607_v13, %v6563_v32  ;;  %v6598_v52 = vmul.f32 %v8607_v13, %v6564_v34  ;;  %v6599_v47 = vmul.f32 %v8607_v13, %v6565_v27 }
 0x70a   : > { %v6600_v45 = vmul.f32 %v8607_v13, %v6566_v44  ;;  %v6601_v10 = vmul.f32 %v8607_v13, %v6567_v30  ;;  %v6602_v51 = vmul.f32 %v8607_v13, %v6568_v15  ;;  %v6603_v22 = vmul.f32 %v8607_v13, %v6569_v49  ;;  %v7143_v30 = vld [vmem:[%s11987_s8] ss:$0 sm:$0xff] }
 0x70b   : > { %v6604_v63 = vmul.f32 %v8607_v13, %v6570_v33  ;;  %v6605_v19 = vmul.f32 %v8607_v13, %v6571_v43  ;;  %v6606_v59 = vmul.f32 %v8607_v13, %v6572_v9  ;;  %v6607_v62 = vmul.f32 %v8607_v13, %v6573_v61 }
 0x70c   : > { %v6608_v37 = vmul.f32 %v8607_v13, %v6574_v39  ;;  %v6609_v58 = vmul.f32 %v8607_v13, %v6575_v57  ;;  %v6610_v24 = vmul.f32 %v8607_v13, %v6576_v46  ;;  %v6611_v35 = vmul.f32 %v8607_v13, %v6577_v21 }
 0x70d   : > { %v6612_v4 = vmul.f32 %v8607_v13, %v6578_v29  ;;  %v6613_v31 = vmul.f32 %v8607_v13, %v6579_v41  ;;  %v6614_v2 = vmul.f32 %v8607_v13, %v6580_v17  ;;  %v6615_v23 = vmul.f32 %v8607_v13, %v6581_v11 }
 0x70e   : > { %v6616_v3 = vmul.f32 %v8607_v13, %v6582_v53  ;;  %v6617_v48 = vmul.f32 %v8607_v13, %v6583_v56  ;;  %v6618_v50 = vmul.f32 %v8607_v13, %v6584_v25  ;;  %v6619_v12 = vmul.f32 %v8607_v13, %v6585_v60 }
 0x70f   : > { %v6620_v7 = vmul.f32 %v8607_v13, %v6586_v14  ;;  %v6621_v40 = vmul.f32 %v8607_v13, %v6587_v42  ;;  %v6622_v0 = vmul.f32 %v8607_v13, %v6588_v6  ;;  %v6623_v43 = vmul.f32 %v8607_v13, %v6589_v16 }
 0x710   : > { %v6624_v20 = vmul.f32 %v8607_v13, %v6590_v28  ;;  %v6625_v39 = vmul.f32 %v8607_v13, %v6591_v26  ;;  %v6626_v57 = vmul.f32 %v8607_v13, %v6592_v55  ;;  %v6627_v46 = vmul.f32 %v8607_v13, %v6593_v38 }
 0x711   : > { %v6635_v21 = vmul.f32 %v7142_v5, %v6596_v18  ;;  %v6636_v29 = vmul.f32 %v7142_v5, %v6597_v36  ;;  %v6637_v54 = vmul.f32 %v7142_v5, %v6598_v52  ;;  %v6638_v41 = vmul.f32 %v7142_v5, %v6599_v47 }
 0x712   : > { %v6639_v17 = vmul.f32 %v7142_v5, %v6600_v45  ;;  %v6640_v11 = vmul.f32 %v7142_v5, %v6601_v10  ;;  %v6641_v53 = vmul.f32 %v7142_v5, %v6602_v51  ;;  %v6642_v56 = vmul.f32 %v7142_v5, %v6603_v22 }
 0x713   : > { %v6643_v25 = vmul.f32 %v7142_v5, %v6604_v63  ;;  %v6644_v60 = vmul.f32 %v7142_v5, %v6605_v19  ;;  %v6645_v1 = vmul.f32 %v7142_v5, %v6606_v59  ;;  %v6646_v8 = vmul.f32 %v7142_v5, %v6607_v62 }
 0x714   : > { %v6647_v14 = vmul.f32 %v7142_v5, %v6608_v37  ;;  %v6648_v42 = vmul.f32 %v7142_v5, %v6609_v58  ;;  %v6649_v6 = vmul.f32 %v7142_v5, %v6610_v24  ;;  %v6650_v16 = vmul.f32 %v7142_v5, %v6611_v35 }
 0x715   : > { %v6651_v28 = vmul.f32 %v7142_v5, %v6612_v4  ;;  %v6652_v26 = vmul.f32 %v7142_v5, %v6613_v31  ;;  %v6653_v55 = vmul.f32 %v7142_v5, %v6614_v2  ;;  %v6654_v38 = vmul.f32 %v7142_v5, %v6615_v23 }
 0x716   : > { %v6655_v32 = vmul.f32 %v7142_v5, %v6616_v3  ;;  %v6656_v34 = vmul.f32 %v7142_v5, %v6617_v48  ;;  %v6657_v27 = vmul.f32 %v7142_v5, %v6618_v50  ;;  %v6658_v44 = vmul.f32 %v7142_v5, %v6619_v12 }
 0x717   : > { %v6659_v15 = vmul.f32 %v7142_v5, %v6620_v7  ;;  %v6660_v13 = vmul.f32 %v7142_v5, %v6621_v40  ;;  %v6661_v49 = vmul.f32 %v7142_v5, %v6622_v0  ;;  %v6662_v33 = vmul.f32 %v7142_v5, %v6623_v43 }
 0x718   : > { %v6663_v9 = vmul.f32 %v7142_v5, %v6624_v20  ;;  %v6664_v61 = vmul.f32 %v7142_v5, %v6625_v39  ;;  %v6665_v18 = vmul.f32 %v7142_v5, %v6626_v57  ;;  %v6666_v36 = vmul.f32 %v7142_v5, %v6627_v46 }
 0x719   : > { %v6674_v52 = vadd.f32 %v7143_v30, %v6635_v21  ;;  %v6675_v47 = vadd.f32 %v7143_v30, %v6636_v29  ;;  %v6676_v45 = vadd.f32 %v7143_v30, %v6637_v54  ;;  %v6677_v10 = vadd.f32 %v7143_v30, %v6638_v41  ;;  %v8608_v29 = vld [vmem:[%s8726_s18] sm:$0xff]  ;;  %v8609_v41 = vld [vmem:[%s8726_s18 + $0x8] sm:$0xff] }
 0x71a   : > { %v6678_v51 = vadd.f32 %v7143_v30, %v6639_v17  ;;  %v6679_v22 = vadd.f32 %v7143_v30, %v6640_v11  ;;  %v6680_v63 = vadd.f32 %v7143_v30, %v6641_v53  ;;  %v6681_v19 = vadd.f32 %v7143_v30, %v6642_v56  ;;  %v8610_v11 = vld [vmem:[%s8726_s18 + $0x10] sm:$0xff]  ;;  %v8611_v56 = vld [vmem:[%s8726_s18 + $0x18] sm:$0xff] }
 0x71b   : > { %v6682_v59 = vadd.f32 %v7143_v30, %v6643_v25  ;;  %v6683_v62 = vadd.f32 %v7143_v30, %v6644_v60  ;;  %v6684_v37 = vadd.f32 %v7143_v30, %v6645_v1  ;;  %v6685_v58 = vadd.f32 %v7143_v30, %v6646_v8  ;;  %v8612_v60 = vld [vmem:[%s8726_s18 + $0x20] sm:$0xff]  ;;  %v8613_v8 = vld [vmem:[%s8726_s18 + $0x28] sm:$0xff] }
 0x71c   : > { %v6686_v24 = vadd.f32 %v7143_v30, %v6647_v14  ;;  %v6687_v35 = vadd.f32 %v7143_v30, %v6648_v42  ;;  %v6688_v4 = vadd.f32 %v7143_v30, %v6649_v6  ;;  %v6689_v31 = vadd.f32 %v7143_v30, %v6650_v16  ;;  %v8614_v42 = vld [vmem:[%s8726_s18 + $0x30] sm:$0xff]  ;;  %v8615_v16 = vld [vmem:[%s8726_s18 + $0x38] sm:$0xff] }
 0x71d   : > { %v6690_v2 = vadd.f32 %v7143_v30, %v6651_v28  ;;  %v6691_v23 = vadd.f32 %v7143_v30, %v6652_v26  ;;  %v6692_v3 = vadd.f32 %v7143_v30, %v6653_v55  ;;  %v6693_v48 = vadd.f32 %v7143_v30, %v6654_v38  ;;  %v8616_v26 = vld [vmem:[%s8726_s18 + $0x40] sm:$0xff]  ;;  %v8617_v38 = vld [vmem:[%s8726_s18 + $0x48] sm:$0xff] }
 0x71e   : > { %v11837_v50 = vadd.f32 %v7143_v30, %v6655_v32  ;;  %v11839_v12 = vadd.f32 %v7143_v30, %v6656_v34  ;;  %v11841_v5 = vadd.f32 %v7143_v30, %v6657_v27  ;;  %v11843_v7 = vadd.f32 %v7143_v30, %v6658_v44  ;;  %v8618_v34 = vld [vmem:[%s8726_s18 + $0x50] sm:$0xff]  ;;  %v8619_v44 = vld [vmem:[%s8726_s18 + $0x58] sm:$0xff] }
 0x71f   : > { %v11845_v40 = vadd.f32 %v7143_v30, %v6659_v15  ;;  %v11847_v0 = vadd.f32 %v7143_v30, %v6660_v13  ;;  %v11849_v43 = vadd.f32 %v7143_v30, %v6661_v49  ;;  %v11851_v20 = vadd.f32 %v7143_v30, %v6662_v33  ;;  %v8620_v15 = vld [vmem:[%s8726_s18 + $0x60] sm:$0xff]  ;;  %v8621_v49 = vld [vmem:[%s8726_s18 + $0x68] sm:$0xff] }
 0x720   : > { %v11860_v39 = vadd.f32 %v7143_v30, %v6663_v9  ;;  %v11862_v57 = vadd.f32 %v7143_v30, %v6664_v61  ;;  %v11864_v46 = vadd.f32 %v7143_v30, %v6665_v18  ;;  %v11866_v21 = vadd.f32 %v7143_v30, %v6666_v36  ;;  %v8622_v9 = vld [vmem:[%s8726_s18 + $0x70] sm:$0xff]  ;;  %v8623_v18 = vld [vmem:[%s8726_s18 + $0x78] sm:$0xff] }
 0x721   : > { %v6706_v54 = vadd.f32 %v8608_v29, %v6674_v52  ;;  %v6707_v17 = vadd.f32 %v8609_v41, %v6675_v47  ;;  %v6708_v53 = vadd.f32 %v8610_v11, %v6676_v45  ;;  %v6709_v25 = vadd.f32 %v8611_v56, %v6677_v10  ;;  %v8624_v52 = vld [vmem:[%s8726_s18 + $0x80] sm:$0xff]  ;;  %v8625_v45 = vld [vmem:[%s8726_s18 + $0x88] sm:$0xff]  ;;  %v8638_v29 = vld [vmem:[%s8726_s18 + $0xf0] sm:$0xff] }
 0x722   : > { %v6710_v1 = vadd.f32 %v8612_v60, %v6678_v51  ;;  %v6711_v14 = vadd.f32 %v8613_v8, %v6679_v22  ;;  %v6712_v6 = vadd.f32 %v8614_v42, %v6680_v63  ;;  %v6713_v28 = vadd.f32 %v8615_v16, %v6681_v19  ;;  %v8626_v51 = vld [vmem:[%s8726_s18 + $0x90] sm:$0xff]  ;;  %v8627_v63 = vld [vmem:[%s8726_s18 + $0x98] sm:$0xff] }
 0x723   : > { %v6714_v55 = vadd.f32 %v8616_v26, %v6682_v59  ;;  %v6715_v32 = vadd.f32 %v8617_v38, %v6683_v62  ;;  %v6716_v27 = vadd.f32 %v8618_v34, %v6684_v37  ;;  %v6717_v30 = vadd.f32 %v8619_v44, %v6685_v58  ;;  %6738 = vst.msk [vmem:[%s11858_s12] sm:$0xff] %vm1120_vm10, %v6706_v54  ;;  %v8628_v59 = vld [vmem:[%s8726_s18 + $0xa0] sm:$0xff]  ;;  %v8629_v37 = vld [vmem:[%s8726_s18 + $0xa8] sm:$0xff]  ;;  %v8639_v41 = vld [vmem:[%s8726_s18 + $0xf8] sm:$0xff] }
 0x724   : > { %6739 = vst.msk [vmem:[%s11858_s12 + $0x8] sm:$0xff] %vm1120_vm10, %v6707_v17  ;;  %6740 = vst.msk [vmem:[%s11858_s12 + $0x10] sm:$0xff] %vm1120_vm10, %v6708_v53  ;;  %v6718_v13 = vadd.f32 %v8620_v15, %v6686_v24  ;;  %v6719_v33 = vadd.f32 %v8621_v49, %v6687_v35  ;;  %v6720_v61 = vadd.f32 %v8622_v9, %v6688_v4  ;;  %v8630_v24 = vld [vmem:[%s8726_s18 + $0xb0] sm:$0xff]  ;;  %v8631_v4 = vld [vmem:[%s8726_s18 + $0xb8] sm:$0xff] }
 0x725   : > { %6741 = vst.msk [vmem:[%s11858_s12 + $0x18] sm:$0xff] %vm1120_vm10, %v6709_v25  ;;  %v6721_v36 = vadd.f32 %v8623_v18, %v6689_v31  ;;  %6742 = vst.msk [vmem:[%s11858_s12 + $0x20] sm:$0xff] %vm1120_vm10, %v6710_v1  ;;  %v6722_v47 = vadd.f32 %v8624_v52, %v6690_v2  ;;  %v6723_v10 = vadd.f32 %v8625_v45, %v6691_v23  ;;  %v8632_v2 = vld [vmem:[%s8726_s18 + $0xc0] sm:$0xff] }
 0x726   : > { %6743 = vst.msk [vmem:[%s11858_s12 + $0x28] sm:$0xff] %vm1120_vm10, %v6711_v14  ;;  %6744 = vst.msk [vmem:[%s11858_s12 + $0x30] sm:$0xff] %vm1120_vm10, %v6712_v6  ;;  %v6724_v22 = vadd.f32 %v8626_v51, %v6692_v3  ;;  %v6725_v19 = vadd.f32 %v8627_v63, %v6693_v48  ;;  %v6726_v62 = vadd.f32 %v8628_v59, %v11837_v50  ;;  %v8633_v3 = vld [vmem:[%s8726_s18 + $0xc8] sm:$0xff]  ;;  %v8634_v50 = vld [vmem:[%s8726_s18 + $0xd0] sm:$0xff] }
 0x727   : > { %6745 = vst.msk [vmem:[%s11858_s12 + $0x38] sm:$0xff] %vm1120_vm10, %v6713_v28  ;;  %6746 = vst.msk [vmem:[%s11858_s12 + $0x40] sm:$0xff] %vm1120_vm10, %v6714_v55  ;;  %v6727_v58 = vadd.f32 %v8629_v37, %v11839_v12  ;;  %v6728_v35 = vadd.f32 %v8630_v24, %v11841_v5  ;;  %v6729_v31 = vadd.f32 %v8631_v4, %v11843_v7  ;;  %v8635_v5 = vld [vmem:[%s8726_s18 + $0xd8] sm:$0xff] }
 0x728   : > { %6747 = vst.msk [vmem:[%s11858_s12 + $0x48] sm:$0xff] %vm1120_vm10, %v6715_v32  ;;  %6748 = vst.msk [vmem:[%s11858_s12 + $0x50] sm:$0xff] %vm1120_vm10, %v6716_v27  ;;  %v6730_v23 = vadd.f32 %v8632_v2, %v11845_v40  ;;  %v6731_v48 = vadd.f32 %v8633_v3, %v11847_v0  ;;  %v6732_v12 = vadd.f32 %v8634_v50, %v11849_v43  ;;  %v8636_v40 = vld [vmem:[%s8726_s18 + $0xe0] sm:$0xff]  ;;  %v8637_v43 = vld [vmem:[%s8726_s18 + $0xe8] sm:$0xff] }
 0x729   : > { %6749 = vst.msk [vmem:[%s11858_s12 + $0x58] sm:$0xff] %vm1120_vm10, %v6717_v30  ;;  %6750 = vst.msk [vmem:[%s11858_s12 + $0x60] sm:$0xff] %vm1120_vm10, %v6718_v13  ;;  %v6733_v7 = vadd.f32 %v8635_v5, %v11851_v20  ;;  %v6734_v0 = vadd.f32 %v8636_v40, %v11860_v39  ;;  %v6735_v20 = vadd.f32 %v8637_v43, %v11862_v57 }
 0x72a   : > { %6751 = vst.msk [vmem:[%s11858_s12 + $0x68] sm:$0xff] %vm1120_vm10, %v6719_v33  ;;  %6752 = vst.msk [vmem:[%s11858_s12 + $0x70] sm:$0xff] %vm1120_vm10, %v6720_v61  ;;  %v6736_v54 = vadd.f32 %v8638_v29, %v11864_v46  ;;  %v6737_v17 = vadd.f32 %v8639_v41, %v11866_v21 }
 0x72b   : > { %6753 = vst.msk [vmem:[%s11858_s12 + $0x78] sm:$0xff] %vm1120_vm10, %v6721_v36  ;;  %6754 = vst.msk [vmem:[%s11858_s12 + $0x80] sm:$0xff] %vm1120_vm10, %v6722_v47 }
 0x72c   : > { %6755 = vst.msk [vmem:[%s11858_s12 + $0x88] sm:$0xff] %vm1120_vm10, %v6723_v10  ;;  %6756 = vst.msk [vmem:[%s11858_s12 + $0x90] sm:$0xff] %vm1120_vm10, %v6724_v22 }
 0x72d   : > { %6757 = vst.msk [vmem:[%s11858_s12 + $0x98] sm:$0xff] %vm1120_vm10, %v6725_v19  ;;  %6758 = vst.msk [vmem:[%s11858_s12 + $0xa0] sm:$0xff] %vm1120_vm10, %v6726_v62 }
 0x72e   : > { %6759 = vst.msk [vmem:[%s11858_s12 + $0xa8] sm:$0xff] %vm1120_vm10, %v6727_v58  ;;  %6760 = vst.msk [vmem:[%s11858_s12 + $0xb0] sm:$0xff] %vm1120_vm10, %v6728_v35 }
 0x72f   : > { %6761 = vst.msk [vmem:[%s11858_s12 + $0xb8] sm:$0xff] %vm1120_vm10, %v6729_v31  ;;  %6762 = vst.msk [vmem:[%s11858_s12 + $0xc0] sm:$0xff] %vm1120_vm10, %v6730_v23 }
 0x730   : > { %6763 = vst.msk [vmem:[%s11858_s12 + $0xc8] sm:$0xff] %vm1120_vm10, %v6731_v48  ;;  %6764 = vst.msk [vmem:[%s11858_s12 + $0xd0] sm:$0xff] %vm1120_vm10, %v6732_v12 }
 0x731   : > { %6765 = vst.msk [vmem:[%s11858_s12 + $0xd8] sm:$0xff] %vm1120_vm10, %v6733_v7  ;;  %6766 = vst.msk [vmem:[%s11858_s12 + $0xe0] sm:$0xff] %vm1120_vm10, %v6734_v0 }
 0x732   : > { %6767 = vst.msk [vmem:[%s11858_s12 + $0xe8] sm:$0xff] %vm1120_vm10, %v6735_v20  ;;  %6768 = vst.msk [vmem:[%s11858_s12 + $0xf0] sm:$0xff] %vm1120_vm10, %v6736_v54 }
 0x733   : > { %6769 = vst.msk [vmem:[%s11858_s12 + $0xf8] sm:$0xff] %vm1120_vm10, %v6737_v17 }
 0x734 PF: > { %s19_s30 = sadd.s32 1, %s8646_s30  }
 0x735   : > { %p16_p4 = scmp.ge.s32.totalorder %s19_s30, 4  }
 0x737   :  { %18 = sbr.rel (!%p16_p4) target bundleno = 1 (0x1), region = 104 }

</bundles_post_ra>
